<compile_context>
chip_gen: v7x
topology: tpu7x:2x2x1
jax: 0.10.0
libtpu: 0.0.40
codegen_flags: <defaults>
</compile_context>

<pallas_src>
import math
from functools import partial

import jax
import jax.numpy as jnp
from jax.experimental import pallas as pl
from jax.experimental.pallas import tpu as pltpu


# ----------------------------- helpers -----------------------------

def _row_tile(n):
    """Pick a row tile that divides n, prefers >=2 grid steps (megacore sharding)."""
    if n % 256 == 0:
        return 128
    for tm in (128, 64, 32, 16, 8):
        if n % tm == 0 and n // tm >= 2:
            return tm
    return n


def _bcast_spec(shape):
    """BlockSpec for an operand that is identical for every grid step (weights)."""
    nd = len(shape)
    return pl.BlockSpec(shape, lambda b, _nd=nd: (0,) * _nd)


_PARALLEL1 = pltpu.CompilerParams(dimension_semantics=("parallel",))


# ----------------------------- in-kernel building blocks -----------------------------

def _residual_layernorm(resid_bf16, delta_f32, gamma, beta):
    """Post-LN: LayerNorm(resid + delta).  All statistics in f32 (torch eps 1e-5)."""
    y = resid_bf16.astype(jnp.float32) + delta_f32
    mu = jnp.mean(y, axis=-1, keepdims=True)
    var = jnp.mean(jnp.square(y - mu), axis=-1, keepdims=True)
    inv = jax.lax.rsqrt(var + 1e-5)
    return (y - mu) * inv * gamma + beta


def _mha_core(q, k, v, bias, num_heads, scale):
    """q:[Sq,D], k/v:[Sk,D] bf16; bias:[1 or Sq, Sk] f32 additive -> ctx [Sq,D] bf16."""
    d = q.shape[-1]
    dh = d // num_heads
    parts = []
    for h in range(num_heads):                       # static unroll; per-head lane slices
        lo, hi = h * dh, (h + 1) * dh
        s = jnp.einsum('qd,kd->qk', q[:, lo:hi], k[:, lo:hi],
                       preferred_element_type=jnp.float32) * scale
        s = s + bias                                  # broadcasts [1,Sk] or [Sq,Sk]
        s = s - jnp.max(s, axis=-1, keepdims=True)
        p = jnp.exp(s)
        p = p * pl.reciprocal(jnp.sum(p, axis=-1, keepdims=True), approx=True)
        parts.append(jnp.dot(p.astype(jnp.bfloat16), v[:, lo:hi],
                             preferred_element_type=jnp.float32))
    return jnp.concatenate(parts, axis=-1).astype(jnp.bfloat16)      # [Sq, D]


# ----------------------------- fused Pallas kernels -----------------------------

def _self_attn_kernel(x_ref, wqkv_ref, bqkv_ref, wo_ref, bo_ref,
                      bias_ref, g_ref, beta_ref, o_ref, *, num_heads, scale):
    """Fused QKV projection + MHA + output projection + residual + LayerNorm."""
    x = x_ref[0]                                     # [S, D] bf16
    bias = bias_ref[0]                               # [1 or S, S] f32
    d = x.shape[-1]
    qkv = (jnp.dot(x, wqkv_ref[...], preferred_element_type=jnp.float32)
           + bqkv_ref[...]).astype(jnp.bfloat16)     # one wide GEMM for Q|K|V
    q, k, v = qkv[:, :d], qkv[:, d:2 * d], qkv[:, 2 * d:]
    ctx = _mha_core(q, k, v, bias, num_heads, scale)
    out = jnp.dot(ctx, wo_ref[...], preferred_element_type=jnp.float32) + bo_ref[...]
    o_ref[0] = _residual_layernorm(x, out, g_ref[...], beta_ref[...]).astype(o_ref.dtype)


def _cross_attn_kernel(xq_ref, xkv_ref, wq_ref, bq_ref, wkv_ref, bkv_ref,
                       wo_ref, bo_ref, bias_ref, g_ref, beta_ref, o_ref,
                       *, num_heads, scale):
    """Fused Q + (K|V) projections + MHA + output projection + residual + LayerNorm."""
    xq = xq_ref[0]                                   # [Sq, D] bf16
    xkv = xkv_ref[0]                                 # [Sk, D] bf16
    bias = bias_ref[0]                               # [1 or Sq, Sk] f32
    d = xq.shape[-1]
    q = (jnp.dot(xq, wq_ref[...], preferred_element_type=jnp.float32)
         + bq_ref[...]).astype(jnp.bfloat16)
    kv = (jnp.dot(xkv, wkv_ref[...], preferred_element_type=jnp.float32)
          + bkv_ref[...]).astype(jnp.bfloat16)
    k, v = kv[:, :d], kv[:, d:]
    ctx = _mha_core(q, k, v, bias, num_heads, scale)
    out = jnp.dot(ctx, wo_ref[...], preferred_element_type=jnp.float32) + bo_ref[...]
    o_ref[0] = _residual_layernorm(xq, out, g_ref[...], beta_ref[...]).astype(o_ref.dtype)


def self_attn_block(p, x, bias, num_heads):
    B, S, D = x.shape
    scale = 1.0 / math.sqrt(D // num_heads)
    bq = bias.shape[1]                               # 1 (padding-only) or S (causal)
    return pl.pallas_call(
        partial(_self_attn_kernel, num_heads=num_heads, scale=scale),
        out_shape=jax.ShapeDtypeStruct((B, S, D), jnp.bfloat16),
        grid=(B,),
        in_specs=[
            pl.BlockSpec((1, S, D), lambda b: (b, 0, 0)),     # activations
            _bcast_spec((D, 3 * D)), _bcast_spec((1, 3 * D)),  # Wqkv, bqkv
            _bcast_spec((D, D)), _bcast_spec((1, D)),           # Wo, bo
            pl.BlockSpec((1, bq, S), lambda b: (b, 0, 0)),     # additive mask bias
            _bcast_spec((1, D)), _bcast_spec((1, D)),            # LN gamma, beta
        ],
        out_specs=pl.BlockSpec((1, S, D), lambda b: (b, 0, 0)),
        compiler_params=_PARALLEL1,
    )(x, p['wqkv'], p['bqkv'], p['wo'], p['bo'], bias, p['ln_g'], p['ln_b'])


def cross_attn_block(p, q_in, kv_in, bias, num_heads):
    B, Sq, D = q_in.shape
    Sk = kv_in.shape[1]
    scale = 1.0 / math.sqrt(D // num_heads)
    bq = bias.shape[1]
    return pl.pallas_call(
        partial(_cross_attn_kernel, num_heads=num_heads, scale=scale),
        out_shape=jax.ShapeDtypeStruct((B, Sq, D), jnp.bfloat16),
        grid=(B,),
        in_specs=[
            pl.BlockSpec((1, Sq, D), lambda b: (b, 0, 0)),     # query-side activations
            pl.BlockSpec((1, Sk, D), lambda b: (b, 0, 0)),     # key/value-side activations
            _bcast_spec((D, D)), _bcast_spec((1, D)),           # Wq, bq
            _bcast_spec((D, 2 * D)), _bcast_spec((1, 2 * D)),  # Wkv (concat), bkv
            _bcast_spec((D, D)), _bcast_spec((1, D)),           # Wo, bo
            pl.BlockSpec((1, bq, Sk), lambda b: (b, 0, 0)),    # additive mask bias
            _bcast_spec((1, D)), _bcast_spec((1, D)),            # LN gamma, beta
        ],
        out_specs=pl.BlockSpec((1, Sq, D), lambda b: (b, 0, 0)),
        compiler_params=_PARALLEL1,
    )(q_in, kv_in, p['wq'], p['bq'], p['wkv'], p['bkv'], p['wo'], p['bo'],
      bias, p['ln_g'], p['ln_b'])


def _ffn_block_kernel(x_ref, w1_ref, b1_ref, w2_ref, b2_ref, g_ref, beta_ref, o_ref):
    x = x_ref[...]                                                   # [TM, D] bf16
    h = jnp.dot(x, w1_ref[...], preferred_element_type=jnp.float32) + b1_ref[...]
    h = jnp.maximum(h, 0.0).astype(jnp.bfloat16)
    out = jnp.dot(h, w2_ref[...], preferred_element_type=jnp.float32) + b2_ref[...]
    o_ref[...] = _residual_layernorm(x, out, g_ref[...], beta_ref[...]).astype(o_ref.dtype)


def ffn_block(p, x):
    B, S, D = x.shape
    n = B * S
    F = p['w1'].shape[1]
    tm = _row_tile(n)
    out = pl.pallas_call(
        _ffn_block_kernel,
        out_shape=jax.ShapeDtypeStruct((n, D), jnp.bfloat16),
        grid=(n // tm,),
        in_specs=[
            pl.BlockSpec((tm, D), lambda i: (i, 0)),
            _bcast_spec((D, F)), _bcast_spec((1, F)),
            _bcast_spec((F, D)), _bcast_spec((1, D)),
            _bcast_spec((1, D)), _bcast_spec((1, D)),
        ],
        out_specs=pl.BlockSpec((tm, D), lambda i: (i, 0)),
        compiler_params=_PARALLEL1,
    )(x.reshape(n, D), p['w1'], p['b1'], p['w2'], p['b2'], p['ln_g'], p['ln_b'])
    return out.reshape(B, S, D)


def _linear_kernel(x_ref, w_ref, b_ref, o_ref):
    o_ref[...] = (jnp.dot(x_ref[...], w_ref[...], preferred_element_type=jnp.float32)
                  + b_ref[...]).astype(o_ref.dtype)


def pallas_linear(x2d, w, b, out_dtype=jnp.bfloat16):
    n, din = x2d.shape
    dout = w.shape[1]
    tm = _row_tile(n)
    return pl.pallas_call(
        _linear_kernel,
        out_shape=jax.ShapeDtypeStruct((n, dout), out_dtype),
        grid=(n // tm,),
        in_specs=[pl.BlockSpec((tm, din), lambda i: (i, 0)),
                  _bcast_spec((din, dout)),
                  _bcast_spec((1, dout))],
        out_specs=pl.BlockSpec((tm, dout), lambda i: (i, 0)),
        compiler_params=_PARALLEL1,
    )(x2d, w, b.reshape(1, dout))


def _proj_softmax_kernel(x_ref, w_ref, o_ref):
    logits = jnp.dot(x_ref[...], w_ref[...], preferred_element_type=jnp.float32)
    logits = logits - jnp.max(logits, axis=-1, keepdims=True)
    e = jnp.exp(logits)
    o_ref[...] = e / jnp.sum(e, axis=-1, keepdims=True)   # exact softmax on the output


def pallas_proj_softmax(x2d, w):
    # TODO(synk): for realistic vocab sizes this should become an online softmax over
    #             128-aligned vocab tiles (grid axis "arbitrary") to fit v7x's 64 MiB VMEM.
    n, d = x2d.shape
    vocab = w.shape[1]
    tm = _row_tile(n)
    return pl.pallas_call(
        _proj_softmax_kernel,
        out_shape=jax.ShapeDtypeStruct((n, vocab), jnp.float32),
        grid=(n // tm,),
        in_specs=[pl.BlockSpec((tm, d), lambda i: (i, 0)),
                  _bcast_spec((d, vocab))],
        out_specs=pl.BlockSpec((tm, vocab), lambda i: (i, 0)),
        compiler_params=_PARALLEL1,
    )(x2d, w)


# ----------------------------- plain-JAX glue -----------------------------

def sinusoidal_pe(max_len, d_model):
    pos = jnp.arange(max_len, dtype=jnp.float32)[:, None]
    i = jnp.arange(d_model)[None, :]
    angle = pos / jnp.power(10000.0, (2 * (i // 2)).astype(jnp.float32) / d_model)
    return jnp.where(i % 2 == 0, jnp.sin(angle), jnp.cos(angle))


def padding_bias(seq_k):
    # additive bias [B, 1, Lk]: -1e9 where the KEY position is PAD (token id 0)
    return jnp.where(seq_k == 0, -1e9, 0.0).astype(jnp.float32)[:, None, :]


def embed(embedding, pe, seq):
    D = embedding.shape[1]
    x = jnp.take(embedding, seq, axis=0).astype(jnp.float32) * math.sqrt(D)
    return (x + pe[:seq.shape[1]][None]).astype(jnp.bfloat16)


def encoder_fwd(params, src_seq, embedding, pe, num_heads):
    x = embed(embedding, pe, src_seq)
    self_bias = padding_bias(src_seq)                         # [B, 1, S]
    for lp in params['layers']:
        x = self_attn_block(lp['self_attn'], x, self_bias, num_heads)
        x = ffn_block(lp['ffn'], x)
    return x


def decoder_fwd(params, dec_tgt, enc_out, embedding, ctx_bias, pe, num_heads):
    B, S = dec_tgt.shape
    x = embed(embedding, pe, dec_tgt)
    causal = jnp.where(jnp.triu(jnp.ones((S, S), jnp.bool_), k=1), -1e9, 0.0)[None]
    self_bias = padding_bias(dec_tgt) + causal.astype(jnp.float32)   # [B, S, S]
    for lp in params['layers']:
        x = self_attn_block(lp['self_attn'], x, self_bias, num_heads)
        x = cross_attn_block(lp['cross_attn'], x, enc_out, ctx_bias, num_heads)
        x = ffn_block(lp['ffn'], x)
    D = x.shape[-1]
    probs = pallas_proj_softmax(x.reshape(B * S, D), params['out_w'])
    return probs.reshape(B, S, -1)


def generator_fwd(params, image_in, enc_out, pe, num_heads):
    # TODO(synk): exact Generator definition missing upstream; cross-attention stack inferred.
    B, N, Din = image_in.shape
    D = params['in_proj']['w'].shape[1]
    x = pallas_linear(image_in.reshape(B * N, Din).astype(jnp.bfloat16),
                      params['in_proj']['w'], params['in_proj']['b'])
    x = (x.reshape(B, N, D).astype(jnp.float32) + pe[:N][None]).astype(jnp.bfloat16)
    zero_self = jnp.zeros((B, 1, N), jnp.float32)
    zero_cross = jnp.zeros((B, 1, enc_out.shape[1]), jnp.float32)
    for lp in params['layers']:
        x = self_attn_block(lp['self_attn'], x, zero_self, num_heads)
        x = cross_attn_block(lp['cross_attn'], x, enc_out, zero_cross, num_heads)
        x = ffn_block(lp['ffn'], x)
    return x


def transformer_fwd(params, src_seq, dec_tgt, image_in, num_heads):
    context_attn_bias_dec = padding_bias(src_seq)             # keys = encoder tokens
    en_output = encoder_fwd(params['encoder'], src_seq, params['embedding'],
                            params['pe'], num_heads)
    dec_output = decoder_fwd(params['decoder'], dec_tgt, en_output, params['embedding'],
                             context_attn_bias_dec, params['pe'], num_heads)
    gen_output = generator_fwd(params['generator'], image_in, en_output,
                               params['pe'], num_heads)
    return dec_output, gen_output


# ----------------------------- parameters -----------------------------

def init_params(key, vocab, max_len, d_model, ffn_dim, num_layers, stack_layers, d_img):
    keys = iter(jax.random.split(key, 512))

    def w_(din, dout):
        return (jax.random.normal(next(keys), (din, dout), jnp.float32) * 0.02
                ).astype(jnp.bfloat16)

    def b_(dout):
        return jax.random.normal(next(keys), (1, dout), jnp.float32) * 0.02

    def ln_():
        return {'ln_g': jnp.ones((1, d_model), jnp.float32),
                'ln_b': jnp.zeros((1, d_model), jnp.float32)}

    def mha_self_p():
        return {'wqkv': jnp.concatenate([w_(d_model, d_model) for _ in range(3)], axis=1),
                'bqkv': jnp.concatenate([b_(d_model) for _ in range(3)], axis=1),
                'wo': w_(d_model, d_model), 'bo': b_(d_model), **ln_()}

    def mha_cross_p():
        return {'wq': w_(d_model, d_model), 'bq': b_(d_model),
                'wkv': jnp.concatenate([w_(d_model, d_model) for _ in range(2)], axis=1),
                'bkv': jnp.concatenate([b_(d_model) for _ in range(2)], axis=1),
                'wo': w_(d_model, d_model), 'bo': b_(d_model), **ln_()}

    def ffn_p():
        return {'w1': w_(d_model, ffn_dim), 'b1': b_(ffn_dim),
                'w2': w_(ffn_dim, d_model), 'b2': b_(d_model), **ln_()}

    encoder = {'layers': [{'self_attn': mha_self_p(), 'ffn': ffn_p()}
                          for _ in range(num_layers)]}
    decoder = {'layers': [{'self_attn': mha_self_p(), 'cross_attn': mha_cross_p(),
                           'ffn': ffn_p()} for _ in range(num_layers)],
               'out_w': w_(d_model, vocab)}        # reference: Linear(d_model, vocab, bias=False)
    generator = {'in_proj': {'w': w_(d_img, d_model),
                             'b': jax.random.normal(next(keys), (d_model,), jnp.float32) * 0.02},
                 'layers': [{'self_attn': mha_self_p(), 'cross_attn': mha_cross_p(),
                             'ffn': ffn_p()} for _ in range(stack_layers)]}
    embedding = (jax.random.normal(next(keys), (vocab, d_model), jnp.float32) * 0.02
                 ).astype(jnp.bfloat16)
    return {'encoder': encoder, 'decoder': decoder, 'generator': generator,
            'embedding': embedding, 'pe': sinusoidal_pe(max_len, d_model)}


# ----------------------------- main -----------------------------

if __name__ == "__main__":
    B, S_src, S_tgt, N_img = 2, 8, 8, 8
    vocab, max_len, d_model, num_heads, ffn_dim = 64, 16, 32, 4, 64
    num_layers, stack_layers, d_img = 2, 2, 32

    params = init_params(jax.random.PRNGKey(42), vocab, max_len, d_model,
                         ffn_dim, num_layers, stack_layers, d_img)

    k1, k2, k3 = jax.random.split(jax.random.PRNGKey(0), 3)
    src_seq = jax.random.randint(k1, (B, S_src), 1, vocab, dtype=jnp.int32)
    src_seq = src_seq.at[1, -2:].set(0)          # exercise padding mask
    dec_tgt = jax.random.randint(k2, (B, S_tgt), 1, vocab, dtype=jnp.int32)
    dec_tgt = dec_tgt.at[0, -1:].set(0)
    image_in = jax.random.normal(k3, (B, N_img, d_img), jnp.float32)

    fwd = jax.jit(partial(transformer_fwd, num_heads=num_heads))
    dec_out, gen_out = fwd(params, src_seq, dec_tgt, image_in)
    jax.block_until_ready((dec_out, gen_out))

    assert dec_out.shape == (B, S_tgt, vocab)
    assert gen_out.shape == (B, N_img, d_model)
    assert bool(jnp.all(jnp.isfinite(dec_out))) and bool(jnp.all(jnp.isfinite(gen_out)))
    # decoder output is a softmax over vocab (dim=2): rows sum to 1
    assert bool(jnp.allclose(jnp.sum(dec_out, axis=2), 1.0, atol=1e-4))
    print("KERNEL_OK")
</pallas_src>

<mosaic_0001>
module attributes {stable_mosaic.version = 11 : i64} {
  func.func @_self_attn_kernel(%arg0: i32, %arg1: memref<1x8x32xbf16, #tpu.memory_space<vmem>>, %arg2: memref<32x96xbf16, #tpu.memory_space<vmem>>, %arg3: memref<1x96xf32, #tpu.memory_space<vmem>>, %arg4: memref<32x32xbf16, #tpu.memory_space<vmem>>, %arg5: memref<1x32xf32, #tpu.memory_space<vmem>>, %arg6: memref<1x1x8xf32, #tpu.memory_space<vmem>>, %arg7: memref<1x32xf32, #tpu.memory_space<vmem>>, %arg8: memref<1x32xf32, #tpu.memory_space<vmem>>, %arg9: memref<1x8x32xbf16, #tpu.memory_space<vmem>>) attributes {dimension_semantics = [#tpu.dimension_semantics<parallel>], iteration_bounds = array<i64: 2>, scalar_prefetch = 0 : i64, scratch_operands = 0 : i64, tpu.core_type = #tpu.core_type<tc>, window_params = [{transform_indices = @transform_0, window_bounds = array<i64: 1, 8, 32>}, {pipeline_mode = #tpu.pipeline_mode<synchronous>, transform_indices = @transform_1, window_bounds = array<i64: 32, 96>}, {pipeline_mode = #tpu.pipeline_mode<synchronous>, transform_indices = @transform_2, window_bounds = array<i64: 1, 96>}, {pipeline_mode = #tpu.pipeline_mode<synchronous>, transform_indices = @transform_3, window_bounds = array<i64: 32, 32>}, {pipeline_mode = #tpu.pipeline_mode<synchronous>, transform_indices = @transform_4, window_bounds = array<i64: 1, 32>}, {transform_indices = @transform_5, window_bounds = array<i64: 1, 1, 8>}, {pipeline_mode = #tpu.pipeline_mode<synchronous>, transform_indices = @transform_6, window_bounds = array<i64: 1, 32>}, {pipeline_mode = #tpu.pipeline_mode<synchronous>, transform_indices = @transform_7, window_bounds = array<i64: 1, 32>}, {transform_indices = @transform_8, window_bounds = array<i64: 1, 8, 32>}]} {
    %c0 = arith.constant 0 : index
    %c0_0 = arith.constant 0 : index
    %c0_1 = arith.constant 0 : index
    %0 = vector.load %arg1[%c0, %c0_0, %c0_1] : memref<1x8x32xbf16, #tpu.memory_space<vmem>>, vector<1x8x32xbf16>
    %1 = vector.shape_cast %0 : vector<1x8x32xbf16> to vector<8x32xbf16>
    %c0_2 = arith.constant 0 : index
    %c0_3 = arith.constant 0 : index
    %c0_4 = arith.constant 0 : index
    %2 = vector.load %arg6[%c0_2, %c0_3, %c0_4] : memref<1x1x8xf32, #tpu.memory_space<vmem>>, vector<1x1x8xf32>
    %3 = vector.shape_cast %2 : vector<1x1x8xf32> to vector<1x8xf32>
    %c0_5 = arith.constant 0 : index
    %c0_6 = arith.constant 0 : index
    %4 = vector.load %arg2[%c0_5, %c0_6] : memref<32x96xbf16, #tpu.memory_space<vmem>>, vector<32x96xbf16>
    %cst = arith.constant dense<0.000000e+00> : vector<8x96xf32>
    %5 = tpu.matmul %1, %4, %cst {dimension_numbers = #tpu.dot_dimension_numbers<[1], [0], [0], [1], [0, 0, 1, 1], [], []>} : vector<8x32xbf16>, vector<32x96xbf16>, vector<8x96xf32> -> vector<8x96xf32>
    %c0_7 = arith.constant 0 : index
    %c0_8 = arith.constant 0 : index
    %6 = vector.load %arg3[%c0_7, %c0_8] : memref<1x96xf32, #tpu.memory_space<vmem>>, vector<1x96xf32>
    %7 = vector.broadcast %6 : vector<1x96xf32> to vector<8x96xf32>
    %8 = arith.addf %5, %7 : vector<8x96xf32>
    %9 = arith.truncf %8 : vector<8x96xf32> to vector<8x96xbf16>
    %10 = vector.extract_strided_slice %9 {offsets = [0, 0], sizes = [8, 32], strides = [1, 1]} : vector<8x96xbf16> to vector<8x32xbf16>
    %11 = vector.extract_strided_slice %9 {offsets = [0, 32], sizes = [8, 32], strides = [1, 1]} : vector<8x96xbf16> to vector<8x32xbf16>
    %12 = vector.extract_strided_slice %9 {offsets = [0, 64], sizes = [8, 32], strides = [1, 1]} : vector<8x96xbf16> to vector<8x32xbf16>
    %13 = vector.extract_strided_slice %10 {offsets = [0, 0], sizes = [8, 8], strides = [1, 1]} : vector<8x32xbf16> to vector<8x8xbf16>
    %14 = vector.extract_strided_slice %11 {offsets = [0, 0], sizes = [8, 8], strides = [1, 1]} : vector<8x32xbf16> to vector<8x8xbf16>
    "tpu.trace_start"() <{level = 10 : i32, message = "qd,kd->qk"}> : () -> ()
    %cst_9 = arith.constant dense<0.000000e+00> : vector<8x8xf32>
    %15 = tpu.matmul %13, %14, %cst_9 {dimension_numbers = #tpu.dot_dimension_numbers<[1], [1], [0], [0], [0, 0, 1, 0], [], []>} : vector<8x8xbf16>, vector<8x8xbf16>, vector<8x8xf32> -> vector<8x8xf32>
    "tpu.trace_stop"() : () -> ()
    %cst_10 = arith.constant 0.353553385 : f32
    %16 = vector.broadcast %cst_10 : f32 to vector<8x8xf32>
    %17 = arith.mulf %15, %16 : vector<8x8xf32>
    %18 = vector.broadcast %3 : vector<1x8xf32> to vector<8x8xf32>
    %19 = arith.addf %17, %18 : vector<8x8xf32>
    %cst_11 = arith.constant dense<0xFF800000> : vector<8xf32>
    %20 = vector.multi_reduction <maximumf>, %19, %cst_11 [1] : vector<8x8xf32> to vector<8xf32>
    %21 = vector.shape_cast %20 : vector<8xf32> to vector<8x1xf32>
    %22 = vector.broadcast %21 : vector<8x1xf32> to vector<8x8xf32>
    %23 = arith.subf %19, %22 : vector<8x8xf32>
    %24 = math.exp %23 : vector<8x8xf32>
    %cst_12 = arith.constant dense<0.000000e+00> : vector<8xf32>
    %25 = vector.multi_reduction <add>, %24, %cst_12 [1] : vector<8x8xf32> to vector<8xf32>
    %26 = vector.shape_cast %25 : vector<8xf32> to vector<8x1xf32>
    %27 = tpu.reciprocal %26 {approx = true} : vector<8x1xf32> -> vector<8x1xf32>
    %28 = vector.broadcast %27 : vector<8x1xf32> to vector<8x8xf32>
    %29 = arith.mulf %24, %28 : vector<8x8xf32>
    %30 = arith.truncf %29 : vector<8x8xf32> to vector<8x8xbf16>
    %31 = vector.extract_strided_slice %12 {offsets = [0, 0], sizes = [8, 8], strides = [1, 1]} : vector<8x32xbf16> to vector<8x8xbf16>
    %cst_13 = arith.constant dense<0.000000e+00> : vector<8x8xf32>
    %32 = tpu.matmul %30, %31, %cst_13 {dimension_numbers = #tpu.dot_dimension_numbers<[1], [0], [0], [1], [0, 0, 1, 1], [], []>} : vector<8x8xbf16>, vector<8x8xbf16>, vector<8x8xf32> -> vector<8x8xf32>
    %33 = vector.extract_strided_slice %10 {offsets = [0, 8], sizes = [8, 8], strides = [1, 1]} : vector<8x32xbf16> to vector<8x8xbf16>
    %34 = vector.extract_strided_slice %11 {offsets = [0, 8], sizes = [8, 8], strides = [1, 1]} : vector<8x32xbf16> to vector<8x8xbf16>
    "tpu.trace_start"() <{level = 10 : i32, message = "qd,kd->qk"}> : () -> ()
    %cst_14 = arith.constant dense<0.000000e+00> : vector<8x8xf32>
    %35 = tpu.matmul %33, %34, %cst_14 {dimension_numbers = #tpu.dot_dimension_numbers<[1], [1], [0], [0], [0, 0, 1, 0], [], []>} : vector<8x8xbf16>, vector<8x8xbf16>, vector<8x8xf32> -> vector<8x8xf32>
    "tpu.trace_stop"() : () -> ()
    %cst_15 = arith.constant 0.353553385 : f32
    %36 = vector.broadcast %cst_15 : f32 to vector<8x8xf32>
    %37 = arith.mulf %35, %36 : vector<8x8xf32>
    %38 = vector.broadcast %3 : vector<1x8xf32> to vector<8x8xf32>
    %39 = arith.addf %37, %38 : vector<8x8xf32>
    %cst_16 = arith.constant dense<0xFF800000> : vector<8xf32>
    %40 = vector.multi_reduction <maximumf>, %39, %cst_16 [1] : vector<8x8xf32> to vector<8xf32>
    %41 = vector.shape_cast %40 : vector<8xf32> to vector<8x1xf32>
    %42 = vector.broadcast %41 : vector<8x1xf32> to vector<8x8xf32>
    %43 = arith.subf %39, %42 : vector<8x8xf32>
    %44 = math.exp %43 : vector<8x8xf32>
    %cst_17 = arith.constant dense<0.000000e+00> : vector<8xf32>
    %45 = vector.multi_reduction <add>, %44, %cst_17 [1] : vector<8x8xf32> to vector<8xf32>
    %46 = vector.shape_cast %45 : vector<8xf32> to vector<8x1xf32>
    %47 = tpu.reciprocal %46 {approx = true} : vector<8x1xf32> -> vector<8x1xf32>
    %48 = vector.broadcast %47 : vector<8x1xf32> to vector<8x8xf32>
    %49 = arith.mulf %44, %48 : vector<8x8xf32>
    %50 = arith.truncf %49 : vector<8x8xf32> to vector<8x8xbf16>
    %51 = vector.extract_strided_slice %12 {offsets = [0, 8], sizes = [8, 8], strides = [1, 1]} : vector<8x32xbf16> to vector<8x8xbf16>
    %cst_18 = arith.constant dense<0.000000e+00> : vector<8x8xf32>
    %52 = tpu.matmul %50, %51, %cst_18 {dimension_numbers = #tpu.dot_dimension_numbers<[1], [0], [0], [1], [0, 0, 1, 1], [], []>} : vector<8x8xbf16>, vector<8x8xbf16>, vector<8x8xf32> -> vector<8x8xf32>
    %53 = vector.extract_strided_slice %10 {offsets = [0, 16], sizes = [8, 8], strides = [1, 1]} : vector<8x32xbf16> to vector<8x8xbf16>
    %54 = vector.extract_strided_slice %11 {offsets = [0, 16], sizes = [8, 8], strides = [1, 1]} : vector<8x32xbf16> to vector<8x8xbf16>
    "tpu.trace_start"() <{level = 10 : i32, message = "qd,kd->qk"}> : () -> ()
    %cst_19 = arith.constant dense<0.000000e+00> : vector<8x8xf32>
    %55 = tpu.matmul %53, %54, %cst_19 {dimension_numbers = #tpu.dot_dimension_numbers<[1], [1], [0], [0], [0, 0, 1, 0], [], []>} : vector<8x8xbf16>, vector<8x8xbf16>, vector<8x8xf32> -> vector<8x8xf32>
    "tpu.trace_stop"() : () -> ()
    %cst_20 = arith.constant 0.353553385 : f32
    %56 = vector.broadcast %cst_20 : f32 to vector<8x8xf32>
    %57 = arith.mulf %55, %56 : vector<8x8xf32>
    %58 = vector.broadcast %3 : vector<1x8xf32> to vector<8x8xf32>
    %59 = arith.addf %57, %58 : vector<8x8xf32>
    %cst_21 = arith.constant dense<0xFF800000> : vector<8xf32>
    %60 = vector.multi_reduction <maximumf>, %59, %cst_21 [1] : vector<8x8xf32> to vector<8xf32>
    %61 = vector.shape_cast %60 : vector<8xf32> to vector<8x1xf32>
    %62 = vector.broadcast %61 : vector<8x1xf32> to vector<8x8xf32>
    %63 = arith.subf %59, %62 : vector<8x8xf32>
    %64 = math.exp %63 : vector<8x8xf32>
    %cst_22 = arith.constant dense<0.000000e+00> : vector<8xf32>
    %65 = vector.multi_reduction <add>, %64, %cst_22 [1] : vector<8x8xf32> to vector<8xf32>
    %66 = vector.shape_cast %65 : vector<8xf32> to vector<8x1xf32>
    %67 = tpu.reciprocal %66 {approx = true} : vector<8x1xf32> -> vector<8x1xf32>
    %68 = vector.broadcast %67 : vector<8x1xf32> to vector<8x8xf32>
    %69 = arith.mulf %64, %68 : vector<8x8xf32>
    %70 = arith.truncf %69 : vector<8x8xf32> to vector<8x8xbf16>
    %71 = vector.extract_strided_slice %12 {offsets = [0, 16], sizes = [8, 8], strides = [1, 1]} : vector<8x32xbf16> to vector<8x8xbf16>
    %cst_23 = arith.constant dense<0.000000e+00> : vector<8x8xf32>
    %72 = tpu.matmul %70, %71, %cst_23 {dimension_numbers = #tpu.dot_dimension_numbers<[1], [0], [0], [1], [0, 0, 1, 1], [], []>} : vector<8x8xbf16>, vector<8x8xbf16>, vector<8x8xf32> -> vector<8x8xf32>
    %73 = vector.extract_strided_slice %10 {offsets = [0, 24], sizes = [8, 8], strides = [1, 1]} : vector<8x32xbf16> to vector<8x8xbf16>
    %74 = vector.extract_strided_slice %11 {offsets = [0, 24], sizes = [8, 8], strides = [1, 1]} : vector<8x32xbf16> to vector<8x8xbf16>
    "tpu.trace_start"() <{level = 10 : i32, message = "qd,kd->qk"}> : () -> ()
    %cst_24 = arith.constant dense<0.000000e+00> : vector<8x8xf32>
    %75 = tpu.matmul %73, %74, %cst_24 {dimension_numbers = #tpu.dot_dimension_numbers<[1], [1], [0], [0], [0, 0, 1, 0], [], []>} : vector<8x8xbf16>, vector<8x8xbf16>, vector<8x8xf32> -> vector<8x8xf32>
    "tpu.trace_stop"() : () -> ()
    %cst_25 = arith.constant 0.353553385 : f32
    %76 = vector.broadcast %cst_25 : f32 to vector<8x8xf32>
    %77 = arith.mulf %75, %76 : vector<8x8xf32>
    %78 = vector.broadcast %3 : vector<1x8xf32> to vector<8x8xf32>
    %79 = arith.addf %77, %78 : vector<8x8xf32>
    %cst_26 = arith.constant dense<0xFF800000> : vector<8xf32>
    %80 = vector.multi_reduction <maximumf>, %79, %cst_26 [1] : vector<8x8xf32> to vector<8xf32>
    %81 = vector.shape_cast %80 : vector<8xf32> to vector<8x1xf32>
    %82 = vector.broadcast %81 : vector<8x1xf32> to vector<8x8xf32>
    %83 = arith.subf %79, %82 : vector<8x8xf32>
    %84 = math.exp %83 : vector<8x8xf32>
    %cst_27 = arith.constant dense<0.000000e+00> : vector<8xf32>
    %85 = vector.multi_reduction <add>, %84, %cst_27 [1] : vector<8x8xf32> to vector<8xf32>
    %86 = vector.shape_cast %85 : vector<8xf32> to vector<8x1xf32>
    %87 = tpu.reciprocal %86 {approx = true} : vector<8x1xf32> -> vector<8x1xf32>
    %88 = vector.broadcast %87 : vector<8x1xf32> to vector<8x8xf32>
    %89 = arith.mulf %84, %88 : vector<8x8xf32>
    %90 = arith.truncf %89 : vector<8x8xf32> to vector<8x8xbf16>
    %91 = vector.extract_strided_slice %12 {offsets = [0, 24], sizes = [8, 8], strides = [1, 1]} : vector<8x32xbf16> to vector<8x8xbf16>
    %cst_28 = arith.constant dense<0.000000e+00> : vector<8x8xf32>
    %92 = tpu.matmul %90, %91, %cst_28 {dimension_numbers = #tpu.dot_dimension_numbers<[1], [0], [0], [1], [0, 0, 1, 1], [], []>} : vector<8x8xbf16>, vector<8x8xbf16>, vector<8x8xf32> -> vector<8x8xf32>
    %93 = tpu.concatenate %32, %52, %72, %92 in 1 : vector<8x8xf32>, vector<8x8xf32>, vector<8x8xf32>, vector<8x8xf32> -> vector<8x32xf32>
    %94 = arith.truncf %93 : vector<8x32xf32> to vector<8x32xbf16>
    %c0_29 = arith.constant 0 : index
    %c0_30 = arith.constant 0 : index
    %95 = vector.load %arg4[%c0_29, %c0_30] : memref<32x32xbf16, #tpu.memory_space<vmem>>, vector<32x32xbf16>
    %cst_31 = arith.constant dense<0.000000e+00> : vector<8x32xf32>
    %96 = tpu.matmul %94, %95, %cst_31 {dimension_numbers = #tpu.dot_dimension_numbers<[1], [0], [0], [1], [0, 0, 1, 1], [], []>} : vector<8x32xbf16>, vector<32x32xbf16>, vector<8x32xf32> -> vector<8x32xf32>
    %c0_32 = arith.constant 0 : index
    %c0_33 = arith.constant 0 : index
    %97 = vector.load %arg5[%c0_32, %c0_33] : memref<1x32xf32, #tpu.memory_space<vmem>>, vector<1x32xf32>
    %98 = vector.broadcast %97 : vector<1x32xf32> to vector<8x32xf32>
    %99 = arith.addf %96, %98 : vector<8x32xf32>
    %c0_34 = arith.constant 0 : index
    %c0_35 = arith.constant 0 : index
    %100 = vector.load %arg7[%c0_34, %c0_35] : memref<1x32xf32, #tpu.memory_space<vmem>>, vector<1x32xf32>
    %c0_36 = arith.constant 0 : index
    %c0_37 = arith.constant 0 : index
    %101 = vector.load %arg8[%c0_36, %c0_37] : memref<1x32xf32, #tpu.memory_space<vmem>>, vector<1x32xf32>
    %102 = arith.extf %1 : vector<8x32xbf16> to vector<8x32xf32>
    %103 = arith.addf %102, %99 : vector<8x32xf32>
    %cst_38 = arith.constant dense<0.000000e+00> : vector<8xf32>
    %104 = vector.multi_reduction <add>, %103, %cst_38 [1] : vector<8x32xf32> to vector<8xf32>
    %105 = vector.shape_cast %104 : vector<8xf32> to vector<8x1xf32>
    %cst_39 = arith.constant 3.200000e+01 : f32
    %106 = vector.broadcast %cst_39 : f32 to vector<8x1xf32>
    %107 = arith.divf %105, %106 : vector<8x1xf32>
    %108 = vector.broadcast %107 : vector<8x1xf32> to vector<8x32xf32>
    %109 = arith.subf %103, %108 : vector<8x32xf32>
    %110 = arith.mulf %109, %109 : vector<8x32xf32>
    %cst_40 = arith.constant dense<0.000000e+00> : vector<8xf32>
    %111 = vector.multi_reduction <add>, %110, %cst_40 [1] : vector<8x32xf32> to vector<8xf32>
    %112 = vector.shape_cast %111 : vector<8xf32> to vector<8x1xf32>
    %cst_41 = arith.constant 3.200000e+01 : f32
    %113 = vector.broadcast %cst_41 : f32 to vector<8x1xf32>
    %114 = arith.divf %112, %113 : vector<8x1xf32>
    %cst_42 = arith.constant 9.99999974E-6 : f32
    %115 = vector.broadcast %cst_42 : f32 to vector<8x1xf32>
    %116 = arith.addf %114, %115 : vector<8x1xf32>
    %117 = math.rsqrt %116 : vector<8x1xf32>
    %118 = vector.broadcast %107 : vector<8x1xf32> to vector<8x32xf32>
    %119 = arith.subf %103, %118 : vector<8x32xf32>
    %120 = vector.broadcast %117 : vector<8x1xf32> to vector<8x32xf32>
    %121 = arith.mulf %119, %120 : vector<8x32xf32>
    %122 = vector.broadcast %100 : vector<1x32xf32> to vector<8x32xf32>
    %123 = arith.mulf %121, %122 : vector<8x32xf32>
    %124 = vector.broadcast %101 : vector<1x32xf32> to vector<8x32xf32>
    %125 = arith.addf %123, %124 : vector<8x32xf32>
    %126 = arith.truncf %125 : vector<8x32xf32> to vector<8x32xbf16>
    %c0_43 = arith.constant 0 : index
    %c0_44 = arith.constant 0 : index
    %c0_45 = arith.constant 0 : index
    %127 = vector.load %arg9[%c0_43, %c0_44, %c0_45] : memref<1x8x32xbf16, #tpu.memory_space<vmem>>, vector<1x8x32xbf16>
    %128 = vector.shape_cast %127 : vector<1x8x32xbf16> to vector<8x32xbf16>
    %129 = vector.shape_cast %126 : vector<8x32xbf16> to vector<1x8x32xbf16>
    tpu.vector_store %arg9[%c0_43, %c0_44, %c0_45], %129 {strides = array<i32>} : memref<1x8x32xbf16, #tpu.memory_space<vmem>>, vector<1x8x32xbf16>,
    return
  }
  func.func @transform_0(%arg0: i32) -> (i32, i32, i32) {
    %c0_i32 = arith.constant 0 : i32
    %c0_i32_0 = arith.constant 0 : i32
    %c0_i32_1 = arith.constant 0 : i32
    return %arg0, %c0_i32, %c0_i32_0 : i32, i32, i32
  }
  func.func @transform_1(%arg0: i32) -> (i32, i32) {
    %c0_i32 = arith.constant 0 : i32
    %c0_i32_0 = arith.constant 0 : i32
    %c0_i32_1 = arith.constant 0 : i32
    return %c0_i32, %c0_i32_0 : i32, i32
  }
  func.func @transform_2(%arg0: i32) -> (i32, i32) {
    %c0_i32 = arith.constant 0 : i32
    %c0_i32_0 = arith.constant 0 : i32
    %c0_i32_1 = arith.constant 0 : i32
    return %c0_i32, %c0_i32_0 : i32, i32
  }
  func.func @transform_3(%arg0: i32) -> (i32, i32) {
    %c0_i32 = arith.constant 0 : i32
    %c0_i32_0 = arith.constant 0 : i32
    %c0_i32_1 = arith.constant 0 : i32
    return %c0_i32, %c0_i32_0 : i32, i32
  }
  func.func @transform_4(%arg0: i32) -> (i32, i32) {
    %c0_i32 = arith.constant 0 : i32
    %c0_i32_0 = arith.constant 0 : i32
    %c0_i32_1 = arith.constant 0 : i32
    return %c0_i32, %c0_i32_0 : i32, i32
  }
  func.func @transform_5(%arg0: i32) -> (i32, i32, i32) {
    %c0_i32 = arith.constant 0 : i32
    %c0_i32_0 = arith.constant 0 : i32
    %c0_i32_1 = arith.constant 0 : i32
    return %arg0, %c0_i32, %c0_i32_0 : i32, i32, i32
  }
  func.func @transform_6(%arg0: i32) -> (i32, i32) {
    %c0_i32 = arith.constant 0 : i32
    %c0_i32_0 = arith.constant 0 : i32
    %c0_i32_1 = arith.constant 0 : i32
    return %c0_i32, %c0_i32_0 : i32, i32
  }
  func.func @transform_7(%arg0: i32) -> (i32, i32) {
    %c0_i32 = arith.constant 0 : i32
    %c0_i32_0 = arith.constant 0 : i32
    %c0_i32_1 = arith.constant 0 : i32
    return %c0_i32, %c0_i32_0 : i32, i32
  }
  func.func @transform_8(%arg0: i32) -> (i32, i32, i32) {
    %c0_i32 = arith.constant 0 : i32
    %c0_i32_0 = arith.constant 0 : i32
    %c0_i32_1 = arith.constant 0 : i32
    return %arg0, %c0_i32, %c0_i32_0 : i32, i32, i32
  }
}

module attributes {stable_mosaic.version = 11 : i64} {
  func.func @_linear_kernel(%arg0: i32, %arg1: memref<8x32xbf16, #tpu.memory_space<vmem>>, %arg2: memref<32x32xbf16, #tpu.memory_space<vmem>>, %arg3: memref<1x32xf32, #tpu.memory_space<vmem>>, %arg4: memref<8x32xbf16, #tpu.memory_space<vmem>>) attributes {dimension_semantics = [#tpu.dimension_semantics<parallel>], iteration_bounds = array<i64: 2>, scalar_prefetch = 0 : i64, scratch_operands = 0 : i64, tpu.core_type = #tpu.core_type<tc>, window_params = [{transform_indices = @transform_0, window_bounds = array<i64: 8, 32>}, {pipeline_mode = #tpu.pipeline_mode<synchronous>, transform_indices = @transform_1, window_bounds = array<i64: 32, 32>}, {pipeline_mode = #tpu.pipeline_mode<synchronous>, transform_indices = @transform_2, window_bounds = array<i64: 1, 32>}, {transform_indices = @transform_3, window_bounds = array<i64: 8, 32>}]} {
    %c0 = arith.constant 0 : index
    %c0_0 = arith.constant 0 : index
    %0 = vector.load %arg1[%c0, %c0_0] : memref<8x32xbf16, #tpu.memory_space<vmem>>, vector<8x32xbf16>
    %c0_1 = arith.constant 0 : index
    %c0_2 = arith.constant 0 : index
    %1 = vector.load %arg2[%c0_1, %c0_2] : memref<32x32xbf16, #tpu.memory_space<vmem>>, vector<32x32xbf16>
    %cst = arith.constant dense<0.000000e+00> : vector<8x32xf32>
    %2 = tpu.matmul %0, %1, %cst {dimension_numbers = #tpu.dot_dimension_numbers<[1], [0], [0], [1], [0, 0, 1, 1], [], []>} : vector<8x32xbf16>, vector<32x32xbf16>, vector<8x32xf32> -> vector<8x32xf32>
    %c0_3 = arith.constant 0 : index
    %c0_4 = arith.constant 0 : index
    %3 = vector.load %arg3[%c0_3, %c0_4] : memref<1x32xf32, #tpu.memory_space<vmem>>, vector<1x32xf32>
    %4 = vector.broadcast %3 : vector<1x32xf32> to vector<8x32xf32>
    %5 = arith.addf %2, %4 : vector<8x32xf32>
    %6 = arith.truncf %5 : vector<8x32xf32> to vector<8x32xbf16>
    %c0_5 = arith.constant 0 : index
    %c0_6 = arith.constant 0 : index
    %7 = vector.load %arg4[%c0_5, %c0_6] : memref<8x32xbf16, #tpu.memory_space<vmem>>, vector<8x32xbf16>
    tpu.vector_store %arg4[%c0_5, %c0_6], %6 {strides = array<i32>} : memref<8x32xbf16, #tpu.memory_space<vmem>>, vector<8x32xbf16>,
    return
  }
  func.func @transform_0(%arg0: i32) -> (i32, i32) {
    %c0_i32 = arith.constant 0 : i32
    %c0_i32_0 = arith.constant 0 : i32
    return %arg0, %c0_i32 : i32, i32
  }
  func.func @transform_1(%arg0: i32) -> (i32, i32) {
    %c0_i32 = arith.constant 0 : i32
    %c0_i32_0 = arith.constant 0 : i32
    %c0_i32_1 = arith.constant 0 : i32
    return %c0_i32, %c0_i32_0 : i32, i32
  }
  func.func @transform_2(%arg0: i32) -> (i32, i32) {
    %c0_i32 = arith.constant 0 : i32
    %c0_i32_0 = arith.constant 0 : i32
    %c0_i32_1 = arith.constant 0 : i32
    return %c0_i32, %c0_i32_0 : i32, i32
  }
  func.func @transform_3(%arg0: i32) -> (i32, i32) {
    %c0_i32 = arith.constant 0 : i32
    %c0_i32_0 = arith.constant 0 : i32
    return %arg0, %c0_i32 : i32, i32
  }
}

module attributes {stable_mosaic.version = 11 : i64} {
  func.func @_ffn_block_kernel(%arg0: i32, %arg1: memref<8x32xbf16, #tpu.memory_space<vmem>>, %arg2: memref<32x64xbf16, #tpu.memory_space<vmem>>, %arg3: memref<1x64xf32, #tpu.memory_space<vmem>>, %arg4: memref<64x32xbf16, #tpu.memory_space<vmem>>, %arg5: memref<1x32xf32, #tpu.memory_space<vmem>>, %arg6: memref<1x32xf32, #tpu.memory_space<vmem>>, %arg7: memref<1x32xf32, #tpu.memory_space<vmem>>, %arg8: memref<8x32xbf16, #tpu.memory_space<vmem>>) attributes {dimension_semantics = [#tpu.dimension_semantics<parallel>], iteration_bounds = array<i64: 2>, scalar_prefetch = 0 : i64, scratch_operands = 0 : i64, tpu.core_type = #tpu.core_type<tc>, window_params = [{transform_indices = @transform_0, window_bounds = array<i64: 8, 32>}, {pipeline_mode = #tpu.pipeline_mode<synchronous>, transform_indices = @transform_1, window_bounds = array<i64: 32, 64>}, {pipeline_mode = #tpu.pipeline_mode<synchronous>, transform_indices = @transform_2, window_bounds = array<i64: 1, 64>}, {pipeline_mode = #tpu.pipeline_mode<synchronous>, transform_indices = @transform_3, window_bounds = array<i64: 64, 32>}, {pipeline_mode = #tpu.pipeline_mode<synchronous>, transform_indices = @transform_4, window_bounds = array<i64: 1, 32>}, {pipeline_mode = #tpu.pipeline_mode<synchronous>, transform_indices = @transform_5, window_bounds = array<i64: 1, 32>}, {pipeline_mode = #tpu.pipeline_mode<synchronous>, transform_indices = @transform_6, window_bounds = array<i64: 1, 32>}, {transform_indices = @transform_7, window_bounds = array<i64: 8, 32>}]} {
    %c0 = arith.constant 0 : index
    %c0_0 = arith.constant 0 : index
    %0 = vector.load %arg1[%c0, %c0_0] : memref<8x32xbf16, #tpu.memory_space<vmem>>, vector<8x32xbf16>
    %c0_1 = arith.constant 0 : index
    %c0_2 = arith.constant 0 : index
    %1 = vector.load %arg2[%c0_1, %c0_2] : memref<32x64xbf16, #tpu.memory_space<vmem>>, vector<32x64xbf16>
    %cst = arith.constant dense<0.000000e+00> : vector<8x64xf32>
    %2 = tpu.matmul %0, %1, %cst {dimension_numbers = #tpu.dot_dimension_numbers<[1], [0], [0], [1], [0, 0, 1, 1], [], []>} : vector<8x32xbf16>, vector<32x64xbf16>, vector<8x64xf32> -> vector<8x64xf32>
    %c0_3 = arith.constant 0 : index
    %c0_4 = arith.constant 0 : index
    %3 = vector.load %arg3[%c0_3, %c0_4] : memref<1x64xf32, #tpu.memory_space<vmem>>, vector<1x64xf32>
    %4 = vector.broadcast %3 : vector<1x64xf32> to vector<8x64xf32>
    %5 = arith.addf %2, %4 : vector<8x64xf32>
    %cst_5 = arith.constant 0.000000e+00 : f32
    %6 = vector.broadcast %cst_5 : f32 to vector<8x64xf32>
    %7 = arith.maximumf %5, %6 : vector<8x64xf32>
    %8 = arith.truncf %7 : vector<8x64xf32> to vector<8x64xbf16>
    %c0_6 = arith.constant 0 : index
    %c0_7 = arith.constant 0 : index
    %9 = vector.load %arg4[%c0_6, %c0_7] : memref<64x32xbf16, #tpu.memory_space<vmem>>, vector<64x32xbf16>
    %cst_8 = arith.constant dense<0.000000e+00> : vector<8x32xf32>
    %10 = tpu.matmul %8, %9, %cst_8 {dimension_numbers = #tpu.dot_dimension_numbers<[1], [0], [0], [1], [0, 0, 1, 1], [], []>} : vector<8x64xbf16>, vector<64x32xbf16>, vector<8x32xf32> -> vector<8x32xf32>
    %c0_9 = arith.constant 0 : index
    %c0_10 = arith.constant 0 : index
    %11 = vector.load %arg5[%c0_9, %c0_10] : memref<1x32xf32, #tpu.memory_space<vmem>>, vector<1x32xf32>
    %12 = vector.broadcast %11 : vector<1x32xf32> to vector<8x32xf32>
    %13 = arith.addf %10, %12 : vector<8x32xf32>
    %c0_11 = arith.constant 0 : index
    %c0_12 = arith.constant 0 : index
    %14 = vector.load %arg6[%c0_11, %c0_12] : memref<1x32xf32, #tpu.memory_space<vmem>>, vector<1x32xf32>
    %c0_13 = arith.constant 0 : index
    %c0_14 = arith.constant 0 : index
    %15 = vector.load %arg7[%c0_13, %c0_14] : memref<1x32xf32, #tpu.memory_space<vmem>>, vector<1x32xf32>
    %16 = arith.extf %0 : vector<8x32xbf16> to vector<8x32xf32>
    %17 = arith.addf %16, %13 : vector<8x32xf32>
    %cst_15 = arith.constant dense<0.000000e+00> : vector<8xf32>
    %18 = vector.multi_reduction <add>, %17, %cst_15 [1] : vector<8x32xf32> to vector<8xf32>
    %19 = vector.shape_cast %18 : vector<8xf32> to vector<8x1xf32>
    %cst_16 = arith.constant 3.200000e+01 : f32
    %20 = vector.broadcast %cst_16 : f32 to vector<8x1xf32>
    %21 = arith.divf %19, %20 : vector<8x1xf32>
    %22 = vector.broadcast %21 : vector<8x1xf32> to vector<8x32xf32>
    %23 = arith.subf %17, %22 : vector<8x32xf32>
    %24 = arith.mulf %23, %23 : vector<8x32xf32>
    %cst_17 = arith.constant dense<0.000000e+00> : vector<8xf32>
    %25 = vector.multi_reduction <add>, %24, %cst_17 [1] : vector<8x32xf32> to vector<8xf32>
    %26 = vector.shape_cast %25 : vector<8xf32> to vector<8x1xf32>
    %cst_18 = arith.constant 3.200000e+01 : f32
    %27 = vector.broadcast %cst_18 : f32 to vector<8x1xf32>
    %28 = arith.divf %26, %27 : vector<8x1xf32>
    %cst_19 = arith.constant 9.99999974E-6 : f32
    %29 = vector.broadcast %cst_19 : f32 to vector<8x1xf32>
    %30 = arith.addf %28, %29 : vector<8x1xf32>
    %31 = math.rsqrt %30 : vector<8x1xf32>
    %32 = vector.broadcast %21 : vector<8x1xf32> to vector<8x32xf32>
    %33 = arith.subf %17, %32 : vector<8x32xf32>
    %34 = vector.broadcast %31 : vector<8x1xf32> to vector<8x32xf32>
    %35 = arith.mulf %33, %34 : vector<8x32xf32>
    %36 = vector.broadcast %14 : vector<1x32xf32> to vector<8x32xf32>
    %37 = arith.mulf %35, %36 : vector<8x32xf32>
    %38 = vector.broadcast %15 : vector<1x32xf32> to vector<8x32xf32>
    %39 = arith.addf %37, %38 : vector<8x32xf32>
    %40 = arith.truncf %39 : vector<8x32xf32> to vector<8x32xbf16>
    %c0_20 = arith.constant 0 : index
    %c0_21 = arith.constant 0 : index
    %41 = vector.load %arg8[%c0_20, %c0_21] : memref<8x32xbf16, #tpu.memory_space<vmem>>, vector<8x32xbf16>
    tpu.vector_store %arg8[%c0_20, %c0_21], %40 {strides = array<i32>} : memref<8x32xbf16, #tpu.memory_space<vmem>>, vector<8x32xbf16>,
    return
  }
  func.func @transform_0(%arg0: i32) -> (i32, i32) {
    %c0_i32 = arith.constant 0 : i32
    %c0_i32_0 = arith.constant 0 : i32
    return %arg0, %c0_i32 : i32, i32
  }
  func.func @transform_1(%arg0: i32) -> (i32, i32) {
    %c0_i32 = arith.constant 0 : i32
    %c0_i32_0 = arith.constant 0 : i32
    %c0_i32_1 = arith.constant 0 : i32
    return %c0_i32, %c0_i32_0 : i32, i32
  }
  func.func @transform_2(%arg0: i32) -> (i32, i32) {
    %c0_i32 = arith.constant 0 : i32
    %c0_i32_0 = arith.constant 0 : i32
    %c0_i32_1 = arith.constant 0 : i32
    return %c0_i32, %c0_i32_0 : i32, i32
  }
  func.func @transform_3(%arg0: i32) -> (i32, i32) {
    %c0_i32 = arith.constant 0 : i32
    %c0_i32_0 = arith.constant 0 : i32
    %c0_i32_1 = arith.constant 0 : i32
    return %c0_i32, %c0_i32_0 : i32, i32
  }
  func.func @transform_4(%arg0: i32) -> (i32, i32) {
    %c0_i32 = arith.constant 0 : i32
    %c0_i32_0 = arith.constant 0 : i32
    %c0_i32_1 = arith.constant 0 : i32
    return %c0_i32, %c0_i32_0 : i32, i32
  }
  func.func @transform_5(%arg0: i32) -> (i32, i32) {
    %c0_i32 = arith.constant 0 : i32
    %c0_i32_0 = arith.constant 0 : i32
    %c0_i32_1 = arith.constant 0 : i32
    return %c0_i32, %c0_i32_0 : i32, i32
  }
  func.func @transform_6(%arg0: i32) -> (i32, i32) {
    %c0_i32 = arith.constant 0 : i32
    %c0_i32_0 = arith.constant 0 : i32
    %c0_i32_1 = arith.constant 0 : i32
    return %c0_i32, %c0_i32_0 : i32, i32
  }
  func.func @transform_7(%arg0: i32) -> (i32, i32) {
    %c0_i32 = arith.constant 0 : i32
    %c0_i32_0 = arith.constant 0 : i32
    return %arg0, %c0_i32 : i32, i32
  }
}

module attributes {stable_mosaic.version = 11 : i64} {
  func.func @_cross_attn_kernel(%arg0: i32, %arg1: memref<1x8x32xbf16, #tpu.memory_space<vmem>>, %arg2: memref<1x8x32xbf16, #tpu.memory_space<vmem>>, %arg3: memref<32x32xbf16, #tpu.memory_space<vmem>>, %arg4: memref<1x32xf32, #tpu.memory_space<vmem>>, %arg5: memref<32x64xbf16, #tpu.memory_space<vmem>>, %arg6: memref<1x64xf32, #tpu.memory_space<vmem>>, %arg7: memref<32x32xbf16, #tpu.memory_space<vmem>>, %arg8: memref<1x32xf32, #tpu.memory_space<vmem>>, %arg9: memref<1x1x8xf32, #tpu.memory_space<vmem>>, %arg10: memref<1x32xf32, #tpu.memory_space<vmem>>, %arg11: memref<1x32xf32, #tpu.memory_space<vmem>>, %arg12: memref<1x8x32xbf16, #tpu.memory_space<vmem>>) attributes {dimension_semantics = [#tpu.dimension_semantics<parallel>], iteration_bounds = array<i64: 2>, scalar_prefetch = 0 : i64, scratch_operands = 0 : i64, tpu.core_type = #tpu.core_type<tc>, window_params = [{transform_indices = @transform_0, window_bounds = array<i64: 1, 8, 32>}, {transform_indices = @transform_1, window_bounds = array<i64: 1, 8, 32>}, {pipeline_mode = #tpu.pipeline_mode<synchronous>, transform_indices = @transform_2, window_bounds = array<i64: 32, 32>}, {pipeline_mode = #tpu.pipeline_mode<synchronous>, transform_indices = @transform_3, window_bounds = array<i64: 1, 32>}, {pipeline_mode = #tpu.pipeline_mode<synchronous>, transform_indices = @transform_4, window_bounds = array<i64: 32, 64>}, {pipeline_mode = #tpu.pipeline_mode<synchronous>, transform_indices = @transform_5, window_bounds = array<i64: 1, 64>}, {pipeline_mode = #tpu.pipeline_mode<synchronous>, transform_indices = @transform_6, window_bounds = array<i64: 32, 32>}, {pipeline_mode = #tpu.pipeline_mode<synchronous>, transform_indices = @transform_7, window_bounds = array<i64: 1, 32>}, {transform_indices = @transform_8, window_bounds = array<i64: 1, 1, 8>}, {pipeline_mode = #tpu.pipeline_mode<synchronous>, transform_indices = @transform_9, window_bounds = array<i64: 1, 32>}, {pipeline_mode = #tpu.pipeline_mode<synchronous>, transform_indices = @transform_10, window_bounds = array<i64: 1, 32>}, {transform_indices = @transform_11, window_bounds = array<i64: 1, 8, 32>}]} {
    %c0 = arith.constant 0 : index
    %c0_0 = arith.constant 0 : index
    %c0_1 = arith.constant 0 : index
    %0 = vector.load %arg1[%c0, %c0_0, %c0_1] : memref<1x8x32xbf16, #tpu.memory_space<vmem>>, vector<1x8x32xbf16>
    %1 = vector.shape_cast %0 : vector<1x8x32xbf16> to vector<8x32xbf16>
    %c0_2 = arith.constant 0 : index
    %c0_3 = arith.constant 0 : index
    %c0_4 = arith.constant 0 : index
    %2 = vector.load %arg2[%c0_2, %c0_3, %c0_4] : memref<1x8x32xbf16, #tpu.memory_space<vmem>>, vector<1x8x32xbf16>
    %3 = vector.shape_cast %2 : vector<1x8x32xbf16> to vector<8x32xbf16>
    %c0_5 = arith.constant 0 : index
    %c0_6 = arith.constant 0 : index
    %c0_7 = arith.constant 0 : index
    %4 = vector.load %arg9[%c0_5, %c0_6, %c0_7] : memref<1x1x8xf32, #tpu.memory_space<vmem>>, vector<1x1x8xf32>
    %5 = vector.shape_cast %4 : vector<1x1x8xf32> to vector<1x8xf32>
    %c0_8 = arith.constant 0 : index
    %c0_9 = arith.constant 0 : index
    %6 = vector.load %arg3[%c0_8, %c0_9] : memref<32x32xbf16, #tpu.memory_space<vmem>>, vector<32x32xbf16>
    %cst = arith.constant dense<0.000000e+00> : vector<8x32xf32>
    %7 = tpu.matmul %1, %6, %cst {dimension_numbers = #tpu.dot_dimension_numbers<[1], [0], [0], [1], [0, 0, 1, 1], [], []>} : vector<8x32xbf16>, vector<32x32xbf16>, vector<8x32xf32> -> vector<8x32xf32>
    %c0_10 = arith.constant 0 : index
    %c0_11 = arith.constant 0 : index
    %8 = vector.load %arg4[%c0_10, %c0_11] : memref<1x32xf32, #tpu.memory_space<vmem>>, vector<1x32xf32>
    %9 = vector.broadcast %8 : vector<1x32xf32> to vector<8x32xf32>
    %10 = arith.addf %7, %9 : vector<8x32xf32>
    %11 = arith.truncf %10 : vector<8x32xf32> to vector<8x32xbf16>
    %c0_12 = arith.constant 0 : index
    %c0_13 = arith.constant 0 : index
    %12 = vector.load %arg5[%c0_12, %c0_13] : memref<32x64xbf16, #tpu.memory_space<vmem>>, vector<32x64xbf16>
    %cst_14 = arith.constant dense<0.000000e+00> : vector<8x64xf32>
    %13 = tpu.matmul %3, %12, %cst_14 {dimension_numbers = #tpu.dot_dimension_numbers<[1], [0], [0], [1], [0, 0, 1, 1], [], []>} : vector<8x32xbf16>, vector<32x64xbf16>, vector<8x64xf32> -> vector<8x64xf32>
    %c0_15 = arith.constant 0 : index
    %c0_16 = arith.constant 0 : index
    %14 = vector.load %arg6[%c0_15, %c0_16] : memref<1x64xf32, #tpu.memory_space<vmem>>, vector<1x64xf32>
    %15 = vector.broadcast %14 : vector<1x64xf32> to vector<8x64xf32>
    %16 = arith.addf %13, %15 : vector<8x64xf32>
    %17 = arith.truncf %16 : vector<8x64xf32> to vector<8x64xbf16>
    %18 = vector.extract_strided_slice %17 {offsets = [0, 0], sizes = [8, 32], strides = [1, 1]} : vector<8x64xbf16> to vector<8x32xbf16>
    %19 = vector.extract_strided_slice %17 {offsets = [0, 32], sizes = [8, 32], strides = [1, 1]} : vector<8x64xbf16> to vector<8x32xbf16>
    %20 = vector.extract_strided_slice %11 {offsets = [0, 0], sizes = [8, 8], strides = [1, 1]} : vector<8x32xbf16> to vector<8x8xbf16>
    %21 = vector.extract_strided_slice %18 {offsets = [0, 0], sizes = [8, 8], strides = [1, 1]} : vector<8x32xbf16> to vector<8x8xbf16>
    "tpu.trace_start"() <{level = 10 : i32, message = "qd,kd->qk"}> : () -> ()
    %cst_17 = arith.constant dense<0.000000e+00> : vector<8x8xf32>
    %22 = tpu.matmul %20, %21, %cst_17 {dimension_numbers = #tpu.dot_dimension_numbers<[1], [1], [0], [0], [0, 0, 1, 0], [], []>} : vector<8x8xbf16>, vector<8x8xbf16>, vector<8x8xf32> -> vector<8x8xf32>
    "tpu.trace_stop"() : () -> ()
    %cst_18 = arith.constant 0.353553385 : f32
    %23 = vector.broadcast %cst_18 : f32 to vector<8x8xf32>
    %24 = arith.mulf %22, %23 : vector<8x8xf32>
    %25 = vector.broadcast %5 : vector<1x8xf32> to vector<8x8xf32>
    %26 = arith.addf %24, %25 : vector<8x8xf32>
    %cst_19 = arith.constant dense<0xFF800000> : vector<8xf32>
    %27 = vector.multi_reduction <maximumf>, %26, %cst_19 [1] : vector<8x8xf32> to vector<8xf32>
    %28 = vector.shape_cast %27 : vector<8xf32> to vector<8x1xf32>
    %29 = vector.broadcast %28 : vector<8x1xf32> to vector<8x8xf32>
    %30 = arith.subf %26, %29 : vector<8x8xf32>
    %31 = math.exp %30 : vector<8x8xf32>
    %cst_20 = arith.constant dense<0.000000e+00> : vector<8xf32>
    %32 = vector.multi_reduction <add>, %31, %cst_20 [1] : vector<8x8xf32> to vector<8xf32>
    %33 = vector.shape_cast %32 : vector<8xf32> to vector<8x1xf32>
    %34 = tpu.reciprocal %33 {approx = true} : vector<8x1xf32> -> vector<8x1xf32>
    %35 = vector.broadcast %34 : vector<8x1xf32> to vector<8x8xf32>
    %36 = arith.mulf %31, %35 : vector<8x8xf32>
    %37 = arith.truncf %36 : vector<8x8xf32> to vector<8x8xbf16>
    %38 = vector.extract_strided_slice %19 {offsets = [0, 0], sizes = [8, 8], strides = [1, 1]} : vector<8x32xbf16> to vector<8x8xbf16>
    %cst_21 = arith.constant dense<0.000000e+00> : vector<8x8xf32>
    %39 = tpu.matmul %37, %38, %cst_21 {dimension_numbers = #tpu.dot_dimension_numbers<[1], [0], [0], [1], [0, 0, 1, 1], [], []>} : vector<8x8xbf16>, vector<8x8xbf16>, vector<8x8xf32> -> vector<8x8xf32>
    %40 = vector.extract_strided_slice %11 {offsets = [0, 8], sizes = [8, 8], strides = [1, 1]} : vector<8x32xbf16> to vector<8x8xbf16>
    %41 = vector.extract_strided_slice %18 {offsets = [0, 8], sizes = [8, 8], strides = [1, 1]} : vector<8x32xbf16> to vector<8x8xbf16>
    "tpu.trace_start"() <{level = 10 : i32, message = "qd,kd->qk"}> : () -> ()
    %cst_22 = arith.constant dense<0.000000e+00> : vector<8x8xf32>
    %42 = tpu.matmul %40, %41, %cst_22 {dimension_numbers = #tpu.dot_dimension_numbers<[1], [1], [0], [0], [0, 0, 1, 0], [], []>} : vector<8x8xbf16>, vector<8x8xbf16>, vector<8x8xf32> -> vector<8x8xf32>
    "tpu.trace_stop"() : () -> ()
    %cst_23 = arith.constant 0.353553385 : f32
    %43 = vector.broadcast %cst_23 : f32 to vector<8x8xf32>
    %44 = arith.mulf %42, %43 : vector<8x8xf32>
    %45 = vector.broadcast %5 : vector<1x8xf32> to vector<8x8xf32>
    %46 = arith.addf %44, %45 : vector<8x8xf32>
    %cst_24 = arith.constant dense<0xFF800000> : vector<8xf32>
    %47 = vector.multi_reduction <maximumf>, %46, %cst_24 [1] : vector<8x8xf32> to vector<8xf32>
    %48 = vector.shape_cast %47 : vector<8xf32> to vector<8x1xf32>
    %49 = vector.broadcast %48 : vector<8x1xf32> to vector<8x8xf32>
    %50 = arith.subf %46, %49 : vector<8x8xf32>
    %51 = math.exp %50 : vector<8x8xf32>
    %cst_25 = arith.constant dense<0.000000e+00> : vector<8xf32>
    %52 = vector.multi_reduction <add>, %51, %cst_25 [1] : vector<8x8xf32> to vector<8xf32>
    %53 = vector.shape_cast %52 : vector<8xf32> to vector<8x1xf32>
    %54 = tpu.reciprocal %53 {approx = true} : vector<8x1xf32> -> vector<8x1xf32>
    %55 = vector.broadcast %54 : vector<8x1xf32> to vector<8x8xf32>
    %56 = arith.mulf %51, %55 : vector<8x8xf32>
    %57 = arith.truncf %56 : vector<8x8xf32> to vector<8x8xbf16>
    %58 = vector.extract_strided_slice %19 {offsets = [0, 8], sizes = [8, 8], strides = [1, 1]} : vector<8x32xbf16> to vector<8x8xbf16>
    %cst_26 = arith.constant dense<0.000000e+00> : vector<8x8xf32>
    %59 = tpu.matmul %57, %58, %cst_26 {dimension_numbers = #tpu.dot_dimension_numbers<[1], [0], [0], [1], [0, 0, 1, 1], [], []>} : vector<8x8xbf16>, vector<8x8xbf16>, vector<8x8xf32> -> vector<8x8xf32>
    %60 = vector.extract_strided_slice %11 {offsets = [0, 16], sizes = [8, 8], strides = [1, 1]} : vector<8x32xbf16> to vector<8x8xbf16>
    %61 = vector.extract_strided_slice %18 {offsets = [0, 16], sizes = [8, 8], strides = [1, 1]} : vector<8x32xbf16> to vector<8x8xbf16>
    "tpu.trace_start"() <{level = 10 : i32, message = "qd,kd->qk"}> : () -> ()
    %cst_27 = arith.constant dense<0.000000e+00> : vector<8x8xf32>
    %62 = tpu.matmul %60, %61, %cst_27 {dimension_numbers = #tpu.dot_dimension_numbers<[1], [1], [0], [0], [0, 0, 1, 0], [], []>} : vector<8x8xbf16>, vector<8x8xbf16>, vector<8x8xf32> -> vector<8x8xf32>
    "tpu.trace_stop"() : () -> ()
    %cst_28 = arith.constant 0.353553385 : f32
    %63 = vector.broadcast %cst_28 : f32 to vector<8x8xf32>
    %64 = arith.mulf %62, %63 : vector<8x8xf32>
    %65 = vector.broadcast %5 : vector<1x8xf32> to vector<8x8xf32>
    %66 = arith.addf %64, %65 : vector<8x8xf32>
    %cst_29 = arith.constant dense<0xFF800000> : vector<8xf32>
    %67 = vector.multi_reduction <maximumf>, %66, %cst_29 [1] : vector<8x8xf32> to vector<8xf32>
    %68 = vector.shape_cast %67 : vector<8xf32> to vector<8x1xf32>
    %69 = vector.broadcast %68 : vector<8x1xf32> to vector<8x8xf32>
    %70 = arith.subf %66, %69 : vector<8x8xf32>
    %71 = math.exp %70 : vector<8x8xf32>
    %cst_30 = arith.constant dense<0.000000e+00> : vector<8xf32>
    %72 = vector.multi_reduction <add>, %71, %cst_30 [1] : vector<8x8xf32> to vector<8xf32>
    %73 = vector.shape_cast %72 : vector<8xf32> to vector<8x1xf32>
    %74 = tpu.reciprocal %73 {approx = true} : vector<8x1xf32> -> vector<8x1xf32>
    %75 = vector.broadcast %74 : vector<8x1xf32> to vector<8x8xf32>
    %76 = arith.mulf %71, %75 : vector<8x8xf32>
    %77 = arith.truncf %76 : vector<8x8xf32> to vector<8x8xbf16>
    %78 = vector.extract_strided_slice %19 {offsets = [0, 16], sizes = [8, 8], strides = [1, 1]} : vector<8x32xbf16> to vector<8x8xbf16>
    %cst_31 = arith.constant dense<0.000000e+00> : vector<8x8xf32>
    %79 = tpu.matmul %77, %78, %cst_31 {dimension_numbers = #tpu.dot_dimension_numbers<[1], [0], [0], [1], [0, 0, 1, 1], [], []>} : vector<8x8xbf16>, vector<8x8xbf16>, vector<8x8xf32> -> vector<8x8xf32>
    %80 = vector.extract_strided_slice %11 {offsets = [0, 24], sizes = [8, 8], strides = [1, 1]} : vector<8x32xbf16> to vector<8x8xbf16>
    %81 = vector.extract_strided_slice %18 {offsets = [0, 24], sizes = [8, 8], strides = [1, 1]} : vector<8x32xbf16> to vector<8x8xbf16>
    "tpu.trace_start"() <{level = 10 : i32, message = "qd,kd->qk"}> : () -> ()
    %cst_32 = arith.constant dense<0.000000e+00> : vector<8x8xf32>
    %82 = tpu.matmul %80, %81, %cst_32 {dimension_numbers = #tpu.dot_dimension_numbers<[1], [1], [0], [0], [0, 0, 1, 0], [], []>} : vector<8x8xbf16>, vector<8x8xbf16>, vector<8x8xf32> -> vector<8x8xf32>
    "tpu.trace_stop"() : () -> ()
    %cst_33 = arith.constant 0.353553385 : f32
    %83 = vector.broadcast %cst_33 : f32 to vector<8x8xf32>
    %84 = arith.mulf %82, %83 : vector<8x8xf32>
    %85 = vector.broadcast %5 : vector<1x8xf32> to vector<8x8xf32>
    %86 = arith.addf %84, %85 : vector<8x8xf32>
    %cst_34 = arith.constant dense<0xFF800000> : vector<8xf32>
    %87 = vector.multi_reduction <maximumf>, %86, %cst_34 [1] : vector<8x8xf32> to vector<8xf32>
    %88 = vector.shape_cast %87 : vector<8xf32> to vector<8x1xf32>
    %89 = vector.broadcast %88 : vector<8x1xf32> to vector<8x8xf32>
    %90 = arith.subf %86, %89 : vector<8x8xf32>
    %91 = math.exp %90 : vector<8x8xf32>
    %cst_35 = arith.constant dense<0.000000e+00> : vector<8xf32>
    %92 = vector.multi_reduction <add>, %91, %cst_35 [1] : vector<8x8xf32> to vector<8xf32>
    %93 = vector.shape_cast %92 : vector<8xf32> to vector<8x1xf32>
    %94 = tpu.reciprocal %93 {approx = true} : vector<8x1xf32> -> vector<8x1xf32>
    %95 = vector.broadcast %94 : vector<8x1xf32> to vector<8x8xf32>
    %96 = arith.mulf %91, %95 : vector<8x8xf32>
    %97 = arith.truncf %96 : vector<8x8xf32> to vector<8x8xbf16>
    %98 = vector.extract_strided_slice %19 {offsets = [0, 24], sizes = [8, 8], strides = [1, 1]} : vector<8x32xbf16> to vector<8x8xbf16>
    %cst_36 = arith.constant dense<0.000000e+00> : vector<8x8xf32>
    %99 = tpu.matmul %97, %98, %cst_36 {dimension_numbers = #tpu.dot_dimension_numbers<[1], [0], [0], [1], [0, 0, 1, 1], [], []>} : vector<8x8xbf16>, vector<8x8xbf16>, vector<8x8xf32> -> vector<8x8xf32>
    %100 = tpu.concatenate %39, %59, %79, %99 in 1 : vector<8x8xf32>, vector<8x8xf32>, vector<8x8xf32>, vector<8x8xf32> -> vector<8x32xf32>
    %101 = arith.truncf %100 : vector<8x32xf32> to vector<8x32xbf16>
    %c0_37 = arith.constant 0 : index
    %c0_38 = arith.constant 0 : index
    %102 = vector.load %arg7[%c0_37, %c0_38] : memref<32x32xbf16, #tpu.memory_space<vmem>>, vector<32x32xbf16>
    %cst_39 = arith.constant dense<0.000000e+00> : vector<8x32xf32>
    %103 = tpu.matmul %101, %102, %cst_39 {dimension_numbers = #tpu.dot_dimension_numbers<[1], [0], [0], [1], [0, 0, 1, 1], [], []>} : vector<8x32xbf16>, vector<32x32xbf16>, vector<8x32xf32> -> vector<8x32xf32>
    %c0_40 = arith.constant 0 : index
    %c0_41 = arith.constant 0 : index
    %104 = vector.load %arg8[%c0_40, %c0_41] : memref<1x32xf32, #tpu.memory_space<vmem>>, vector<1x32xf32>
    %105 = vector.broadcast %104 : vector<1x32xf32> to vector<8x32xf32>
    %106 = arith.addf %103, %105 : vector<8x32xf32>
    %c0_42 = arith.constant 0 : index
    %c0_43 = arith.constant 0 : index
    %107 = vector.load %arg10[%c0_42, %c0_43] : memref<1x32xf32, #tpu.memory_space<vmem>>, vector<1x32xf32>
    %c0_44 = arith.constant 0 : index
    %c0_45 = arith.constant 0 : index
    %108 = vector.load %arg11[%c0_44, %c0_45] : memref<1x32xf32, #tpu.memory_space<vmem>>, vector<1x32xf32>
    %109 = arith.extf %1 : vector<8x32xbf16> to vector<8x32xf32>
    %110 = arith.addf %109, %106 : vector<8x32xf32>
    %cst_46 = arith.constant dense<0.000000e+00> : vector<8xf32>
    %111 = vector.multi_reduction <add>, %110, %cst_46 [1] : vector<8x32xf32> to vector<8xf32>
    %112 = vector.shape_cast %111 : vector<8xf32> to vector<8x1xf32>
    %cst_47 = arith.constant 3.200000e+01 : f32
    %113 = vector.broadcast %cst_47 : f32 to vector<8x1xf32>
    %114 = arith.divf %112, %113 : vector<8x1xf32>
    %115 = vector.broadcast %114 : vector<8x1xf32> to vector<8x32xf32>
    %116 = arith.subf %110, %115 : vector<8x32xf32>
    %117 = arith.mulf %116, %116 : vector<8x32xf32>
    %cst_48 = arith.constant dense<0.000000e+00> : vector<8xf32>
    %118 = vector.multi_reduction <add>, %117, %cst_48 [1] : vector<8x32xf32> to vector<8xf32>
    %119 = vector.shape_cast %118 : vector<8xf32> to vector<8x1xf32>
    %cst_49 = arith.constant 3.200000e+01 : f32
    %120 = vector.broadcast %cst_49 : f32 to vector<8x1xf32>
    %121 = arith.divf %119, %120 : vector<8x1xf32>
    %cst_50 = arith.constant 9.99999974E-6 : f32
    %122 = vector.broadcast %cst_50 : f32 to vector<8x1xf32>
    %123 = arith.addf %121, %122 : vector<8x1xf32>
    %124 = math.rsqrt %123 : vector<8x1xf32>
    %125 = vector.broadcast %114 : vector<8x1xf32> to vector<8x32xf32>
    %126 = arith.subf %110, %125 : vector<8x32xf32>
    %127 = vector.broadcast %124 : vector<8x1xf32> to vector<8x32xf32>
    %128 = arith.mulf %126, %127 : vector<8x32xf32>
    %129 = vector.broadcast %107 : vector<1x32xf32> to vector<8x32xf32>
    %130 = arith.mulf %128, %129 : vector<8x32xf32>
    %131 = vector.broadcast %108 : vector<1x32xf32> to vector<8x32xf32>
    %132 = arith.addf %130, %131 : vector<8x32xf32>
    %133 = arith.truncf %132 : vector<8x32xf32> to vector<8x32xbf16>
    %c0_51 = arith.constant 0 : index
    %c0_52 = arith.constant 0 : index
    %c0_53 = arith.constant 0 : index
    %134 = vector.load %arg12[%c0_51, %c0_52, %c0_53] : memref<1x8x32xbf16, #tpu.memory_space<vmem>>, vector<1x8x32xbf16>
    %135 = vector.shape_cast %134 : vector<1x8x32xbf16> to vector<8x32xbf16>
    %136 = vector.shape_cast %133 : vector<8x32xbf16> to vector<1x8x32xbf16>
    tpu.vector_store %arg12[%c0_51, %c0_52, %c0_53], %136 {strides = array<i32>} : memref<1x8x32xbf16, #tpu.memory_space<vmem>>, vector<1x8x32xbf16>,
    return
  }
  func.func @transform_0(%arg0: i32) -> (i32, i32, i32) {
    %c0_i32 = arith.constant 0 : i32
    %c0_i32_0 = arith.constant 0 : i32
    %c0_i32_1 = arith.constant 0 : i32
    return %arg0, %c0_i32, %c0_i32_0 : i32, i32, i32
  }
  func.func @transform_1(%arg0: i32) -> (i32, i32, i32) {
    %c0_i32 = arith.constant 0 : i32
    %c0_i32_0 = arith.constant 0 : i32
    %c0_i32_1 = arith.constant 0 : i32
    return %arg0, %c0_i32, %c0_i32_0 : i32, i32, i32
  }
  func.func @transform_2(%arg0: i32) -> (i32, i32) {
    %c0_i32 = arith.constant 0 : i32
    %c0_i32_0 = arith.constant 0 : i32
    %c0_i32_1 = arith.constant 0 : i32
    return %c0_i32, %c0_i32_0 : i32, i32
  }
  func.func @transform_3(%arg0: i32) -> (i32, i32) {
    %c0_i32 = arith.constant 0 : i32
    %c0_i32_0 = arith.constant 0 : i32
    %c0_i32_1 = arith.constant 0 : i32
    return %c0_i32, %c0_i32_0 : i32, i32
  }
  func.func @transform_4(%arg0: i32) -> (i32, i32) {
    %c0_i32 = arith.constant 0 : i32
    %c0_i32_0 = arith.constant 0 : i32
    %c0_i32_1 = arith.constant 0 : i32
    return %c0_i32, %c0_i32_0 : i32, i32
  }
  func.func @transform_5(%arg0: i32) -> (i32, i32) {
    %c0_i32 = arith.constant 0 : i32
    %c0_i32_0 = arith.constant 0 : i32
    %c0_i32_1 = arith.constant 0 : i32
    return %c0_i32, %c0_i32_0 : i32, i32
  }
  func.func @transform_6(%arg0: i32) -> (i32, i32) {
    %c0_i32 = arith.constant 0 : i32
    %c0_i32_0 = arith.constant 0 : i32
    %c0_i32_1 = arith.constant 0 : i32
    return %c0_i32, %c0_i32_0 : i32, i32
  }
  func.func @transform_7(%arg0: i32) -> (i32, i32) {
    %c0_i32 = arith.constant 0 : i32
    %c0_i32_0 = arith.constant 0 : i32
    %c0_i32_1 = arith.constant 0 : i32
    return %c0_i32, %c0_i32_0 : i32, i32
  }
  func.func @transform_8(%arg0: i32) -> (i32, i32, i32) {
    %c0_i32 = arith.constant 0 : i32
    %c0_i32_0 = arith.constant 0 : i32
    %c0_i32_1 = arith.constant 0 : i32
    return %arg0, %c0_i32, %c0_i32_0 : i32, i32, i32
  }
  func.func @transform_9(%arg0: i32) -> (i32, i32) {
    %c0_i32 = arith.constant 0 : i32
    %c0_i32_0 = arith.constant 0 : i32
    %c0_i32_1 = arith.constant 0 : i32
    return %c0_i32, %c0_i32_0 : i32, i32
  }
  func.func @transform_10(%arg0: i32) -> (i32, i32) {
    %c0_i32 = arith.constant 0 : i32
    %c0_i32_0 = arith.constant 0 : i32
    %c0_i32_1 = arith.constant 0 : i32
    return %c0_i32, %c0_i32_0 : i32, i32
  }
  func.func @transform_11(%arg0: i32) -> (i32, i32, i32) {
    %c0_i32 = arith.constant 0 : i32
    %c0_i32_0 = arith.constant 0 : i32
    %c0_i32_1 = arith.constant 0 : i32
    return %arg0, %c0_i32, %c0_i32_0 : i32, i32, i32
  }
}

module attributes {stable_mosaic.version = 11 : i64} {
  func.func @_proj_softmax_kernel(%arg0: i32, %arg1: memref<8x32xbf16, #tpu.memory_space<vmem>>, %arg2: memref<32x64xbf16, #tpu.memory_space<vmem>>, %arg3: memref<8x64xf32, #tpu.memory_space<vmem>>) attributes {dimension_semantics = [#tpu.dimension_semantics<parallel>], iteration_bounds = array<i64: 2>, scalar_prefetch = 0 : i64, scratch_operands = 0 : i64, tpu.core_type = #tpu.core_type<tc>, window_params = [{transform_indices = @transform_0, window_bounds = array<i64: 8, 32>}, {pipeline_mode = #tpu.pipeline_mode<synchronous>, transform_indices = @transform_1, window_bounds = array<i64: 32, 64>}, {transform_indices = @transform_2, window_bounds = array<i64: 8, 64>}]} {
    %c0 = arith.constant 0 : index
    %c0_0 = arith.constant 0 : index
    %0 = vector.load %arg1[%c0, %c0_0] : memref<8x32xbf16, #tpu.memory_space<vmem>>, vector<8x32xbf16>
    %c0_1 = arith.constant 0 : index
    %c0_2 = arith.constant 0 : index
    %1 = vector.load %arg2[%c0_1, %c0_2] : memref<32x64xbf16, #tpu.memory_space<vmem>>, vector<32x64xbf16>
    %cst = arith.constant dense<0.000000e+00> : vector<8x64xf32>
    %2 = tpu.matmul %0, %1, %cst {dimension_numbers = #tpu.dot_dimension_numbers<[1], [0], [0], [1], [0, 0, 1, 1], [], []>} : vector<8x32xbf16>, vector<32x64xbf16>, vector<8x64xf32> -> vector<8x64xf32>
    %cst_3 = arith.constant dense<0xFF800000> : vector<8xf32>
    %3 = vector.multi_reduction <maximumf>, %2, %cst_3 [1] : vector<8x64xf32> to vector<8xf32>
    %4 = vector.shape_cast %3 : vector<8xf32> to vector<8x1xf32>
    %5 = vector.broadcast %4 : vector<8x1xf32> to vector<8x64xf32>
    %6 = arith.subf %2, %5 : vector<8x64xf32>
    %7 = math.exp %6 : vector<8x64xf32>
    %cst_4 = arith.constant dense<0.000000e+00> : vector<8xf32>
    %8 = vector.multi_reduction <add>, %7, %cst_4 [1] : vector<8x64xf32> to vector<8xf32>
    %9 = vector.shape_cast %8 : vector<8xf32> to vector<8x1xf32>
    %10 = vector.broadcast %9 : vector<8x1xf32> to vector<8x64xf32>
    %11 = arith.divf %7, %10 : vector<8x64xf32>
    %c0_5 = arith.constant 0 : index
    %c0_6 = arith.constant 0 : index
    %12 = vector.load %arg3[%c0_5, %c0_6] : memref<8x64xf32, #tpu.memory_space<vmem>>, vector<8x64xf32>
    tpu.vector_store %arg3[%c0_5, %c0_6], %11 {strides = array<i32>} : memref<8x64xf32, #tpu.memory_space<vmem>>, vector<8x64xf32>,
    return
  }
  func.func @transform_0(%arg0: i32) -> (i32, i32) {
    %c0_i32 = arith.constant 0 : i32
    %c0_i32_0 = arith.constant 0 : i32
    return %arg0, %c0_i32 : i32, i32
  }
  func.func @transform_1(%arg0: i32) -> (i32, i32) {
    %c0_i32 = arith.constant 0 : i32
    %c0_i32_0 = arith.constant 0 : i32
    %c0_i32_1 = arith.constant 0 : i32
    return %c0_i32, %c0_i32_0 : i32, i32
  }
  func.func @transform_2(%arg0: i32) -> (i32, i32) {
    %c0_i32 = arith.constant 0 : i32
    %c0_i32_0 = arith.constant 0 : i32
    return %arg0, %c0_i32 : i32, i32
  }
}

module attributes {stable_mosaic.version = 11 : i64} {
  func.func @_self_attn_kernel(%arg0: i32, %arg1: memref<1x8x32xbf16, #tpu.memory_space<vmem>>, %arg2: memref<32x96xbf16, #tpu.memory_space<vmem>>, %arg3: memref<1x96xf32, #tpu.memory_space<vmem>>, %arg4: memref<32x32xbf16, #tpu.memory_space<vmem>>, %arg5: memref<1x32xf32, #tpu.memory_space<vmem>>, %arg6: memref<1x8x8xf32, #tpu.memory_space<vmem>>, %arg7: memref<1x32xf32, #tpu.memory_space<vmem>>, %arg8: memref<1x32xf32, #tpu.memory_space<vmem>>, %arg9: memref<1x8x32xbf16, #tpu.memory_space<vmem>>) attributes {dimension_semantics = [#tpu.dimension_semantics<parallel>], iteration_bounds = array<i64: 2>, scalar_prefetch = 0 : i64, scratch_operands = 0 : i64, tpu.core_type = #tpu.core_type<tc>, window_params = [{transform_indices = @transform_0, window_bounds = array<i64: 1, 8, 32>}, {pipeline_mode = #tpu.pipeline_mode<synchronous>, transform_indices = @transform_1, window_bounds = array<i64: 32, 96>}, {pipeline_mode = #tpu.pipeline_mode<synchronous>, transform_indices = @transform_2, window_bounds = array<i64: 1, 96>}, {pipeline_mode = #tpu.pipeline_mode<synchronous>, transform_indices = @transform_3, window_bounds = array<i64: 32, 32>}, {pipeline_mode = #tpu.pipeline_mode<synchronous>, transform_indices = @transform_4, window_bounds = array<i64: 1, 32>}, {transform_indices = @transform_5, window_bounds = array<i64: 1, 8, 8>}, {pipeline_mode = #tpu.pipeline_mode<synchronous>, transform_indices = @transform_6, window_bounds = array<i64: 1, 32>}, {pipeline_mode = #tpu.pipeline_mode<synchronous>, transform_indices = @transform_7, window_bounds = array<i64: 1, 32>}, {transform_indices = @transform_8, window_bounds = array<i64: 1, 8, 32>}]} {
    %c0 = arith.constant 0 : index
    %c0_0 = arith.constant 0 : index
    %c0_1 = arith.constant 0 : index
    %0 = vector.load %arg1[%c0, %c0_0, %c0_1] : memref<1x8x32xbf16, #tpu.memory_space<vmem>>, vector<1x8x32xbf16>
    %1 = vector.shape_cast %0 : vector<1x8x32xbf16> to vector<8x32xbf16>
    %c0_2 = arith.constant 0 : index
    %c0_3 = arith.constant 0 : index
    %c0_4 = arith.constant 0 : index
    %2 = vector.load %arg6[%c0_2, %c0_3, %c0_4] : memref<1x8x8xf32, #tpu.memory_space<vmem>>, vector<1x8x8xf32>
    %3 = vector.shape_cast %2 : vector<1x8x8xf32> to vector<8x8xf32>
    %c0_5 = arith.constant 0 : index
    %c0_6 = arith.constant 0 : index
    %4 = vector.load %arg2[%c0_5, %c0_6] : memref<32x96xbf16, #tpu.memory_space<vmem>>, vector<32x96xbf16>
    %cst = arith.constant dense<0.000000e+00> : vector<8x96xf32>
    %5 = tpu.matmul %1, %4, %cst {dimension_numbers = #tpu.dot_dimension_numbers<[1], [0], [0], [1], [0, 0, 1, 1], [], []>} : vector<8x32xbf16>, vector<32x96xbf16>, vector<8x96xf32> -> vector<8x96xf32>
    %c0_7 = arith.constant 0 : index
    %c0_8 = arith.constant 0 : index
    %6 = vector.load %arg3[%c0_7, %c0_8] : memref<1x96xf32, #tpu.memory_space<vmem>>, vector<1x96xf32>
    %7 = vector.broadcast %6 : vector<1x96xf32> to vector<8x96xf32>
    %8 = arith.addf %5, %7 : vector<8x96xf32>
    %9 = arith.truncf %8 : vector<8x96xf32> to vector<8x96xbf16>
    %10 = vector.extract_strided_slice %9 {offsets = [0, 0], sizes = [8, 32], strides = [1, 1]} : vector<8x96xbf16> to vector<8x32xbf16>
    %11 = vector.extract_strided_slice %9 {offsets = [0, 32], sizes = [8, 32], strides = [1, 1]} : vector<8x96xbf16> to vector<8x32xbf16>
    %12 = vector.extract_strided_slice %9 {offsets = [0, 64], sizes = [8, 32], strides = [1, 1]} : vector<8x96xbf16> to vector<8x32xbf16>
    %13 = vector.extract_strided_slice %10 {offsets = [0, 0], sizes = [8, 8], strides = [1, 1]} : vector<8x32xbf16> to vector<8x8xbf16>
    %14 = vector.extract_strided_slice %11 {offsets = [0, 0], sizes = [8, 8], strides = [1, 1]} : vector<8x32xbf16> to vector<8x8xbf16>
    "tpu.trace_start"() <{level = 10 : i32, message = "qd,kd->qk"}> : () -> ()
    %cst_9 = arith.constant dense<0.000000e+00> : vector<8x8xf32>
    %15 = tpu.matmul %13, %14, %cst_9 {dimension_numbers = #tpu.dot_dimension_numbers<[1], [1], [0], [0], [0, 0, 1, 0], [], []>} : vector<8x8xbf16>, vector<8x8xbf16>, vector<8x8xf32> -> vector<8x8xf32>
    "tpu.trace_stop"() : () -> ()
    %cst_10 = arith.constant 0.353553385 : f32
    %16 = vector.broadcast %cst_10 : f32 to vector<8x8xf32>
    %17 = arith.mulf %15, %16 : vector<8x8xf32>
    %18 = arith.addf %17, %3 : vector<8x8xf32>
    %cst_11 = arith.constant dense<0xFF800000> : vector<8xf32>
    %19 = vector.multi_reduction <maximumf>, %18, %cst_11 [1] : vector<8x8xf32> to vector<8xf32>
    %20 = vector.shape_cast %19 : vector<8xf32> to vector<8x1xf32>
    %21 = vector.broadcast %20 : vector<8x1xf32> to vector<8x8xf32>
    %22 = arith.subf %18, %21 : vector<8x8xf32>
    %23 = math.exp %22 : vector<8x8xf32>
    %cst_12 = arith.constant dense<0.000000e+00> : vector<8xf32>
    %24 = vector.multi_reduction <add>, %23, %cst_12 [1] : vector<8x8xf32> to vector<8xf32>
    %25 = vector.shape_cast %24 : vector<8xf32> to vector<8x1xf32>
    %26 = tpu.reciprocal %25 {approx = true} : vector<8x1xf32> -> vector<8x1xf32>
    %27 = vector.broadcast %26 : vector<8x1xf32> to vector<8x8xf32>
    %28 = arith.mulf %23, %27 : vector<8x8xf32>
    %29 = arith.truncf %28 : vector<8x8xf32> to vector<8x8xbf16>
    %30 = vector.extract_strided_slice %12 {offsets = [0, 0], sizes = [8, 8], strides = [1, 1]} : vector<8x32xbf16> to vector<8x8xbf16>
    %cst_13 = arith.constant dense<0.000000e+00> : vector<8x8xf32>
    %31 = tpu.matmul %29, %30, %cst_13 {dimension_numbers = #tpu.dot_dimension_numbers<[1], [0], [0], [1], [0, 0, 1, 1], [], []>} : vector<8x8xbf16>, vector<8x8xbf16>, vector<8x8xf32> -> vector<8x8xf32>
    %32 = vector.extract_strided_slice %10 {offsets = [0, 8], sizes = [8, 8], strides = [1, 1]} : vector<8x32xbf16> to vector<8x8xbf16>
    %33 = vector.extract_strided_slice %11 {offsets = [0, 8], sizes = [8, 8], strides = [1, 1]} : vector<8x32xbf16> to vector<8x8xbf16>
    "tpu.trace_start"() <{level = 10 : i32, message = "qd,kd->qk"}> : () -> ()
    %cst_14 = arith.constant dense<0.000000e+00> : vector<8x8xf32>
    %34 = tpu.matmul %32, %33, %cst_14 {dimension_numbers = #tpu.dot_dimension_numbers<[1], [1], [0], [0], [0, 0, 1, 0], [], []>} : vector<8x8xbf16>, vector<8x8xbf16>, vector<8x8xf32> -> vector<8x8xf32>
    "tpu.trace_stop"() : () -> ()
    %cst_15 = arith.constant 0.353553385 : f32
    %35 = vector.broadcast %cst_15 : f32 to vector<8x8xf32>
    %36 = arith.mulf %34, %35 : vector<8x8xf32>
    %37 = arith.addf %36, %3 : vector<8x8xf32>
    %cst_16 = arith.constant dense<0xFF800000> : vector<8xf32>
    %38 = vector.multi_reduction <maximumf>, %37, %cst_16 [1] : vector<8x8xf32> to vector<8xf32>
    %39 = vector.shape_cast %38 : vector<8xf32> to vector<8x1xf32>
    %40 = vector.broadcast %39 : vector<8x1xf32> to vector<8x8xf32>
    %41 = arith.subf %37, %40 : vector<8x8xf32>
    %42 = math.exp %41 : vector<8x8xf32>
    %cst_17 = arith.constant dense<0.000000e+00> : vector<8xf32>
    %43 = vector.multi_reduction <add>, %42, %cst_17 [1] : vector<8x8xf32> to vector<8xf32>
    %44 = vector.shape_cast %43 : vector<8xf32> to vector<8x1xf32>
    %45 = tpu.reciprocal %44 {approx = true} : vector<8x1xf32> -> vector<8x1xf32>
    %46 = vector.broadcast %45 : vector<8x1xf32> to vector<8x8xf32>
    %47 = arith.mulf %42, %46 : vector<8x8xf32>
    %48 = arith.truncf %47 : vector<8x8xf32> to vector<8x8xbf16>
    %49 = vector.extract_strided_slice %12 {offsets = [0, 8], sizes = [8, 8], strides = [1, 1]} : vector<8x32xbf16> to vector<8x8xbf16>
    %cst_18 = arith.constant dense<0.000000e+00> : vector<8x8xf32>
    %50 = tpu.matmul %48, %49, %cst_18 {dimension_numbers = #tpu.dot_dimension_numbers<[1], [0], [0], [1], [0, 0, 1, 1], [], []>} : vector<8x8xbf16>, vector<8x8xbf16>, vector<8x8xf32> -> vector<8x8xf32>
    %51 = vector.extract_strided_slice %10 {offsets = [0, 16], sizes = [8, 8], strides = [1, 1]} : vector<8x32xbf16> to vector<8x8xbf16>
    %52 = vector.extract_strided_slice %11 {offsets = [0, 16], sizes = [8, 8], strides = [1, 1]} : vector<8x32xbf16> to vector<8x8xbf16>
    "tpu.trace_start"() <{level = 10 : i32, message = "qd,kd->qk"}> : () -> ()
    %cst_19 = arith.constant dense<0.000000e+00> : vector<8x8xf32>
    %53 = tpu.matmul %51, %52, %cst_19 {dimension_numbers = #tpu.dot_dimension_numbers<[1], [1], [0], [0], [0, 0, 1, 0], [], []>} : vector<8x8xbf16>, vector<8x8xbf16>, vector<8x8xf32> -> vector<8x8xf32>
    "tpu.trace_stop"() : () -> ()
    %cst_20 = arith.constant 0.353553385 : f32
    %54 = vector.broadcast %cst_20 : f32 to vector<8x8xf32>
    %55 = arith.mulf %53, %54 : vector<8x8xf32>
    %56 = arith.addf %55, %3 : vector<8x8xf32>
    %cst_21 = arith.constant dense<0xFF800000> : vector<8xf32>
    %57 = vector.multi_reduction <maximumf>, %56, %cst_21 [1] : vector<8x8xf32> to vector<8xf32>
    %58 = vector.shape_cast %57 : vector<8xf32> to vector<8x1xf32>
    %59 = vector.broadcast %58 : vector<8x1xf32> to vector<8x8xf32>
    %60 = arith.subf %56, %59 : vector<8x8xf32>
    %61 = math.exp %60 : vector<8x8xf32>
    %cst_22 = arith.constant dense<0.000000e+00> : vector<8xf32>
    %62 = vector.multi_reduction <add>, %61, %cst_22 [1] : vector<8x8xf32> to vector<8xf32>
    %63 = vector.shape_cast %62 : vector<8xf32> to vector<8x1xf32>
    %64 = tpu.reciprocal %63 {approx = true} : vector<8x1xf32> -> vector<8x1xf32>
    %65 = vector.broadcast %64 : vector<8x1xf32> to vector<8x8xf32>
    %66 = arith.mulf %61, %65 : vector<8x8xf32>
    %67 = arith.truncf %66 : vector<8x8xf32> to vector<8x8xbf16>
    %68 = vector.extract_strided_slice %12 {offsets = [0, 16], sizes = [8, 8], strides = [1, 1]} : vector<8x32xbf16> to vector<8x8xbf16>
    %cst_23 = arith.constant dense<0.000000e+00> : vector<8x8xf32>
    %69 = tpu.matmul %67, %68, %cst_23 {dimension_numbers = #tpu.dot_dimension_numbers<[1], [0], [0], [1], [0, 0, 1, 1], [], []>} : vector<8x8xbf16>, vector<8x8xbf16>, vector<8x8xf32> -> vector<8x8xf32>
    %70 = vector.extract_strided_slice %10 {offsets = [0, 24], sizes = [8, 8], strides = [1, 1]} : vector<8x32xbf16> to vector<8x8xbf16>
    %71 = vector.extract_strided_slice %11 {offsets = [0, 24], sizes = [8, 8], strides = [1, 1]} : vector<8x32xbf16> to vector<8x8xbf16>
    "tpu.trace_start"() <{level = 10 : i32, message = "qd,kd->qk"}> : () -> ()
    %cst_24 = arith.constant dense<0.000000e+00> : vector<8x8xf32>
    %72 = tpu.matmul %70, %71, %cst_24 {dimension_numbers = #tpu.dot_dimension_numbers<[1], [1], [0], [0], [0, 0, 1, 0], [], []>} : vector<8x8xbf16>, vector<8x8xbf16>, vector<8x8xf32> -> vector<8x8xf32>
    "tpu.trace_stop"() : () -> ()
    %cst_25 = arith.constant 0.353553385 : f32
    %73 = vector.broadcast %cst_25 : f32 to vector<8x8xf32>
    %74 = arith.mulf %72, %73 : vector<8x8xf32>
    %75 = arith.addf %74, %3 : vector<8x8xf32>
    %cst_26 = arith.constant dense<0xFF800000> : vector<8xf32>
    %76 = vector.multi_reduction <maximumf>, %75, %cst_26 [1] : vector<8x8xf32> to vector<8xf32>
    %77 = vector.shape_cast %76 : vector<8xf32> to vector<8x1xf32>
    %78 = vector.broadcast %77 : vector<8x1xf32> to vector<8x8xf32>
    %79 = arith.subf %75, %78 : vector<8x8xf32>
    %80 = math.exp %79 : vector<8x8xf32>
    %cst_27 = arith.constant dense<0.000000e+00> : vector<8xf32>
    %81 = vector.multi_reduction <add>, %80, %cst_27 [1] : vector<8x8xf32> to vector<8xf32>
    %82 = vector.shape_cast %81 : vector<8xf32> to vector<8x1xf32>
    %83 = tpu.reciprocal %82 {approx = true} : vector<8x1xf32> -> vector<8x1xf32>
    %84 = vector.broadcast %83 : vector<8x1xf32> to vector<8x8xf32>
    %85 = arith.mulf %80, %84 : vector<8x8xf32>
    %86 = arith.truncf %85 : vector<8x8xf32> to vector<8x8xbf16>
    %87 = vector.extract_strided_slice %12 {offsets = [0, 24], sizes = [8, 8], strides = [1, 1]} : vector<8x32xbf16> to vector<8x8xbf16>
    %cst_28 = arith.constant dense<0.000000e+00> : vector<8x8xf32>
    %88 = tpu.matmul %86, %87, %cst_28 {dimension_numbers = #tpu.dot_dimension_numbers<[1], [0], [0], [1], [0, 0, 1, 1], [], []>} : vector<8x8xbf16>, vector<8x8xbf16>, vector<8x8xf32> -> vector<8x8xf32>
    %89 = tpu.concatenate %31, %50, %69, %88 in 1 : vector<8x8xf32>, vector<8x8xf32>, vector<8x8xf32>, vector<8x8xf32> -> vector<8x32xf32>
    %90 = arith.truncf %89 : vector<8x32xf32> to vector<8x32xbf16>
    %c0_29 = arith.constant 0 : index
    %c0_30 = arith.constant 0 : index
    %91 = vector.load %arg4[%c0_29, %c0_30] : memref<32x32xbf16, #tpu.memory_space<vmem>>, vector<32x32xbf16>
    %cst_31 = arith.constant dense<0.000000e+00> : vector<8x32xf32>
    %92 = tpu.matmul %90, %91, %cst_31 {dimension_numbers = #tpu.dot_dimension_numbers<[1], [0], [0], [1], [0, 0, 1, 1], [], []>} : vector<8x32xbf16>, vector<32x32xbf16>, vector<8x32xf32> -> vector<8x32xf32>
    %c0_32 = arith.constant 0 : index
    %c0_33 = arith.constant 0 : index
    %93 = vector.load %arg5[%c0_32, %c0_33] : memref<1x32xf32, #tpu.memory_space<vmem>>, vector<1x32xf32>
    %94 = vector.broadcast %93 : vector<1x32xf32> to vector<8x32xf32>
    %95 = arith.addf %92, %94 : vector<8x32xf32>
    %c0_34 = arith.constant 0 : index
    %c0_35 = arith.constant 0 : index
    %96 = vector.load %arg7[%c0_34, %c0_35] : memref<1x32xf32, #tpu.memory_space<vmem>>, vector<1x32xf32>
    %c0_36 = arith.constant 0 : index
    %c0_37 = arith.constant 0 : index
    %97 = vector.load %arg8[%c0_36, %c0_37] : memref<1x32xf32, #tpu.memory_space<vmem>>, vector<1x32xf32>
    %98 = arith.extf %1 : vector<8x32xbf16> to vector<8x32xf32>
    %99 = arith.addf %98, %95 : vector<8x32xf32>
    %cst_38 = arith.constant dense<0.000000e+00> : vector<8xf32>
    %100 = vector.multi_reduction <add>, %99, %cst_38 [1] : vector<8x32xf32> to vector<8xf32>
    %101 = vector.shape_cast %100 : vector<8xf32> to vector<8x1xf32>
    %cst_39 = arith.constant 3.200000e+01 : f32
    %102 = vector.broadcast %cst_39 : f32 to vector<8x1xf32>
    %103 = arith.divf %101, %102 : vector<8x1xf32>
    %104 = vector.broadcast %103 : vector<8x1xf32> to vector<8x32xf32>
    %105 = arith.subf %99, %104 : vector<8x32xf32>
    %106 = arith.mulf %105, %105 : vector<8x32xf32>
    %cst_40 = arith.constant dense<0.000000e+00> : vector<8xf32>
    %107 = vector.multi_reduction <add>, %106, %cst_40 [1] : vector<8x32xf32> to vector<8xf32>
    %108 = vector.shape_cast %107 : vector<8xf32> to vector<8x1xf32>
    %cst_41 = arith.constant 3.200000e+01 : f32
    %109 = vector.broadcast %cst_41 : f32 to vector<8x1xf32>
    %110 = arith.divf %108, %109 : vector<8x1xf32>
    %cst_42 = arith.constant 9.99999974E-6 : f32
    %111 = vector.broadcast %cst_42 : f32 to vector<8x1xf32>
    %112 = arith.addf %110, %111 : vector<8x1xf32>
    %113 = math.rsqrt %112 : vector<8x1xf32>
    %114 = vector.broadcast %103 : vector<8x1xf32> to vector<8x32xf32>
    %115 = arith.subf %99, %114 : vector<8x32xf32>
    %116 = vector.broadcast %113 : vector<8x1xf32> to vector<8x32xf32>
    %117 = arith.mulf %115, %116 : vector<8x32xf32>
    %118 = vector.broadcast %96 : vector<1x32xf32> to vector<8x32xf32>
    %119 = arith.mulf %117, %118 : vector<8x32xf32>
    %120 = vector.broadcast %97 : vector<1x32xf32> to vector<8x32xf32>
    %121 = arith.addf %119, %120 : vector<8x32xf32>
    %122 = arith.truncf %121 : vector<8x32xf32> to vector<8x32xbf16>
    %c0_43 = arith.constant 0 : index
    %c0_44 = arith.constant 0 : index
    %c0_45 = arith.constant 0 : index
    %123 = vector.load %arg9[%c0_43, %c0_44, %c0_45] : memref<1x8x32xbf16, #tpu.memory_space<vmem>>, vector<1x8x32xbf16>
    %124 = vector.shape_cast %123 : vector<1x8x32xbf16> to vector<8x32xbf16>
    %125 = vector.shape_cast %122 : vector<8x32xbf16> to vector<1x8x32xbf16>
    tpu.vector_store %arg9[%c0_43, %c0_44, %c0_45], %125 {strides = array<i32>} : memref<1x8x32xbf16, #tpu.memory_space<vmem>>, vector<1x8x32xbf16>,
    return
  }
  func.func @transform_0(%arg0: i32) -> (i32, i32, i32) {
    %c0_i32 = arith.constant 0 : i32
    %c0_i32_0 = arith.constant 0 : i32
    %c0_i32_1 = arith.constant 0 : i32
    return %arg0, %c0_i32, %c0_i32_0 : i32, i32, i32
  }
  func.func @transform_1(%arg0: i32) -> (i32, i32) {
    %c0_i32 = arith.constant 0 : i32
    %c0_i32_0 = arith.constant 0 : i32
    %c0_i32_1 = arith.constant 0 : i32
    return %c0_i32, %c0_i32_0 : i32, i32
  }
  func.func @transform_2(%arg0: i32) -> (i32, i32) {
    %c0_i32 = arith.constant 0 : i32
    %c0_i32_0 = arith.constant 0 : i32
    %c0_i32_1 = arith.constant 0 : i32
    return %c0_i32, %c0_i32_0 : i32, i32
  }
  func.func @transform_3(%arg0: i32) -> (i32, i32) {
    %c0_i32 = arith.constant 0 : i32
    %c0_i32_0 = arith.constant 0 : i32
    %c0_i32_1 = arith.constant 0 : i32
    return %c0_i32, %c0_i32_0 : i32, i32
  }
  func.func @transform_4(%arg0: i32) -> (i32, i32) {
    %c0_i32 = arith.constant 0 : i32
    %c0_i32_0 = arith.constant 0 : i32
    %c0_i32_1 = arith.constant 0 : i32
    return %c0_i32, %c0_i32_0 : i32, i32
  }
  func.func @transform_5(%arg0: i32) -> (i32, i32, i32) {
    %c0_i32 = arith.constant 0 : i32
    %c0_i32_0 = arith.constant 0 : i32
    %c0_i32_1 = arith.constant 0 : i32
    return %arg0, %c0_i32, %c0_i32_0 : i32, i32, i32
  }
  func.func @transform_6(%arg0: i32) -> (i32, i32) {
    %c0_i32 = arith.constant 0 : i32
    %c0_i32_0 = arith.constant 0 : i32
    %c0_i32_1 = arith.constant 0 : i32
    return %c0_i32, %c0_i32_0 : i32, i32
  }
  func.func @transform_7(%arg0: i32) -> (i32, i32) {
    %c0_i32 = arith.constant 0 : i32
    %c0_i32_0 = arith.constant 0 : i32
    %c0_i32_1 = arith.constant 0 : i32
    return %c0_i32, %c0_i32_0 : i32, i32
  }
  func.func @transform_8(%arg0: i32) -> (i32, i32, i32) {
    %c0_i32 = arith.constant 0 : i32
    %c0_i32_0 = arith.constant 0 : i32
    %c0_i32_1 = arith.constant 0 : i32
    return %arg0, %c0_i32, %c0_i32_0 : i32, i32, i32
  }
}

module attributes {stable_mosaic.version = 11 : i64} {
  func.func @_ffn_block_kernel(%arg0: i32, %arg1: memref<8x32xbf16, #tpu.memory_space<vmem>>, %arg2: memref<32x64xbf16, #tpu.memory_space<vmem>>, %arg3: memref<1x64xf32, #tpu.memory_space<vmem>>, %arg4: memref<64x32xbf16, #tpu.memory_space<vmem>>, %arg5: memref<1x32xf32, #tpu.memory_space<vmem>>, %arg6: memref<1x32xf32, #tpu.memory_space<vmem>>, %arg7: memref<1x32xf32, #tpu.memory_space<vmem>>, %arg8: memref<8x32xbf16, #tpu.memory_space<vmem>>) attributes {dimension_semantics = [#tpu.dimension_semantics<parallel>], iteration_bounds = array<i64: 2>, scalar_prefetch = 0 : i64, scratch_operands = 0 : i64, tpu.core_type = #tpu.core_type<tc>, window_params = [{transform_indices = @transform_0, window_bounds = array<i64: 8, 32>}, {pipeline_mode = #tpu.pipeline_mode<synchronous>, transform_indices = @transform_1, window_bounds = array<i64: 32, 64>}, {pipeline_mode = #tpu.pipeline_mode<synchronous>, transform_indices = @transform_2, window_bounds = array<i64: 1, 64>}, {pipeline_mode = #tpu.pipeline_mode<synchronous>, transform_indices = @transform_3, window_bounds = array<i64: 64, 32>}, {pipeline_mode = #tpu.pipeline_mode<synchronous>, transform_indices = @transform_4, window_bounds = array<i64: 1, 32>}, {pipeline_mode = #tpu.pipeline_mode<synchronous>, transform_indices = @transform_5, window_bounds = array<i64: 1, 32>}, {pipeline_mode = #tpu.pipeline_mode<synchronous>, transform_indices = @transform_6, window_bounds = array<i64: 1, 32>}, {transform_indices = @transform_7, window_bounds = array<i64: 8, 32>}]} {
    %c0 = arith.constant 0 : index
    %c0_0 = arith.constant 0 : index
    %0 = vector.load %arg1[%c0, %c0_0] : memref<8x32xbf16, #tpu.memory_space<vmem>>, vector<8x32xbf16>
    %c0_1 = arith.constant 0 : index
    %c0_2 = arith.constant 0 : index
    %1 = vector.load %arg2[%c0_1, %c0_2] : memref<32x64xbf16, #tpu.memory_space<vmem>>, vector<32x64xbf16>
    %cst = arith.constant dense<0.000000e+00> : vector<8x64xf32>
    %2 = tpu.matmul %0, %1, %cst {dimension_numbers = #tpu.dot_dimension_numbers<[1], [0], [0], [1], [0, 0, 1, 1], [], []>} : vector<8x32xbf16>, vector<32x64xbf16>, vector<8x64xf32> -> vector<8x64xf32>
    %c0_3 = arith.constant 0 : index
    %c0_4 = arith.constant 0 : index
    %3 = vector.load %arg3[%c0_3, %c0_4] : memref<1x64xf32, #tpu.memory_space<vmem>>, vector<1x64xf32>
    %4 = vector.broadcast %3 : vector<1x64xf32> to vector<8x64xf32>
    %5 = arith.addf %2, %4 : vector<8x64xf32>
    %cst_5 = arith.constant 0.000000e+00 : f32
    %6 = vector.broadcast %cst_5 : f32 to vector<8x64xf32>
    %7 = arith.maximumf %5, %6 : vector<8x64xf32>
    %8 = arith.truncf %7 : vector<8x64xf32> to vector<8x64xbf16>
    %c0_6 = arith.constant 0 : index
    %c0_7 = arith.constant 0 : index
    %9 = vector.load %arg4[%c0_6, %c0_7] : memref<64x32xbf16, #tpu.memory_space<vmem>>, vector<64x32xbf16>
    %cst_8 = arith.constant dense<0.000000e+00> : vector<8x32xf32>
    %10 = tpu.matmul %8, %9, %cst_8 {dimension_numbers = #tpu.dot_dimension_numbers<[1], [0], [0], [1], [0, 0, 1, 1], [], []>} : vector<8x64xbf16>, vector<64x32xbf16>, vector<8x32xf32> -> vector<8x32xf32>
    %c0_9 = arith.constant 0 : index
    %c0_10 = arith.constant 0 : index
    %11 = vector.load %arg5[%c0_9, %c0_10] : memref<1x32xf32, #tpu.memory_space<vmem>>, vector<1x32xf32>
    %12 = vector.broadcast %11 : vector<1x32xf32> to vector<8x32xf32>
    %13 = arith.addf %10, %12 : vector<8x32xf32>
    %c0_11 = arith.constant 0 : index
    %c0_12 = arith.constant 0 : index
    %14 = vector.load %arg6[%c0_11, %c0_12] : memref<1x32xf32, #tpu.memory_space<vmem>>, vector<1x32xf32>
    %c0_13 = arith.constant 0 : index
    %c0_14 = arith.constant 0 : index
    %15 = vector.load %arg7[%c0_13, %c0_14] : memref<1x32xf32, #tpu.memory_space<vmem>>, vector<1x32xf32>
    %16 = arith.extf %0 : vector<8x32xbf16> to vector<8x32xf32>
    %17 = arith.addf %16, %13 : vector<8x32xf32>
    %cst_15 = arith.constant dense<0.000000e+00> : vector<8xf32>
    %18 = vector.multi_reduction <add>, %17, %cst_15 [1] : vector<8x32xf32> to vector<8xf32>
    %19 = vector.shape_cast %18 : vector<8xf32> to vector<8x1xf32>
    %cst_16 = arith.constant 3.200000e+01 : f32
    %20 = vector.broadcast %cst_16 : f32 to vector<8x1xf32>
    %21 = arith.divf %19, %20 : vector<8x1xf32>
    %22 = vector.broadcast %21 : vector<8x1xf32> to vector<8x32xf32>
    %23 = arith.subf %17, %22 : vector<8x32xf32>
    %24 = arith.mulf %23, %23 : vector<8x32xf32>
    %cst_17 = arith.constant dense<0.000000e+00> : vector<8xf32>
    %25 = vector.multi_reduction <add>, %24, %cst_17 [1] : vector<8x32xf32> to vector<8xf32>
    %26 = vector.shape_cast %25 : vector<8xf32> to vector<8x1xf32>
    %cst_18 = arith.constant 3.200000e+01 : f32
    %27 = vector.broadcast %cst_18 : f32 to vector<8x1xf32>
    %28 = arith.divf %26, %27 : vector<8x1xf32>
    %cst_19 = arith.constant 9.99999974E-6 : f32
    %29 = vector.broadcast %cst_19 : f32 to vector<8x1xf32>
    %30 = arith.addf %28, %29 : vector<8x1xf32>
    %31 = math.rsqrt %30 : vector<8x1xf32>
    %32 = vector.broadcast %21 : vector<8x1xf32> to vector<8x32xf32>
    %33 = arith.subf %17, %32 : vector<8x32xf32>
    %34 = vector.broadcast %31 : vector<8x1xf32> to vector<8x32xf32>
    %35 = arith.mulf %33, %34 : vector<8x32xf32>
    %36 = vector.broadcast %14 : vector<1x32xf32> to vector<8x32xf32>
    %37 = arith.mulf %35, %36 : vector<8x32xf32>
    %38 = vector.broadcast %15 : vector<1x32xf32> to vector<8x32xf32>
    %39 = arith.addf %37, %38 : vector<8x32xf32>
    %40 = arith.truncf %39 : vector<8x32xf32> to vector<8x32xbf16>
    %c0_20 = arith.constant 0 : index
    %c0_21 = arith.constant 0 : index
    %41 = vector.load %arg8[%c0_20, %c0_21] : memref<8x32xbf16, #tpu.memory_space<vmem>>, vector<8x32xbf16>
    tpu.vector_store %arg8[%c0_20, %c0_21], %40 {strides = array<i32>} : memref<8x32xbf16, #tpu.memory_space<vmem>>, vector<8x32xbf16>,
    return
  }
  func.func @transform_0(%arg0: i32) -> (i32, i32) {
    %c0_i32 = arith.constant 0 : i32
    %c0_i32_0 = arith.constant 0 : i32
    return %arg0, %c0_i32 : i32, i32
  }
  func.func @transform_1(%arg0: i32) -> (i32, i32) {
    %c0_i32 = arith.constant 0 : i32
    %c0_i32_0 = arith.constant 0 : i32
    %c0_i32_1 = arith.constant 0 : i32
    return %c0_i32, %c0_i32_0 : i32, i32
  }
  func.func @transform_2(%arg0: i32) -> (i32, i32) {
    %c0_i32 = arith.constant 0 : i32
    %c0_i32_0 = arith.constant 0 : i32
    %c0_i32_1 = arith.constant 0 : i32
    return %c0_i32, %c0_i32_0 : i32, i32
  }
  func.func @transform_3(%arg0: i32) -> (i32, i32) {
    %c0_i32 = arith.constant 0 : i32
    %c0_i32_0 = arith.constant 0 : i32
    %c0_i32_1 = arith.constant 0 : i32
    return %c0_i32, %c0_i32_0 : i32, i32
  }
  func.func @transform_4(%arg0: i32) -> (i32, i32) {
    %c0_i32 = arith.constant 0 : i32
    %c0_i32_0 = arith.constant 0 : i32
    %c0_i32_1 = arith.constant 0 : i32
    return %c0_i32, %c0_i32_0 : i32, i32
  }
  func.func @transform_5(%arg0: i32) -> (i32, i32) {
    %c0_i32 = arith.constant 0 : i32
    %c0_i32_0 = arith.constant 0 : i32
    %c0_i32_1 = arith.constant 0 : i32
    return %c0_i32, %c0_i32_0 : i32, i32
  }
  func.func @transform_6(%arg0: i32) -> (i32, i32) {
    %c0_i32 = arith.constant 0 : i32
    %c0_i32_0 = arith.constant 0 : i32
    %c0_i32_1 = arith.constant 0 : i32
    return %c0_i32, %c0_i32_0 : i32, i32
  }
  func.func @transform_7(%arg0: i32) -> (i32, i32) {
    %c0_i32 = arith.constant 0 : i32
    %c0_i32_0 = arith.constant 0 : i32
    return %arg0, %c0_i32 : i32, i32
  }
}

</mosaic_0001>

<bundles_post_ra>
// kernel: transformer_fwd.29
= control target key start
LH: loop header
LB: loop body
LE: loop exit
PB: predicated region body
PF: predicated region fallthrough
CT: control target
= control target key end

     0   :  { %s357_s12 = smov 0   ;;  %s383_s0 = inlined_call_operand.vmem [shape: bf16[16,32], index: 0, kind: input, shape index: {}]   ;;  %s384_s1 = inlined_call_operand.vmem [shape: bf16[32,32], index: 1, kind: input, shape index: {}]   ;;  %s385_s2 = inlined_call_operand.vmem [shape: f32[1,32], index: 2, kind: input, shape index: {}]   ;;  %s386_s3 = inlined_call_operand.vmem [shape: bf16[16,32], index: 3, kind: output, shape index: {}]  }
   0x1 LB: > { %s291_s13 = sadd.s32 4294967295, %s333_s12   ;;  %p295_p0 = scmp.ge.s32.totalorder %s333_s12, 1  ;;  %s333_s12 = sphi %s357_s12, %s13_s12  }
   0x2   : > { %p136_p1 = scmp.lt.s32.totalorder %s333_s12, 3 }
   0x4   : > { %p137_p2 = pnand %p295_p0, %p136_p1 }
   0x5   : > { %v325_v0 = vld [vmem:[%s384_s1] sm:$0xff] (!%p137_p2)   ;;  %v335_v1 = vmov (!%p137_p2), 0.0   ;;  %v326_v2 = vld [vmem:[%s384_s1 + $0x8] sm:$0xff] (!%p137_p2)   ;;  %vm336_vm0 = vmmov (!%p137_p2), 0   ;;  %p158_p3 = scmp.lt.s32.totalorder (!%p137_p2), %s291_s13, 1  ;;  %vm191_vm1 = vcmask (!%p137_p2), 261120  }
   0x6   : > { %140 = sbr.rel (%p137_p2) target bundleno = 234 (0xea), region = 32  ;;  %307 = vmatprep.subr.bf16.mxu0 (!%p137_p2), %v335_v1  ;;  %311 = vmatprep.mubr.msk.bf16.mxu0 (!%p137_p2), %vm336_vm0, %v335_v1  ;;  %v298_v4 = vld [vmem:[%s385_s2] ss:$0 sm:$0xff] (!%p137_p2)  ;;  %vm236_vm2 = vcmask (!%p137_p2), 257024  }
   0x7   : > { %308 = vmatpush3.bf16.msra.mxu0 (!%p137_p2), %v325_v0 }
   0x8   : > { %309 = vmatprep.subr.bf16.mxu0 (!%p137_p2), %v335_v1 }
   0xb   : > { %310 = vmatpush3.bf16.msra.mxu0 (!%p137_p2), %v326_v2 }
   0xd   : > { %s388_s13 = smov (!%p158_p3, %s291_s13), 1 }
   0xe   : > { %s296_s18 = sshll.u32 %s388_s13, 2 }
   0xf   : > { %s161_s21 = scalar_lea.vmem %s383_s0, %s296_s18  ;;  %s165_s26 = scalar_lea.vmem %s386_s3, %s296_s18 }
  0x10   : > { %v167_v3 = vld [vmem:[%s161_s21] sm:$0xf] }
  0x11   : > { %312 = vmatmul.mubr.msk.bf16.vlgmr.msra.gmra.mrb[0].mxu0 %vm191_vm1, %v167_v3 }
  0xe4   : > { %v229_v5 = vpop.f32.mrb[0].mxu0 }
  0xe5   : > { %v230_v6 = vadd.f32 %v298_v4, %v229_v5  ;;  %v313_v7 = vpop.f32.mrb[1].mxu0 }
  0xe6   : > { %v232_v8 = vpop.f32.mrb[2].mxu0 }
  0xe7   : > { %v235_v9 = vpack.c.bf16 %v230_v6, %v230_v6  ;;  %v314_v10 = vpop.f32.mrb[3].mxu0 }
  0xe9   : > { %237 = vst.msk [vmem:[%s165_s26] sm:$0xf] %vm236_vm2, %v235_v9 }
  0xea PF: > { %s13_s12 = sadd.s32 1, %s333_s12  }
  0xeb   : > { %p10_p4 = scmp.ge.s32.totalorder %s13_s12, 4  }
  0xed   :  { %12 = sbr.rel (!%p10_p4) target bundleno = 1 (0x1), region = 62 }

// kernel: transformer_fwd.19
= control target key start
LH: loop header
LB: loop body
LE: loop exit
PB: predicated region body
PF: predicated region fallthrough
CT: control target
= control target key end

     0   :  { %s633_s24 = smov 0   ;;  %s690_s0 = inlined_call_operand.vmem [shape: bf16[16,32], index: 0, kind: input, shape index: {}]   ;;  %s691_s1 = inlined_call_operand.vmem [shape: bf16[32,64], index: 1, kind: input, shape index: {}]   ;;  %s692_s2 = inlined_call_operand.vmem [shape: f32[1,64], index: 2, kind: input, shape index: {}]   ;;  %s693_s3 = inlined_call_operand.vmem [shape: bf16[64,32], index: 3, kind: input, shape index: {}]   ;;  %s694_s4 = inlined_call_operand.vmem [shape: f32[1,32], index: 4, kind: input, shape index: {}]   ;;  %s695_s5 = inlined_call_operand.vmem [shape: f32[1,32], index: 5, kind: input, shape index: {}]   ;;  %s696_s6 = inlined_call_operand.vmem [shape: f32[1,32], index: 6, kind: input, shape index: {}]   ;;  %s697_s7 = inlined_call_operand.vmem [shape: bf16[16,32], index: 7, kind: output, shape index: {}]  }
   0x1 LB: > { %s516_s25 = sadd.s32 4294967295, %s589_s24   ;;  %p520_p0 = scmp.ge.s32.totalorder %s589_s24, 1  ;;  %s589_s24 = sphi %s633_s24, %s17_s24  }
   0x2   : > { %p236_p1 = scmp.lt.s32.totalorder %s589_s24, 3 }
   0x4   : > { %p237_p2 = pnand %p520_p0, %p236_p1 }
   0x5   : > { %v575_v0 = vld [vmem:[%s691_s1] sm:$0xff] (!%p237_p2)   ;;  %v591_v1 = vmov (!%p237_p2), 0.0   ;;  %v576_v2 = vld [vmem:[%s691_s1 + $0x8] sm:$0xff] (!%p237_p2)   ;;  %vm592_vm0 = vmmov (!%p237_p2), 0   ;;  %p266_p3 = scmp.lt.s32.totalorder (!%p237_p2), %s516_s25, 1  ;;  %vm299_vm1 = vcmask (!%p237_p2), 261120  }
   0x6   : > { %240 = sbr.rel (%p237_p2) target bundleno = 767 (0x2ff), region = 48  ;;  %545 = vmatprep.subr.bf16.mxu0 (!%p237_p2), %v591_v1  ;;  %553 = vmatprep.subr.bf16.mxu1 (!%p237_p2), %v591_v1  ;;  %v577_v3 = vld [vmem:[%s693_s3] sm:$0xff] (!%p237_p2)   ;;  %v578_v4 = vld [vmem:[%s693_s3 + $0x8] sm:$0xff] (!%p237_p2)   ;;  %v579_v6 = vld [vmem:[%s693_s3 + $0x10] sm:$0xff] (!%p237_p2)   ;;  %vm384_vm2 = vcmask (!%p237_p2), 523264   ;;  %vm461_vm3 = vcmask (!%p237_p2), 257024  }
   0x7   : > { %546 = vmatpush3.bf16.msra.mxu0 (!%p237_p2), %v575_v0  ;;  %549 = vmatprep.mubr.msk.bf16.mxu0 (!%p237_p2), %vm592_vm0, %v591_v1  ;;  %v580_v7 = vld [vmem:[%s693_s3 + $0x18] sm:$0xff] (!%p237_p2)   ;;  %v523_v8 = vld [vmem:[%s692_s2] ss:$0 sm:$0xff] (!%p237_p2) }
   0x8   : > { %547 = vmatprep.subr.bf16.mxu0 (!%p237_p2), %v591_v1  ;;  %561 = vmatprep.mubr.msk.bf16.mxu1 (!%p237_p2), %vm592_vm0, %v591_v1  ;;  %v527_v16 = vld [vmem:[%s694_s4] ss:$0 sm:$0xff] (!%p237_p2) }
   0x9   : > { %554 = vmatpush3.bf16.msra.mxu1 (!%p237_p2), %v577_v3  ;;  %v533_v34 = vld [vmem:[%s695_s5] ss:$0 sm:$0xff] (!%p237_p2) }
   0xa   : > { %555 = vmatprep.subr.bf16.mxu1 (!%p237_p2), %v591_v1  ;;  %v534_v36 = vld [vmem:[%s696_s6] ss:$0 sm:$0xff] (!%p237_p2) }
   0xb   : > { %548 = vmatpush3.bf16.msra.mxu0 (!%p237_p2), %v576_v2 }
   0xd   : > { %s699_s25 = smov (!%p266_p3, %s516_s25), 1  ;;  %556 = vmatpush3.bf16.msra.mxu1 %v578_v4 }
   0xe   : > { %s521_s11 = sshll.u32 %s699_s25, 2  ;;  %557 = vmatprep.subr.bf16.mxu1 %v591_v1 }
   0xf   : > { %s269_s14 = scalar_lea.vmem %s690_s0, %s521_s11  ;;  %s273_s8 = scalar_lea.vmem %s697_s7, %s521_s11 }
  0x10   : > { %v275_v5 = vld [vmem:[%s269_s14] sm:$0xf] }
  0x11   : > { %550 = vmatmul.mubr.msk.bf16.vlgmr.msra.gmra.mrb[0].mxu0 %vm299_vm1, %v275_v5  ;;  %558 = vmatpush3.bf16.msra.mxu1 %v579_v6  ;;  %v430_v17 = vunpack.c.l.bf16 %v275_v5 }
  0x12   : > { %559 = vmatprep.subr.bf16.mxu1 %v591_v1 }
  0x15   : > { %560 = vmatpush3.bf16.msra.mxu1 %v580_v7 }
  0xe4   : > { %v337_v9 = vpop.f32.mrb[0].mxu0 }
  0xe5   : > { %v338_v10 = vadd.f32 %v523_v8, %v337_v9  ;;  %v551_v11 = vpop.f32.mrb[1].mxu0 }
  0xe6   : > { %v340_v12 = vpop.f32.mrb[2].mxu0 }
  0xe7   : > { %v343_v13 = vmax.f32 %v338_v10, 0.0  ;;  %v552_v14 = vpop.f32.mrb[3].mxu0 }
  0xe9   : > { %v344_v15 = vpack.c.bf16 %v343_v13, %v343_v13 }
  0xeb   : > { %562 = vmatmul.mubr.msk.bf16.vlgmr.msra.gmra.mrb[0].mxu1 %vm384_vm2, %v344_v15 }
 0x1be   : > { %v422_v18 = vpop.f32.mrb[0].mxu1 }
 0x1bf   : > { %v423_v19 = vadd.f32 %v527_v16, %v422_v18  ;;  %v563_v20 = vpop.f32.mrb[1].mxu1 }
 0x1c0   : > { %v425_v21 = vpop.f32.mrb[2].mxu1 }
 0x1c1   : > { %v564_v22 = vpop.f32.mrb[3].mxu1  ;;  %v431_v23 = vadd.f32 %v430_v17, %v423_v19 }
 0x1c3   : > { %v432_v24 = vsel %vm299_vm1, %v431_v23, 0.0 }
 0x1c4   : > { %433 = vadd.xlane.f32.xlu0 %v432_v24 }
 0x251   : > { %v434_v25 = vpop.xlane.xlu0 %433 }
 0x252   : > { %v436_v26 = vmul.f32 0.03125, %v434_v25 }
 0x254   : > { %v437_v27 = vsub.f32 %v431_v23, %v436_v26 }
 0x256   : > { %v438_v28 = vmul.f32 %v437_v27, %v437_v27 }
 0x258   : > { %v439_v29 = vsel %vm299_vm1, %v438_v28, 0.0 }
 0x259   : > { %440 = vadd.xlane.f32.xlu0 %v439_v29 }
 0x2e6   : > { %v441_v30 = vpop.xlane.xlu0 %440 }
 0x2e7   : > { %v442_v31 = vmul.f32 0.03125, %v441_v30 }
 0x2e9   : > { %v443_v32 = vadd.f32 1e-05, %v442_v31 }
 0x2eb   : > { %581 = vrsqrt.f32 %v443_v32 }
 0x2f5   : > { %v582_v33 = vpop.eup %581 }
 0x2f6   : > { %v445_v35 = vmul.f32 %v582_v33, %v437_v27 }
 0x2f8   : > { %v452_v37 = vmul.f32 %v533_v34, %v445_v35 }
 0x2fa   : > { %v459_v38 = vadd.f32 %v534_v36, %v452_v37 }
 0x2fc   : > { %v460_v39 = vpack.c.bf16 %v459_v38, %v459_v38 }
 0x2fe   : > { %462 = vst.msk [vmem:[%s273_s8] sm:$0xf] %vm461_vm3, %v460_v39 }
 0x2ff PF: > { %s17_s24 = sadd.s32 1, %s589_s24  }
 0x300   : > { %p14_p4 = scmp.ge.s32.totalorder %s17_s24, 4  }
 0x302   :  { %16 = sbr.rel (!%p14_p4) target bundleno = 1 (0x1), region = 78 }

// kernel: transformer_fwd.18
= control target key start
LH: loop header
LB: loop body
LE: loop exit
PB: predicated region body
PF: predicated region fallthrough
CT: control target
= control target key end

     0   :  { %s1251_s27 = smov 0   ;;  %s1382_s0 = inlined_call_operand.vmem [shape: bf16[2,8,32], index: 0, kind: input, shape index: {}]   ;;  %s1383_s1 = inlined_call_operand.vmem [shape: bf16[32,96], index: 1, kind: input, shape index: {}]   ;;  %s1384_s2 = inlined_call_operand.vmem [shape: f32[1,96], index: 2, kind: input, shape index: {}]   ;;  %s1385_s3 = inlined_call_operand.vmem [shape: bf16[32,32], index: 3, kind: input, shape index: {}]   ;;  %s1386_s4 = inlined_call_operand.vmem [shape: f32[1,32], index: 4, kind: input, shape index: {}]   ;;  %s1387_s5 = inlined_call_operand.vmem [shape: f32[2,1,8], index: 5, kind: input, shape index: {}]   ;;  %s1388_s6 = inlined_call_operand.vmem [shape: f32[1,32], index: 6, kind: input, shape index: {}]   ;;  %s1389_s7 = inlined_call_operand.vmem [shape: f32[1,32], index: 7, kind: input, shape index: {}]   ;;  %s1390_s8 = inlined_call_operand.vmem [shape: bf16[2,8,32], index: 8, kind: output, shape index: {}]  }
   0x1 LB: > { %s1022_s28 = sadd.s32 4294967295, %s1188_s27   ;;  %p1026_p0 = scmp.ge.s32.totalorder %s1188_s27, 1  ;;  %s1188_s27 = sphi %s1251_s27, %s18_s27  }
   0x2   : > { %p269_p1 = scmp.lt.s32.totalorder %s1188_s27, 3 }
   0x4   : > { %p270_p2 = pnand %p1026_p0, %p269_p1 }
   0x5   : > { %v1160_v0 = vld [vmem:[%s1383_s1] sm:$0xff] (!%p270_p2)   ;;  %v1190_v1 = vmov (!%p270_p2), 0.0   ;;  %v1161_v2 = vld [vmem:[%s1383_s1 + $0x8] sm:$0xff] (!%p270_p2)   ;;  %vm1191_vm0 = vmmov (!%p270_p2), 0   ;;  %p304_p3 = scmp.lt.s32.totalorder (!%p270_p2), %s1022_s28, 1  ;;  %vm341_vm1 = vcmask (!%p270_p2), 261120  }
   0x6   : > { %273 = sbr.rel (%p270_p2) target bundleno = 1812 (0x714), region = 52  ;;  %1072 = vmatprep.subr.bf16.mxu0 (!%p270_p2), %v1190_v1  ;;  %1080 = vmatprep.subr.bf16.mxu1 (!%p270_p2), %v1190_v1  ;;  %v1029_v4 = vld [vmem:[%s1384_s2] ss:$0 sm:$0xff] (!%p270_p2)  ;;  %s1192_s17 = smov (!%p270_p2), 120   ;;  %vm389_vm2 = vcmask (!%p270_p2), 64512   ;;  %vm461_vm3 = vcmask (!%p270_p2), 1043456  }
   0x7   : > { %1073 = vmatpush3.bf16.msra.mxu0 (!%p270_p2), %v1160_v0  ;;  %1076 = vmatprep.mubr.msk.bf16.mxu0 (!%p270_p2), %vm1191_vm0, %v1190_v1  ;;  %s1193_s18 = smov (!%p270_p2), 96   ;;  %s1194_s19 = smov (!%p270_p2), 80   ;;  %vm854_vm4 = vcmask (!%p270_p2), 130048   ;;  %vm856_vm5 = vcmask (!%p270_p2), 195584   ;;  %vm958_vm6 = vcmask (!%p270_p2), 257024  }
   0x8   : > { %1074 = vmatprep.subr.bf16.mxu0 (!%p270_p2), %v1190_v1  ;;  %1082 = vmatprep.mubr.msk.bf16.mxu1 (!%p270_p2), %vm1191_vm0, %v1190_v1  ;;  %s1195_s20 = smov (!%p270_p2), 88   ;;  %s1196_s21 = smov (!%p270_p2), 72  }
   0x9   : > { %s1197_s22 = smov (!%p270_p2), 112   ;;  %s1198_s23 = smov (!%p270_p2), 104  }
   0xa   : > { %s1199_s29 = smov (!%p270_p2), 56   ;;  %s1200_s30 = smov (!%p270_p2), 64  }
   0xb   : > { %1075 = vmatpush3.bf16.msra.mxu0 (!%p270_p2), %v1161_v2  ;;  %s1201_s9 = smov (!%p270_p2), 40   ;;  %s1202_s10 = smov (!%p270_p2), 48  }
   0xc   : > { %1086 = vmatprep.subr.bf16.mxu0 (!%p270_p2), %v1190_v1  ;;  %s1203_s12 = smov (!%p270_p2), 8  }
   0xd   : > { %s1392_s28 = smov (!%p304_p3, %s1022_s28), 1 }
   0xe   : > { %s1027_s11 = sshll.u32 %s1392_s28, 2  ;;  %s310_s26 = scalar_lea.vmem %s1387_s5, %s1392_s28 }
   0xf   : > { %s307_s14 = scalar_lea.vmem %s1382_s0, %s1027_s11  ;;  %v1034_v23 = vld [vmem:[%s310_s26] ss:$0 sm:$0xff] }
  0x10   : > { %v1281_v3 = vld [vmem:[%s307_s14] sm:$0xf] }
  0x11   : > { %1077 = vmatmul.mubr.msk.bf16.vlgmr.msra.gmra.mrb[0].mxu0 %vm341_vm1, %v1281_v3 }
  0x12   : > { %1088 = vmatprep.mubr.msk.bf16.mxu0 %vm1191_vm0, %v1190_v1 }
  0xe4   : > { %v379_v5 = vpop.f32.mrb[0].mxu0 }
  0xe5   : > { %v380_v6 = vadd.f32 %v1029_v4, %v379_v5  ;;  %v1078_v7 = vpop.f32.mrb[1].mxu0 }
  0xe6   : > { %v382_v8 = vpop.f32.mrb[2].mxu0 }
  0xe7   : > { %v1290_v9 = vpack.c.bf16 %v380_v6, %v380_v6  ;;  %v1079_v10 = vpop.f32.mrb[3].mxu0 }
  0xe9   : > { %505 = vrot.lane.b32.xlu1 %v1290_v9, %s1192_s17  ;;  %387 = vrot.lane.b32.xlu0 %v1290_v9, %s1193_s18  ;;  %s1204_s17 = smov 16   ;;  %s1205_s18 = smov 24  }
  0xed   : > { %619 = vrot.lane.b32.xlu1 %v1290_v9, %s1194_s19  ;;  %507 = vrot.lane.b32.xlu0 %v1290_v9, %s1195_s20 }
  0xf1   : > { %731 = vrot.lane.b32.xlu1 %v1290_v9, %s1196_s21  ;;  %617 = vrot.lane.b32.xlu0 %v1290_v9, %s1197_s22 }
  0xf5   : > { %729 = vrot.lane.b32.xlu0 %v1290_v9, %s1198_s23 }
 0x15b   : > { %v388_v11 = vpop.permute.xlu0 %387  ;;  %v506_v14 = vpop.permute.xlu1 %505 }
 0x15c   : > { %v394_v12 = vsel %vm389_vm2, %v388_v11, 0 }
 0x15d   : > { %1081 = vmatpush3.bf16.xpose.msra.mxu1 %v394_v12 }
 0x15e   : > { %1092 = vmatprep.subr.bf16.mxu1 %v1190_v1 }
 0x15f   : > { %v508_v13 = vpop.permute.xlu0 %507  ;;  %v620_v16 = vpop.permute.xlu1 %619 }
 0x160   : > { %v513_v15 = vsel %vm389_vm2, %v508_v13, 0  ;;  %v625_v17 = vsel %vm389_vm2, %v620_v16, 0 }
 0x163   : > { %v732_v18 = vpop.permute.xlu1 %731  ;;  %v618_v19 = vpop.permute.xlu0 %617 }
 0x164   : > { %1083 = vmatmul.mubr.msk.bf16.vlgmr.msra.gmra.mrb[0].mxu1 %vm389_vm2, %v1290_v9  ;;  %v737_v20 = vsel %vm389_vm2, %v732_v18, 0 }
 0x165   : > { %1093 = vmatpush3.bf16.xpose.msra.mxu1 %v513_v15  ;;  %1094 = vmatprep.mubr.msk.bf16.mxu1 %vm1191_vm0, %v1190_v1 }
 0x166   : > { %1104 = vmatprep.subr.bf16.mxu1 %v1190_v1 }
 0x167   : > { %v730_v21 = vpop.permute.xlu0 %729 }
 0x16c   : > { %1095 = vmatmul.mubr.msk.bf16.vlgmr.msra.gmra.mrb[4].mxu1 %vm389_vm2, %v506_v14 }
 0x16d   : > { %1105 = vmatpush3.bf16.xpose.msra.mxu1 %v625_v17  ;;  %1106 = vmatprep.mubr.msk.bf16.mxu1 %vm1191_vm0, %v1190_v1 }
 0x16e   : > { %1116 = vmatprep.subr.bf16.mxu1 %v1190_v1 }
 0x174   : > { %1107 = vmatmul.mubr.msk.bf16.vlgmr.msra.gmra.mrb[8].mxu1 %vm389_vm2, %v618_v19 }
 0x175   : > { %1117 = vmatpush3.bf16.xpose.msra.mxu1 %v737_v20  ;;  %1118 = vmatprep.mubr.msk.bf16.mxu1 %vm1191_vm0, %v1190_v1 }
 0x176   : > { %1128 = vmatprep.subr.bf16.mxu1 %v1190_v1 }
 0x17c   : > { %1119 = vmatmul.mubr.msk.bf16.vlgmr.msra.gmra.mrb[12].mxu1 %vm389_vm2, %v730_v21 }
 0x17d   : > { %1132 = vmatprep.mubr.msk.bf16.mxu1 %vm1191_vm0, %v1190_v1 }
 0x237   : > { %v430_v22 = vpop.f32.mrb[0].mxu1 }
 0x238   : > { %v436_v24 = vmul.f32 0.35355338, %v430_v22  ;;  %v1084_v25 = vpop.f32.mrb[1].mxu1 }
 0x239   : > { %v433_v26 = vpop.f32.mrb[2].mxu1 }
 0x23a   : > { %v1085_v27 = vpop.f32.mrb[3].mxu1  ;;  %v443_v28 = vadd.f32 %v1034_v23, %v436_v24 }
 0x23c   : > { %v444_v29 = vsel %vm389_vm2, %v443_v28, -inf }
 0x23d   : > { %445 = vmax.xlane.f32.xlu1 %v444_v29 }
 0x23f   : > { %v549_v30 = vpop.f32.mrb[4].mxu1 }
 0x240   : > { %v555_v31 = vmul.f32 0.35355338, %v549_v30  ;;  %v1096_v32 = vpop.f32.mrb[5].mxu1 }
 0x241   : > { %v552_v33 = vpop.f32.mrb[6].mxu1 }
 0x242   : > { %v1097_v34 = vpop.f32.mrb[7].mxu1  ;;  %v556_v35 = vadd.f32 %v1034_v23, %v555_v31 }
 0x244   : > { %v557_v36 = vsel %vm389_vm2, %v556_v35, -inf }
 0x245   : > { %558 = vmax.xlane.f32.xlu0 %v557_v36 }
 0x247   : > { %v661_v37 = vpop.f32.mrb[8].mxu1 }
 0x248   : > { %v667_v38 = vmul.f32 0.35355338, %v661_v37  ;;  %v1108_v39 = vpop.f32.mrb[9].mxu1 }
 0x249   : > { %v664_v40 = vpop.f32.mrb[10].mxu1 }
 0x24a   : > { %v1109_v41 = vpop.f32.mrb[11].mxu1  ;;  %v668_v42 = vadd.f32 %v1034_v23, %v667_v38 }
 0x24b   : > { %v1162_v41 = vld [vmem:[%s1385_s3] sm:$0xff]  }
 0x24c   : > { %v669_v43 = vsel %vm389_vm2, %v668_v42, -inf  ;;  %1129 = vmatpush3.bf16.msra.mxu1 %v1162_v41 }
 0x24d   : > { %670 = vmax.xlane.f32.xlu0 %v669_v43  ;;  %1130 = vmatprep.subr.bf16.mxu1 %v1190_v1 }
 0x24f   : > { %v773_v44 = vpop.f32.mrb[12].mxu1 }
 0x250   : > { %v779_v45 = vmul.f32 0.35355338, %v773_v44  ;;  %v1120_v46 = vpop.f32.mrb[13].mxu1 }
 0x251   : > { %v776_v47 = vpop.f32.mrb[14].mxu1 }
 0x252   : > { %v1121_v48 = vpop.f32.mrb[15].mxu1  ;;  %v780_v49 = vadd.f32 %v1034_v23, %v779_v45 }
 0x254   : > { %v781_v50 = vsel %vm389_vm2, %v780_v49, -inf }
 0x255   : > { %782 = vmax.xlane.f32.xlu1 %v781_v50 }
 0x2ca   : > { %v446_v51 = vpop.xlane.xlu1 %445 }
 0x2cb   : > { %v447_v52 = vsub.f32 %v443_v28, %v446_v51 }
 0x2cd   : > { %v448_v53 = vmul.f32 1.442695, %v447_v52 }
 0x2cf   : > { %1164 = vpow2.f32 %v448_v53 }
 0x2d2   : > { %v559_v54 = vpop.xlane.xlu0 %558 }
 0x2d3   : > { %v560_v55 = vsub.f32 %v556_v35, %v559_v54 }
 0x2d5   : > { %v561_v56 = vmul.f32 1.442695, %v560_v55 }
 0x2d7   : > { %1166 = vpow2.f32 %v561_v56 }
 0x2d9   : > { %v1165_v57 = vpop.eup %1164 }
 0x2da   : > { %v671_v58 = vpop.xlane.xlu0 %670  ;;  %v450_v59 = vsel %vm389_vm2, %v1165_v57, 0.0 }
 0x2db   : > { %v672_v60 = vsub.f32 %v668_v42, %v671_v58  ;;  %451 = vadd.xlane.f32.xlu0 %v450_v59  ;;  %v1163_v42 = vld [vmem:[%s1385_s3 + $0x8] sm:$0xff]   ;;  %v927_v58 = vunpack.c.l.bf16 %v1281_v3 }
 0x2dc   : > { %1131 = vmatpush3.bf16.msra.mxu1 %v1163_v42 }
 0x2dd   : > { %v673_v61 = vmul.f32 1.442695, %v672_v60 }
 0x2df   : > { %1168 = vpow2.f32 %v673_v61 }
 0x2e1   : > { %v1167_v62 = vpop.eup %1166 }
 0x2e2   : > { %v563_v63 = vsel %vm389_vm2, %v1167_v62, 0.0  ;;  %v783_v4 = vpop.xlane.xlu1 %782 }
 0x2e3   : > { %564 = vadd.xlane.f32.xlu1 %v563_v63  ;;  %v784_v5 = vsub.f32 %v780_v49, %v783_v4 }
 0x2e5   : > { %v785_v6 = vmul.f32 1.442695, %v784_v5 }
 0x2e7   : > { %1170 = vpow2.f32 %v785_v6 }
 0x2e9   : > { %v1169_v0 = vpop.eup %1168 }
 0x2ea   : > { %v675_v2 = vsel %vm389_vm2, %v1169_v0, 0.0 }
 0x2eb   : > { %676 = vadd.xlane.f32.xlu0 %v675_v2 }
 0x2f1   : > { %v1171_v7 = vpop.eup %1170 }
 0x2f2   : > { %v787_v8 = vsel %vm389_vm2, %v1171_v7, 0.0 }
 0x2f4   : > { %569 = vrot.lane.b32.xlu1 %v1290_v9, %s1199_s29  ;;  %s314_s29 = scalar_lea.vmem %s1390_s8, %s1027_s11 }
 0x301   : > { %456 = vrot.lane.b32.xlu0 %v1290_v9, %s1200_s30 }
 0x305   : > { %793 = vrot.lane.b32.xlu0 %v1290_v9, %s1201_s9 }
 0x318   : > { %788 = vadd.xlane.f32.xlu1 %v787_v8 }
 0x329   : > { %681 = vrot.lane.b32.xlu1 %v1290_v9, %s1202_s10 }
 0x368   : > { %v452_v10 = vpop.xlane.xlu0 %451 }
 0x369   : > { %1172 = vrcp.f32 %v452_v10 }
 0x370   : > { %v565_v11 = vpop.xlane.xlu1 %564 }
 0x371   : > { %1174 = vrcp.f32 %v565_v11 }
 0x373   : > { %v1173_v12 = vpop.eup %1172 }
 0x374   : > { %v454_v14 = vmul.f32 %v1173_v12, %v1165_v57  ;;  %v570_v17 = vpop.permute.xlu1 %569  ;;  %v1042_v57 = vld [vmem:[%s1386_s4] ss:$0 sm:$0xff] }
 0x375   : > { %v575_v20 = vsel %vm461_vm3, %v570_v17, 0 }
 0x376   : > { %v455_v18 = vpack.c.bf16 %v454_v14, %v454_v14 }
 0x378   : > { %v677_v13 = vpop.xlane.xlu0 %676 }
 0x379   : > { %1176 = vrcp.f32 %v677_v13  ;;  %v1046_v13 = vld [vmem:[%s1388_s6] ss:$0 sm:$0xff] }
 0x37b   : > { %v1175_v19 = vpop.eup %1174 }
 0x37c   : > { %v457_v15 = vpop.permute.xlu0 %456  ;;  %v567_v9 = vmul.f32 %v1175_v19, %v1167_v62 }
 0x37d   : > { %v463_v16 = vsel %vm461_vm3, %v457_v15, 0  ;;  %v1047_v15 = vld [vmem:[%s1389_s7] ss:$0 sm:$0xff] }
 0x37e   : > { %1087 = vmatpush3.bf16.msra.mxu0 %v463_v16  ;;  %v568_v21 = vpack.c.bf16 %v567_v9, %v567_v9 }
 0x37f   : > { %1098 = vmatprep.subr.bf16.mxu0 %v1190_v1 }
 0x380   : > { %v794_v27 = vpop.permute.xlu0 %793 }
 0x381   : > { %1089 = vmatmul.mubr.msk.bf16.vlgmr.msra.gmra.mrb[4].mxu0 %vm389_vm2, %v455_v18  ;;  %v799_v29 = vsel %vm461_vm3, %v794_v27, 0 }
 0x382   : > { %1099 = vmatpush3.bf16.msra.mxu0 %v575_v20  ;;  %1100 = vmatprep.mubr.msk.bf16.mxu0 %vm1191_vm0, %v1190_v1 }
 0x383   : > { %1110 = vmatprep.subr.bf16.mxu0 %v1190_v1  ;;  %v1177_v22 = vpop.eup %1176 }
 0x384   : > { %v679_v24 = vmul.f32 %v1177_v22, %v1169_v0 }
 0x386   : > { %v680_v28 = vpack.c.bf16 %v679_v24, %v679_v24 }
 0x389   : > { %1101 = vmatmul.mubr.msk.bf16.vlgmr.msra.gmra.mrb[8].mxu0 %vm389_vm2, %v568_v21 }
 0x38a   : > { %1112 = vmatprep.mubr.msk.bf16.mxu0 %vm1191_vm0, %v1190_v1 }
 0x3a5   : > { %v789_v23 = vpop.xlane.xlu1 %788 }
 0x3a6   : > { %1178 = vrcp.f32 %v789_v23 }
 0x3a9   : > { %v682_v25 = vpop.permute.xlu1 %681 }
 0x3aa   : > { %v687_v26 = vsel %vm461_vm3, %v682_v25, 0 }
 0x3ab   : > { %1111 = vmatpush3.bf16.msra.mxu0 %v687_v26 }
 0x3ac   : > { %1122 = vmatprep.subr.bf16.mxu0 %v1190_v1 }
 0x3ae   : > { %1113 = vmatmul.mubr.msk.bf16.vlgmr.msra.gmra.mrb[12].mxu0 %vm389_vm2, %v680_v28 }
 0x3af   : > { %1123 = vmatpush3.bf16.msra.mxu0 %v799_v29  ;;  %1124 = vmatprep.mubr.msk.bf16.mxu0 %vm1191_vm0, %v1190_v1 }
 0x3b0   : > { %v1179_v30 = vpop.eup %1178 }
 0x3b1   : > { %v791_v31 = vmul.f32 %v1179_v30, %v1171_v7 }
 0x3b3   : > { %v792_v32 = vpack.c.bf16 %v791_v31, %v791_v31 }
 0x3b6   : > { %1125 = vmatmul.mubr.msk.bf16.vlgmr.msra.gmra.mrb[16].mxu0 %vm389_vm2, %v792_v32 }
 0x454   : > { %v499_v33 = vpop.f32.mrb[4].mxu0 }
 0x455   : > { %v1090_v34 = vpop.f32.mrb[5].mxu0 }
 0x456   : > { %v502_v35 = vpop.f32.mrb[6].mxu0 }
 0x457   : > { %v1091_v36 = vpop.f32.mrb[7].mxu0 }
 0x45c   : > { %v611_v37 = vpop.f32.mrb[8].mxu0 }
 0x45d   : > { %842 = vrot.lane.b32.xlu1 %v611_v37, %s1203_s12  ;;  %v1102_v38 = vpop.f32.mrb[9].mxu0 }
 0x45e   : > { %v614_v39 = vpop.f32.mrb[10].mxu0 }
 0x45f   : > { %v1103_v40 = vpop.f32.mrb[11].mxu0 }
 0x481   : > { %v723_v43 = vpop.f32.mrb[12].mxu0 }
 0x482   : > { %846 = vrot.lane.b32.xlu0 %v723_v43, %s1204_s17  ;;  %v1114_v44 = vpop.f32.mrb[13].mxu0 }
 0x483   : > { %v726_v45 = vpop.f32.mrb[14].mxu0 }
 0x484   : > { %v1115_v46 = vpop.f32.mrb[15].mxu0 }
 0x489   : > { %v835_v47 = vpop.f32.mrb[16].mxu0 }
 0x48a   : > { %850 = vrot.lane.b32.xlu1 %v835_v47, %s1205_s18  ;;  %v1126_v48 = vpop.f32.mrb[17].mxu0 }
 0x48b   : > { %v838_v49 = vpop.f32.mrb[18].mxu0 }
 0x48c   : > { %v1127_v50 = vpop.f32.mrb[19].mxu0 }
 0x4cf   : > { %v843_v51 = vpop.permute.xlu1 %842 }
 0x4d0   : > { %v853_v52 = vsel %vm389_vm2, %v499_v33, %v843_v51 }
 0x4f4   : > { %v847_v1 = vpop.permute.xlu0 %846 }
 0x4f5   : > { %v855_v53 = vsel %vm854_vm4, %v853_v52, %v847_v1 }
 0x4fc   : > { %v851_v54 = vpop.permute.xlu1 %850 }
 0x4fd   : > { %v857_v55 = vsel %vm856_vm5, %v855_v53, %v851_v54 }
 0x4fe   : > { %v858_v56 = vpack.c.bf16 %v857_v55, %v857_v55 }
 0x500   : > { %1133 = vmatmul.mubr.msk.bf16.vlgmr.msra.gmra.mrb[16].mxu1 %vm341_vm1, %v858_v56 }
 0x5d3   : > { %v919_v59 = vpop.f32.mrb[16].mxu1 }
 0x5d4   : > { %v920_v60 = vadd.f32 %v1042_v57, %v919_v59  ;;  %v1134_v61 = vpop.f32.mrb[17].mxu1 }
 0x5d5   : > { %v922_v62 = vpop.f32.mrb[18].mxu1 }
 0x5d6   : > { %v1135_v63 = vpop.f32.mrb[19].mxu1  ;;  %v928_v0 = vadd.f32 %v927_v58, %v920_v60 }
 0x5d8   : > { %v929_v2 = vsel %vm341_vm1, %v928_v0, 0.0 }
 0x5d9   : > { %930 = vadd.xlane.f32.xlu0 %v929_v2 }
 0x666   : > { %v931_v4 = vpop.xlane.xlu0 %930 }
 0x667   : > { %v933_v5 = vmul.f32 0.03125, %v931_v4 }
 0x669   : > { %v934_v6 = vsub.f32 %v928_v0, %v933_v5 }
 0x66b   : > { %v935_v7 = vmul.f32 %v934_v6, %v934_v6 }
 0x66d   : > { %v936_v8 = vsel %vm341_vm1, %v935_v7, 0.0 }
 0x66e   : > { %937 = vadd.xlane.f32.xlu1 %v936_v8 }
 0x6fb   : > { %v938_v10 = vpop.xlane.xlu1 %937 }
 0x6fc   : > { %v939_v11 = vmul.f32 0.03125, %v938_v10 }
 0x6fe   : > { %v940_v3 = vadd.f32 1e-05, %v939_v11 }
 0x700   : > { %1180 = vrsqrt.f32 %v940_v3 }
 0x70a   : > { %v1181_v12 = vpop.eup %1180 }
 0x70b   : > { %v942_v14 = vmul.f32 %v1181_v12, %v934_v6 }
 0x70d   : > { %v949_v16 = vmul.f32 %v1046_v13, %v942_v14 }
 0x70f   : > { %v956_v17 = vadd.f32 %v1047_v15, %v949_v16 }
 0x711   : > { %v957_v18 = vpack.c.bf16 %v956_v17, %v956_v17 }
 0x713   : > { %959 = vst.msk [vmem:[%s314_s29] sm:$0xf] %vm958_vm6, %v957_v18 }
 0x714 PF: > { %s18_s27 = sadd.s32 1, %s1188_s27  }
 0x715   : > { %p15_p4 = scmp.ge.s32.totalorder %s18_s27, 4  }
 0x717   :  { %17 = sbr.rel (!%p15_p4) target bundleno = 1 (0x1), region = 85 }

// kernel: transformer_fwd.31
= control target key start
LH: loop header
LB: loop body
LE: loop exit
PB: predicated region body
PF: predicated region fallthrough
CT: control target
= control target key end

     0   :  { %s1453_s17 = smov 0   ;;  %s1598_s0 = inlined_call_operand.vmem [shape: bf16[2,8,32], index: 0, kind: input, shape index: {}]   ;;  %s1599_s1 = inlined_call_operand.vmem [shape: bf16[2,8,32], index: 1, kind: input, shape index: {}]   ;;  %s1600_s2 = inlined_call_operand.vmem [shape: bf16[32,32], index: 2, kind: input, shape index: {}]   ;;  %s1601_s3 = inlined_call_operand.vmem [shape: f32[1,32], index: 3, kind: input, shape index: {}]   ;;  %s1602_s4 = inlined_call_operand.vmem [shape: bf16[32,64], index: 4, kind: input, shape index: {}]   ;;  %s1603_s5 = inlined_call_operand.vmem [shape: f32[1,64], index: 5, kind: input, shape index: {}]   ;;  %s1604_s6 = inlined_call_operand.vmem [shape: bf16[32,32], index: 6, kind: input, shape index: {}]   ;;  %s1605_s7 = inlined_call_operand.vmem [shape: f32[1,32], index: 7, kind: input, shape index: {}]   ;;  %s1606_s8 = inlined_call_operand.vmem [shape: f32[2,1,8], index: 8, kind: input, shape index: {}]   ;;  %s1607_s9 = inlined_call_operand.vmem [shape: f32[1,32], index: 9, kind: input, shape index: {}]   ;;  %s1608_s10 = inlined_call_operand.vmem [shape: f32[1,32], index: 10, kind: input, shape index: {}]   ;;  %s1609_s11 = inlined_call_operand.vmem [shape: bf16[2,8,32], index: 11, kind: output, shape index: {}]  }
   0x1 LB: > { %s1199_s18 = sadd.s32 4294967295, %s1379_s17   ;;  %p1203_p0 = scmp.ge.s32.totalorder %s1379_s17, 1  ;;  %s1379_s17 = sphi %s1453_s17, %s21_s17  }
   0x2   : > { %p353_p1 = scmp.lt.s32.totalorder %s1379_s17, 3 }
   0x4   : > { %p354_p2 = pnand %p1203_p0, %p353_p1 }
   0x5   : > { %v1349_v0 = vld [vmem:[%s1602_s4] sm:$0xff] (!%p354_p2)   ;;  %v1381_v1 = vmov (!%p354_p2), 0.0   ;;  %v1351_v3 = vld [vmem:[%s1602_s4 + $0x8] sm:$0xff] (!%p354_p2)   ;;  %vm1382_vm0 = vmmov (!%p354_p2), 0   ;;  %p398_p3 = scmp.lt.s32.totalorder (!%p354_p2), %s1199_s18, 1  ;;  %vm440_vm1 = vcmask (!%p354_p2), 261120  }
   0x6   : > { %357 = sbr.rel (%p354_p2) target bundleno = 1775 (0x6ef), region = 64  ;;  %1265 = vmatprep.subr.bf16.mxu1 (!%p354_p2), %v1381_v1  ;;  %1257 = vmatprep.subr.bf16.mxu0 (!%p354_p2), %v1381_v1  ;;  %v1350_v2 = vld [vmem:[%s1600_s2] sm:$0xff] (!%p354_p2)   ;;  %v1352_v4 = vld [vmem:[%s1600_s2 + $0x8] sm:$0xff] (!%p354_p2)   ;;  %vm552_vm2 = vcmask (!%p354_p2), 64512   ;;  %s1383_s21 = smov (!%p354_p2), 112   ;;  %vm625_vm3 = vcmask (!%p354_p2), 1043456  }
   0x7   : > { %1266 = vmatpush3.bf16.msra.mxu1 (!%p354_p2), %v1349_v0  ;;  %1269 = vmatprep.mubr.msk.bf16.mxu1 (!%p354_p2), %vm1382_vm0, %v1381_v1  ;;  %v1211_v7 = vld [vmem:[%s1603_s5] ss:$0 sm:$0xff] (!%p354_p2)  ;;  %s1384_s22 = smov (!%p354_p2), 120   ;;  %s1385_s23 = smov (!%p354_p2), 104   ;;  %vm1019_vm4 = vcmask (!%p354_p2), 130048   ;;  %vm1021_vm5 = vcmask (!%p354_p2), 195584  }
   0x8   : > { %1267 = vmatprep.subr.bf16.mxu1 (!%p354_p2), %v1381_v1  ;;  %1258 = vmatpush3.bf16.msra.mxu0 (!%p354_p2), %v1350_v2  ;;  %v1207_v8 = vld [vmem:[%s1601_s3] ss:$0 sm:$0xff] (!%p354_p2)  ;;  %s1387_s28 = smov (!%p354_p2), 80   ;;  %s1388_s29 = smov (!%p354_p2), 72   ;;  %vm1123_vm6 = vcmask (!%p354_p2), 257024  }
   0x9   : > { %1259 = vmatprep.subr.bf16.mxu0 (!%p354_p2), %v1381_v1  ;;  %1261 = vmatprep.mubr.msk.bf16.mxu0 (!%p354_p2), %vm1382_vm0, %v1381_v1  ;;  %s1391_s19 = smov (!%p354_p2), 16   ;;  %s1392_s20 = smov (!%p354_p2), 24  }
   0xb   : > { %1268 = vmatpush3.bf16.msra.mxu1 (!%p354_p2), %v1351_v3 }
   0xc   : > { %1260 = vmatpush3.bf16.msra.mxu0 (!%p354_p2), %v1352_v4  ;;  %1279 = vmatprep.subr.bf16.mxu1 (!%p354_p2), %v1381_v1 }
   0xd   : > { %s1611_s18 = smov (!%p398_p3, %s1199_s18), 1  ;;  %1273 = vmatprep.subr.bf16.mxu0 %v1381_v1 }
   0xe   : > { %s1484_s27 = sshll.u32 %s1611_s18, 2  ;;  %s408_s26 = scalar_lea.vmem %s1606_s8, %s1611_s18 }
   0xf   : > { %s405_s30 = scalar_lea.vmem %s1599_s1, %s1484_s27  ;;  %s401_s14 = scalar_lea.vmem %s1598_s0, %s1484_s27  ;;  %v1216_v32 = vld [vmem:[%s408_s26] ss:$0 sm:$0xff] }
  0x10   : > { %v415_v5 = vld [vmem:[%s405_s30] sm:$0xf]  ;;  %s1386_s18 = smov 96   ;;  %s1389_s30 = smov 88  }
  0x11   : > { %1270 = vmatmul.mubr.msk.bf16.vlgmr.msra.gmra.mrb[0].mxu1 %vm440_vm1, %v415_v5  ;;  %v1497_v6 = vld [vmem:[%s401_s14] sm:$0xf]  ;;  %s1390_s14 = smov 8  }
  0x12   : > { %1262 = vmatmul.mubr.msk.bf16.vlgmr.msra.gmra.mrb[0].mxu0 %vm440_vm1, %v1497_v6  ;;  %1281 = vmatprep.mubr.msk.bf16.mxu1 %vm1382_vm0, %v1381_v1 }
  0x13   : > { %1275 = vmatprep.mubr.msk.bf16.mxu0 %vm1382_vm0, %v1381_v1 }
  0xe4   : > { %v545_v9 = vpop.f32.mrb[0].mxu1 }
  0xe5   : > { %v546_v10 = vadd.f32 %v1211_v7, %v545_v9  ;;  %v1271_v11 = vpop.f32.mrb[1].mxu1  ;;  %v478_v12 = vpop.f32.mrb[0].mxu0 }
  0xe6   : > { %v548_v13 = vpop.f32.mrb[2].mxu1  ;;  %v479_v14 = vadd.f32 %v1207_v8, %v478_v12  ;;  %v1263_v15 = vpop.f32.mrb[1].mxu0 }
  0xe7   : > { %v1511_v16 = vpack.c.bf16 %v546_v10, %v546_v10  ;;  %v1272_v17 = vpop.f32.mrb[3].mxu1  ;;  %v481_v18 = vpop.f32.mrb[2].mxu0 }
  0xe8   : > { %v1264_v19 = vpop.f32.mrb[3].mxu0  ;;  %v484_v20 = vpack.c.bf16 %v479_v14, %v479_v14 }
  0xe9   : > { %784 = vrot.lane.b32.xlu1 %v1511_v16, %s1383_s21  ;;  %672 = vrot.lane.b32.xlu0 %v1511_v16, %s1384_s22  ;;  %v557_v21 = vsel %vm552_vm2, %v1511_v16, 0 }
  0xea   : > { %1274 = vmatpush3.bf16.xpose.msra.mxu0 %v557_v21 }
  0xeb   : > { %1285 = vmatprep.subr.bf16.mxu0 %v1381_v1 }
  0xed   : > { %782 = vrot.lane.b32.xlu1 %v484_v20, %s1383_s21  ;;  %670 = vrot.lane.b32.xlu0 %v484_v20, %s1384_s22 }
  0xf1   : > { %894 = vrot.lane.b32.xlu1 %v484_v20, %s1385_s23  ;;  %896 = vrot.lane.b32.xlu0 %v1511_v16, %s1385_s23 }
  0xf2   : > { %1276 = vmatmul.mubr.msk.bf16.vlgmr.msra.gmra.mrb[4].mxu0 %vm552_vm2, %v484_v20 }
  0xf3   : > { %1287 = vmatprep.mubr.msk.bf16.mxu0 %vm1382_vm0, %v1381_v1 }
 0x15b   : > { %v673_v22 = vpop.permute.xlu0 %672  ;;  %v785_v24 = vpop.permute.xlu1 %784 }
 0x15c   : > { %v678_v23 = vsel %vm552_vm2, %v673_v22, 0  ;;  %v790_v26 = vsel %vm552_vm2, %v785_v24, 0 }
 0x15d   : > { %1286 = vmatpush3.bf16.xpose.msra.mxu0 %v678_v23 }
 0x15e   : > { %1297 = vmatprep.subr.bf16.mxu0 %v1381_v1 }
 0x15f   : > { %v671_v25 = vpop.permute.xlu0 %670  ;;  %v783_v28 = vpop.permute.xlu1 %782 }
 0x163   : > { %v897_v27 = vpop.permute.xlu0 %896  ;;  %v895_v30 = vpop.permute.xlu1 %894 }
 0x164   : > { %1288 = vmatmul.mubr.msk.bf16.vlgmr.msra.gmra.mrb[8].mxu0 %vm552_vm2, %v671_v25  ;;  %v902_v29 = vsel %vm552_vm2, %v897_v27, 0 }
 0x165   : > { %1298 = vmatpush3.bf16.xpose.msra.mxu0 %v790_v26  ;;  %1299 = vmatprep.mubr.msk.bf16.mxu0 %vm1382_vm0, %v1381_v1 }
 0x166   : > { %1309 = vmatprep.subr.bf16.mxu0 %v1381_v1 }
 0x16c   : > { %1300 = vmatmul.mubr.msk.bf16.vlgmr.msra.gmra.mrb[12].mxu0 %vm552_vm2, %v783_v28 }
 0x16d   : > { %1310 = vmatpush3.bf16.xpose.msra.mxu0 %v902_v29  ;;  %1311 = vmatprep.mubr.msk.bf16.mxu0 %vm1382_vm0, %v1381_v1 }
 0x16e   : > { %1321 = vmatprep.subr.bf16.mxu0 %v1381_v1 }
 0x174   : > { %1312 = vmatmul.mubr.msk.bf16.vlgmr.msra.gmra.mrb[16].mxu0 %vm552_vm2, %v895_v30 }
 0x175   : > { %1325 = vmatprep.mubr.msk.bf16.mxu0 %vm1382_vm0, %v1381_v1 }
 0x1c5   : > { %v593_v31 = vpop.f32.mrb[4].mxu0 }
 0x1c6   : > { %v599_v33 = vmul.f32 0.35355338, %v593_v31  ;;  %v1277_v34 = vpop.f32.mrb[5].mxu0 }
 0x1c7   : > { %v596_v35 = vpop.f32.mrb[6].mxu0 }
 0x1c8   : > { %v1278_v36 = vpop.f32.mrb[7].mxu0  ;;  %v606_v37 = vadd.f32 %v1216_v32, %v599_v33 }
 0x1ca   : > { %v607_v38 = vsel %vm552_vm2, %v606_v37, -inf }
 0x1cb   : > { %608 = vmax.xlane.f32.xlu0 %v607_v38 }
 0x237   : > { %v714_v39 = vpop.f32.mrb[8].mxu0 }
 0x238   : > { %v720_v40 = vmul.f32 0.35355338, %v714_v39  ;;  %v1289_v41 = vpop.f32.mrb[9].mxu0 }
 0x239   : > { %v717_v42 = vpop.f32.mrb[10].mxu0 }
 0x23a   : > { %v1290_v43 = vpop.f32.mrb[11].mxu0  ;;  %v721_v44 = vadd.f32 %v1216_v32, %v720_v40 }
 0x23c   : > { %v722_v45 = vsel %vm552_vm2, %v721_v44, -inf }
 0x23d   : > { %723 = vmax.xlane.f32.xlu1 %v722_v45 }
 0x23f   : > { %v826_v46 = vpop.f32.mrb[12].mxu0 }
 0x240   : > { %v832_v47 = vmul.f32 0.35355338, %v826_v46  ;;  %v1301_v48 = vpop.f32.mrb[13].mxu0  ;;  %v1353_v46 = vld [vmem:[%s1604_s6] sm:$0xff]  }
 0x241   : > { %v829_v49 = vpop.f32.mrb[14].mxu0  ;;  %1322 = vmatpush3.bf16.msra.mxu0 %v1353_v46 }
 0x242   : > { %v1302_v50 = vpop.f32.mrb[15].mxu0  ;;  %v833_v51 = vadd.f32 %v1216_v32, %v832_v47  ;;  %1323 = vmatprep.subr.bf16.mxu0 %v1381_v1 }
 0x244   : > { %v834_v52 = vsel %vm552_vm2, %v833_v51, -inf }
 0x245   : > { %835 = vmax.xlane.f32.xlu0 %v834_v52 }
 0x247   : > { %v938_v53 = vpop.f32.mrb[16].mxu0 }
 0x248   : > { %v944_v54 = vmul.f32 0.35355338, %v938_v53  ;;  %v1313_v55 = vpop.f32.mrb[17].mxu0 }
 0x249   : > { %v941_v56 = vpop.f32.mrb[18].mxu0 }
 0x24a   : > { %v1314_v57 = vpop.f32.mrb[19].mxu0  ;;  %v945_v58 = vadd.f32 %v1216_v32, %v944_v54 }
 0x24c   : > { %v946_v59 = vsel %vm552_vm2, %v945_v58, -inf }
 0x24d   : > { %947 = vmax.xlane.f32.xlu0 %v946_v59 }
 0x258   : > { %v609_v60 = vpop.xlane.xlu0 %608 }
 0x259   : > { %v610_v61 = vsub.f32 %v606_v37, %v609_v60 }
 0x25b   : > { %v611_v62 = vmul.f32 1.442695, %v610_v61 }
 0x25d   : > { %1355 = vpow2.f32 %v611_v62 }
 0x267   : > { %v1356_v63 = vpop.eup %1355 }
 0x268   : > { %v613_v0 = vsel %vm552_vm2, %v1356_v63, 0.0 }
 0x269   : > { %614 = vadd.xlane.f32.xlu1 %v613_v0 }
 0x27a   : > { %620 = vrot.lane.b32.xlu1 %v1511_v16, %s1386_s18 }
 0x2ca   : > { %v724_v2 = vpop.xlane.xlu1 %723 }
 0x2cb   : > { %v725_v3 = vsub.f32 %v721_v44, %v724_v2 }
 0x2cd   : > { %v726_v4 = vmul.f32 1.442695, %v725_v3  ;;  %v1224_v3 = vld [vmem:[%s1605_s7] ss:$0 sm:$0xff] }
 0x2cf   : > { %1357 = vpow2.f32 %v726_v4  ;;  %v1092_v4 = vunpack.c.l.bf16 %v1497_v6 }
 0x2d2   : > { %v836_v5 = vpop.xlane.xlu0 %835 }
 0x2d3   : > { %v837_v7 = vsub.f32 %v833_v51, %v836_v5  ;;  %v1354_v51 = vld [vmem:[%s1604_s6 + $0x8] sm:$0xff]  }
 0x2d4   : > { %1324 = vmatpush3.bf16.msra.mxu0 %v1354_v51 }
 0x2d5   : > { %v838_v8 = vmul.f32 1.442695, %v837_v7 }
 0x2d7   : > { %1359 = vpow2.f32 %v838_v8 }
 0x2d9   : > { %v1358_v9 = vpop.eup %1357 }
 0x2da   : > { %v948_v10 = vpop.xlane.xlu0 %947  ;;  %v728_v11 = vsel %vm552_vm2, %v1358_v9, 0.0 }
 0x2db   : > { %v949_v12 = vsub.f32 %v945_v58, %v948_v10  ;;  %729 = vadd.xlane.f32.xlu0 %v728_v11 }
 0x2dd   : > { %v950_v13 = vmul.f32 1.442695, %v949_v12 }
 0x2df   : > { %1361 = vpow2.f32 %v950_v13 }
 0x2e1   : > { %v1360_v14 = vpop.eup %1359 }
 0x2e2   : > { %v840_v15 = vsel %vm552_vm2, %v1360_v14, 0.0 }
 0x2e3   : > { %841 = vadd.xlane.f32.xlu1 %v840_v15 }
 0x2e9   : > { %v1362_v17 = vpop.eup %1361 }
 0x2ea   : > { %v952_v18 = vsel %vm552_vm2, %v1362_v17, 0.0 }
 0x2eb   : > { %953 = vadd.xlane.f32.xlu0 %v952_v18 }
 0x2f4   : > { %846 = vrot.lane.b32.xlu1 %v1511_v16, %s1387_s28 }
 0x2f6   : > { %v615_v19 = vpop.xlane.xlu1 %614 }
 0x2f7   : > { %1363 = vrcp.f32 %v615_v19 }
 0x2f8   : > { %958 = vrot.lane.b32.xlu1 %v1511_v16, %s1388_s29  ;;  %s412_s29 = scalar_lea.vmem %s1609_s11, %s1484_s27 }
 0x2fa   : > { %v621_v20 = vpop.permute.xlu1 %620 }
 0x2fb   : > { %v627_v21 = vsel %vm625_vm3, %v621_v20, 0 }
 0x2fc   : > { %1280 = vmatpush3.bf16.msra.mxu1 %v627_v21 }
 0x2fd   : > { %1291 = vmatprep.subr.bf16.mxu1 %v1381_v1 }
 0x301   : > { %v1364_v22 = vpop.eup %1363  ;;  %734 = vrot.lane.b32.xlu0 %v1511_v16, %s1389_s30 }
 0x302   : > { %v617_v23 = vmul.f32 %v1364_v22, %v1356_v63  ;;  %v1228_v22 = vld [vmem:[%s1607_s9] ss:$0 sm:$0xff] }
 0x304   : > { %v618_v24 = vpack.c.bf16 %v617_v23, %v617_v23 }
 0x306   : > { %1282 = vmatmul.mubr.msk.bf16.vlgmr.msra.gmra.mrb[4].mxu1 %vm552_vm2, %v618_v24  ;;  %v1229_v24 = vld [vmem:[%s1608_s10] ss:$0 sm:$0xff] }
 0x307   : > { %1293 = vmatprep.mubr.msk.bf16.mxu1 %vm1382_vm0, %v1381_v1 }
 0x368   : > { %v730_v25 = vpop.xlane.xlu0 %729 }
 0x369   : > { %1365 = vrcp.f32 %v730_v25 }
 0x370   : > { %v842_v26 = vpop.xlane.xlu1 %841 }
 0x371   : > { %1367 = vrcp.f32 %v842_v26 }
 0x373   : > { %v1366_v27 = vpop.eup %1365 }
 0x374   : > { %v732_v29 = vmul.f32 %v1366_v27, %v1358_v9  ;;  %v847_v32 = vpop.permute.xlu1 %846 }
 0x375   : > { %v852_v34 = vsel %vm625_vm3, %v847_v32, 0 }
 0x376   : > { %v733_v16 = vpack.c.bf16 %v732_v29, %v732_v29 }
 0x378   : > { %v954_v28 = vpop.xlane.xlu0 %953  ;;  %v959_v36 = vpop.permute.xlu1 %958 }
 0x379   : > { %1369 = vrcp.f32 %v954_v28  ;;  %v964_v39 = vsel %vm625_vm3, %v959_v36, 0 }
 0x37b   : > { %v1368_v33 = vpop.eup %1367 }
 0x37c   : > { %v735_v30 = vpop.permute.xlu0 %734  ;;  %v844_v35 = vmul.f32 %v1368_v33, %v1360_v14 }
 0x37d   : > { %v740_v31 = vsel %vm625_vm3, %v735_v30, 0 }
 0x37e   : > { %1292 = vmatpush3.bf16.msra.mxu1 %v740_v31  ;;  %v845_v37 = vpack.c.bf16 %v844_v35, %v844_v35 }
 0x37f   : > { %1303 = vmatprep.subr.bf16.mxu1 %v1381_v1 }
 0x381   : > { %1294 = vmatmul.mubr.msk.bf16.vlgmr.msra.gmra.mrb[8].mxu1 %vm552_vm2, %v733_v16 }
 0x382   : > { %1304 = vmatpush3.bf16.msra.mxu1 %v852_v34  ;;  %1305 = vmatprep.mubr.msk.bf16.mxu1 %vm1382_vm0, %v1381_v1 }
 0x383   : > { %1315 = vmatprep.subr.bf16.mxu1 %v1381_v1  ;;  %v1370_v38 = vpop.eup %1369 }
 0x384   : > { %v956_v40 = vmul.f32 %v1370_v38, %v1362_v17 }
 0x386   : > { %v957_v41 = vpack.c.bf16 %v956_v40, %v956_v40 }
 0x389   : > { %1306 = vmatmul.mubr.msk.bf16.vlgmr.msra.gmra.mrb[12].mxu1 %vm552_vm2, %v845_v37 }
 0x38a   : > { %1316 = vmatpush3.bf16.msra.mxu1 %v964_v39  ;;  %1317 = vmatprep.mubr.msk.bf16.mxu1 %vm1382_vm0, %v1381_v1 }
 0x391   : > { %1318 = vmatmul.mubr.msk.bf16.vlgmr.msra.gmra.mrb[16].mxu1 %vm552_vm2, %v957_v41 }
 0x3d9   : > { %v663_v42 = vpop.f32.mrb[4].mxu1 }
 0x3da   : > { %v1283_v43 = vpop.f32.mrb[5].mxu1 }
 0x3db   : > { %v666_v44 = vpop.f32.mrb[6].mxu1 }
 0x3dc   : > { %v1284_v45 = vpop.f32.mrb[7].mxu1 }
 0x454   : > { %v776_v47 = vpop.f32.mrb[8].mxu1 }
 0x455   : > { %1007 = vrot.lane.b32.xlu0 %v776_v47, %s1390_s14  ;;  %v1295_v48 = vpop.f32.mrb[9].mxu1 }
 0x456   : > { %v779_v49 = vpop.f32.mrb[10].mxu1 }
 0x457   : > { %v1296_v50 = vpop.f32.mrb[11].mxu1 }
 0x45c   : > { %v888_v52 = vpop.f32.mrb[12].mxu1 }
 0x45d   : > { %1011 = vrot.lane.b32.xlu1 %v888_v52, %s1391_s19  ;;  %v1307_v53 = vpop.f32.mrb[13].mxu1 }
 0x45e   : > { %v891_v54 = vpop.f32.mrb[14].mxu1 }
 0x45f   : > { %v1308_v55 = vpop.f32.mrb[15].mxu1 }
 0x464   : > { %v1000_v56 = vpop.f32.mrb[16].mxu1 }
 0x465   : > { %1015 = vrot.lane.b32.xlu0 %v1000_v56, %s1392_s20  ;;  %v1319_v1 = vpop.f32.mrb[17].mxu1 }
 0x466   : > { %v1003_v57 = vpop.f32.mrb[18].mxu1 }
 0x467   : > { %v1320_v58 = vpop.f32.mrb[19].mxu1 }
 0x4c7   : > { %v1008_v59 = vpop.permute.xlu0 %1007 }
 0x4c8   : > { %v1018_v61 = vsel %vm552_vm2, %v663_v42, %v1008_v59 }
 0x4cf   : > { %v1012_v60 = vpop.permute.xlu1 %1011 }
 0x4d0   : > { %v1020_v62 = vsel %vm1019_vm4, %v1018_v61, %v1012_v60 }
 0x4d7   : > { %v1016_v63 = vpop.permute.xlu0 %1015 }
 0x4d8   : > { %v1022_v0 = vsel %vm1021_vm5, %v1020_v62, %v1016_v63 }
 0x4d9   : > { %v1023_v2 = vpack.c.bf16 %v1022_v0, %v1022_v0 }
 0x4db   : > { %1326 = vmatmul.mubr.msk.bf16.vlgmr.msra.gmra.mrb[20].mxu0 %vm440_vm1, %v1023_v2 }
 0x5ae   : > { %v1084_v5 = vpop.f32.mrb[20].mxu0 }
 0x5af   : > { %v1085_v7 = vadd.f32 %v1224_v3, %v1084_v5  ;;  %v1327_v8 = vpop.f32.mrb[21].mxu0 }
 0x5b0   : > { %v1087_v9 = vpop.f32.mrb[22].mxu0 }
 0x5b1   : > { %v1328_v10 = vpop.f32.mrb[23].mxu0  ;;  %v1093_v11 = vadd.f32 %v1092_v4, %v1085_v7 }
 0x5b3   : > { %v1094_v12 = vsel %vm440_vm1, %v1093_v11, 0.0 }
 0x5b4   : > { %1095 = vadd.xlane.f32.xlu1 %v1094_v12 }
 0x641   : > { %v1096_v13 = vpop.xlane.xlu1 %1095 }
 0x642   : > { %v1098_v14 = vmul.f32 0.03125, %v1096_v13 }
 0x644   : > { %v1099_v15 = vsub.f32 %v1093_v11, %v1098_v14 }
 0x646   : > { %v1100_v17 = vmul.f32 %v1099_v15, %v1099_v15 }
 0x648   : > { %v1101_v18 = vsel %vm440_vm1, %v1100_v17, 0.0 }
 0x649   : > { %1102 = vadd.xlane.f32.xlu0 %v1101_v18 }
 0x6d6   : > { %v1103_v19 = vpop.xlane.xlu0 %1102 }
 0x6d7   : > { %v1104_v20 = vmul.f32 0.03125, %v1103_v19 }
 0x6d9   : > { %v1105_v6 = vadd.f32 1e-05, %v1104_v20 }
 0x6db   : > { %1371 = vrsqrt.f32 %v1105_v6 }
 0x6e5   : > { %v1372_v21 = vpop.eup %1371 }
 0x6e6   : > { %v1107_v23 = vmul.f32 %v1372_v21, %v1099_v15 }
 0x6e8   : > { %v1114_v25 = vmul.f32 %v1228_v22, %v1107_v23 }
 0x6ea   : > { %v1121_v26 = vadd.f32 %v1229_v24, %v1114_v25 }
 0x6ec   : > { %v1122_v27 = vpack.c.bf16 %v1121_v26, %v1121_v26 }
 0x6ee   : > { %1124 = vst.msk [vmem:[%s412_s29] sm:$0xf] %vm1123_vm6, %v1122_v27 }
 0x6ef PF: > { %s21_s17 = sadd.s32 1, %s1379_s17  }
 0x6f0   : > { %p18_p4 = scmp.ge.s32.totalorder %s21_s17, 4  }
 0x6f2   :  { %20 = sbr.rel (!%p18_p4) target bundleno = 1 (0x1), region = 100 }

// kernel: transformer_fwd.28
= control target key start
LH: loop header
LB: loop body
LE: loop exit
PB: predicated region body
PF: predicated region fallthrough
CT: control target
= control target key end

     0   :  { %7 = vsyncpa [#allocation3], 0  ;;  %s549_s0 = inlined_call_operand.vmem [shape: bf16[16,32], index: 0, kind: input, shape index: {}]   ;;  %s550_s1 = inlined_call_operand.vmem [shape: bf16[32,64], index: 1, kind: input, shape index: {}]   ;;  %s551_s2 = inlined_call_operand.hbm [shape: f32[16,64], index: 2, kind: output, shape index: {}]  }
   0x1   :  { %9 = vsyncpa [#allocation3 + $0x1], 0  ;;  %s440_s9 = smov 0   ;;  %s442_s10 = smov 0  }
   0x2   :  { %s444_s11 = smov 0   ;;  %s446_s12 = smov 0  }
   0x3 LB: > { %s461_s13 = sadd.s32 4294967295, %s420_s12   ;;  %s287_s14 = sadd.s32 4294967294, %s420_s12   ;;  %s420_s12 = sphi %s446_s12, %s557_s12   ;;  %s416_s11 = sphi %s444_s11, %s556_s11   ;;  %s412_s10 = sphi %s442_s10, %s555_s10   ;;  %s408_s9 = sphi %s440_s9, %s554_s9  }
   0x4   : > { %s465_s15 = sadd.s32 1, %s420_s12   ;;  %s69_s16 = sadd.s32 1, %s416_s11 }
   0x5   : > { %s66_s17 = ssub.s32 %s420_s12, %s465_s15  ;;  %p79_p0 = scmp.ne.s32.totalorder %s416_s11, %s412_s10 }
   0x6   : > { %p67_p1 = scmp.eq.s32.totalorder %s66_s17, 0  ;;  %p80_p2 = scmp.eq.s32.totalorder %s461_s13, 1 }
   0x7   : > { %p85_p3 = scmp.ne.s32.totalorder %s412_s10, %s408_s9  ;;  %p86_p4 = scmp.eq.s32.totalorder %s287_s14, 1 }
   0x8   : > { %s476_s18 = scalar_select %p67_p1, %s416_s11, %s69_s16  }
   0x9   : > { %p478_p5 = por %p80_p2, %p79_p0  ;;  %p482_p6 = por %p86_p4, %p85_p3 }
   0xa   : > { %p290_p7 = scmp.ge.s32.totalorder %s420_s12, 1  ;;  %p114_p8 = scmp.lt.s32.totalorder %s420_s12, 3 }
   0xc   : > { %p115_p9 = pnand %p290_p7, %p114_p8 }
   0xd   : > { %v352_v0 = vld [vmem:[%s550_s1] sm:$0xff] (!%p115_p9)   ;;  %v422_v1 = vmov (!%p115_p9), 0.0   ;;  %v353_v2 = vld [vmem:[%s550_s1 + $0x8] sm:$0xff] (!%p115_p9)   ;;  %vm423_vm0 = vmmov (!%p115_p9), 0   ;;  %p135_p10 = scmp.lt.s32.totalorder (!%p115_p9), %s461_s13, 1  ;;  %vm157_vm1 = vcmask (!%p115_p9), 261120  }
   0xe   : > { %118 = sbr.rel (%p115_p9) target bundleno = 566 (0x236), region = 28  ;;  %303 = vmatprep.subr.bf16.mxu0 (!%p115_p9), %v422_v1  ;;  %307 = vmatprep.mubr.msk.bf16.mxu0 (!%p115_p9), %vm423_vm0, %v422_v1  ;;  %vm201_vm2 = vcmask (!%p115_p9), 523264   ;;  %s132_s30 = sand.u32 (!%p115_p9), 1, %s412_s10  }
   0xf   : > { %304 = vmatpush3.bf16.msra.mxu0 (!%p115_p9), %v352_v0  ;;  %s291_s3 = sshll.u32 (!%p115_p9), %s132_s30, 3  ;;  %s297_s4 = sshll.u32 (!%p115_p9), %s461_s13, 7 }
  0x10   : > { %305 = vmatprep.subr.bf16.mxu0 (!%p115_p9), %v422_v1  ;;  %s134_s5 = scalar_lea.vmem (!%p115_p9), [#allocation2], %s291_s3  ;;  %s506_s14 = scalar_lea.hbm (!%p115_p9), %s551_s2, %s297_s4 }
  0x11   : > { %s228_s6 = sshll.u32 (!%p115_p9), %s134_s5, 4  ;;  %s215_s16 = scalar_lea.sflag (!%p115_p9), [#allocation3], %s132_s30  ;;  %s508_s6 = int_to_ptr.vmem [resolvable:$true] %s228_s6 }
  0x12   : > { %s358_s17 = scalar_lea.vmem (!%p115_p9), %s508_s6, 128 }
  0x13   : > { %306 = vmatpush3.bf16.msra.mxu0 (!%p115_p9), %v353_v2  ;;  %p359_p11 = scmp.ne.s32.totalorder (!%p115_p9), %s508_s6, %s358_s17 }
  0x15   : > { %s136_s25 = scalar_select %p135_p10, %s461_s13, 1 }
  0x16   : > { %p360_p12 = pnand %p359_p11, %p478_p5  ;;  %s424_s13 = smov [#allocation2]  }
  0x17   : > { %s292_s26 = sshll.u32 %s136_s25, 2  ;;  %s362_s21 = sshll.u32 %s424_s13, 4  ;;  %s363_s21 = int_to_ptr.vmem [resolvable:$false] %s362_s21 }
  0x18   : > { %s138_s29 = scalar_lea.vmem %s549_s0, %s292_s26  ;;  %p361_p13 = pneg %p360_p12 }
  0x19   : > { %v140_v3 = vld [vmem:[%s138_s29] sm:$0xf]  ;;  %s364_s22 = scalar_lea.vmem %s363_s21, 256  ;;  %p365_p0 = scmp.lt.s32.totalorder %s508_s6, %s363_s21 }
  0x1a   : > { %308 = vmatmul.mubr.msk.bf16.vlgmr.msra.gmra.mrb[0].mxu0 %vm157_vm1, %v140_v3  ;;  %p366_p1 = scmp.lt.s32.totalorder %s364_s22, %s358_s17 }
  0x1c   : > { %p367_p2 = por %p366_p1, %p365_p0 }
  0x1e   : > { %p368_p3 = pnand %p367_p2, %p361_p13 }
  0xed   : > { %v195_v4 = vpop.f32.mrb[0].mxu0 }
  0xee   : > { %v309_v5 = vpop.f32.mrb[1].mxu0  ;;  %v202_v6 = vsel %vm201_vm2, %v195_v4, -inf }
  0xef   : > { %203 = vmax.xlane.f32.xlu0 %v202_v6  ;;  %v198_v7 = vpop.f32.mrb[2].mxu0 }
  0xf0   : > { %v310_v8 = vpop.f32.mrb[3].mxu0 }
 0x17c   : > { %v204_v9 = vpop.xlane.xlu0 %203 }
 0x17d   : > { %v205_v10 = vsub.f32 %v195_v4, %v204_v9 }
 0x17f   : > { %v206_v11 = vmul.f32 1.442695, %v205_v10 }
 0x181   : > { %354 = vpow2.f32 %v206_v11 }
 0x18b   : > { %v355_v12 = vpop.eup %354 }
 0x18c   : > { %v208_v13 = vsel %vm201_vm2, %v355_v12, 0.0 }
 0x18d   : > { %209 = vadd.xlane.f32.xlu0 %v208_v13 }
 0x21a   : > { %v210_v14 = vpop.xlane.xlu0 %209 }
 0x21b   : > { %356 = vrcp.f32 %v210_v14 }
 0x225   : > { %v357_v15 = vpop.eup %356 }
 0x226   : > { %v212_v16 = vmul.f32 %v357_v15, %v355_v12 }
 0x228   : > { %213 = vst.msk [vmem:[%s134_s5] sm:$0xff] %vm201_vm2, %v212_v16 }
 0x229   : > { %371 = shalt.err (!%p368_p3)
}
 0x22a   : > { %s372_s23 = scalar_lea.hbm %s506_s14, 128  ;;  %s376_s26 = scalar_lea.hbm %s551_s2, 256 }
 0x22b   : > { %p373_p4 = scmp.ne.s32.totalorder %s506_s14, %s372_s23  ;;  %p377_p9 = scmp.lt.u32.totalorder %s506_s14, %s551_s2 }
 0x22c   : > { %p378_p10 = scmp.lt.u32.totalorder %s376_s26, %s372_s23  ;;  %p380_p12 = scmp.lt.u32.totalorder %s372_s23, %s506_s14 }
 0x22d   : > { %p374_p7 = pnand %p373_p4, %p478_p5 }
 0x22e   : > { %p379_p11 = por %p378_p10, %p377_p9 }
 0x22f   : > { %p375_p8 = pneg %p374_p7 }
 0x230   : > { %p381_p13 = por %p380_p12, %p379_p11 }
 0x232   : > { %p382_p0 = pnand %p381_p13, %p375_p8 }
 0x234   : > { %385 = shalt.err (!%p382_p0)
}
 0x235   : > { %311 = dma.vmem_to_hbm [thread:$0]  (%p478_p5), %s508_s6, 128, %s506_s14, %s215_s16  }
 0x236 PF: > { %p317_p1 = scmp.ge.s32.totalorder %s420_s12, 2  ;;  %s240_s29 = sand.u32 1, %s408_s9  }
 0x237   : > { %s241_s30 = scalar_lea.sflag [#allocation3], %s240_s29 }
 0x238   : > { %p314_p2 = pnand %p317_p1, %p482_p6 }
 0x23a   : > { %403 = dma.done.wait (!%p314_p2), %s241_s30, 128  }
 0x23b   : > { %405 = vsyncadd (!%p314_p2), %s241_s30, 4294967168  ;;  %p12_p3 = scmp.ge.s32.totalorder %s465_s15, 4   ;;  %s554_s9 = smov %s412_s10 }
 0x23c   : > { %s555_s10 = smov %s416_s11  ;;  %s556_s11 = smov %s476_s18 }
 0x23d   : > { %s557_s12 = smov %s465_s15  ;;  %14 = sbr.rel (!%p12_p3) target bundleno = 3 (0x3), region = 63 }
 0x244   :  { %246 = vsyncpa [#allocation3], 1 }
 0x245   :  { %248 = vsyncpa [#allocation3 + $0x1], 1 }

// kernel: transformer_fwd.35
= control target key start
LH: loop header
LB: loop body
LE: loop exit
PB: predicated region body
PF: predicated region fallthrough
CT: control target
= control target key end

     0   :  { %12 = vsyncpa [#allocation3], 0  ;;  %s875_s0 = inlined_call_operand.vmem [shape: bf16[16,32], index: 0, kind: input, shape index: {}]   ;;  %s876_s1 = inlined_call_operand.vmem [shape: bf16[32,64], index: 1, kind: input, shape index: {}]   ;;  %s877_s2 = inlined_call_operand.vmem [shape: f32[1,64], index: 2, kind: input, shape index: {}]   ;;  %s878_s3 = inlined_call_operand.vmem [shape: bf16[64,32], index: 3, kind: input, shape index: {}]   ;;  %s879_s4 = inlined_call_operand.vmem [shape: f32[1,32], index: 4, kind: input, shape index: {}]   ;;  %s880_s5 = inlined_call_operand.vmem [shape: f32[1,32], index: 5, kind: input, shape index: {}]   ;;  %s881_s6 = inlined_call_operand.vmem [shape: f32[1,32], index: 6, kind: input, shape index: {}]   ;;  %s882_s7 = inlined_call_operand.hbm [shape: bf16[16,32], index: 7, kind: output, shape index: {}]  }
   0x1   :  { %14 = vsyncpa [#allocation3 + $0x1], 0  ;;  %s742_s24 = smov 0   ;;  %s744_s25 = smov 0  }
   0x2   :  { %s746_s26 = smov 0   ;;  %s748_s27 = smov 0  }
   0x3 LB: > { %s763_s28 = sadd.s32 4294967295, %s697_s27   ;;  %s536_s29 = sadd.s32 4294967294, %s697_s27   ;;  %s697_s27 = sphi %s748_s27, %s888_s27   ;;  %s693_s26 = sphi %s746_s26, %s887_s26   ;;  %s689_s25 = sphi %s744_s25, %s886_s25   ;;  %s685_s24 = sphi %s742_s24, %s885_s24  }
   0x4   : > { %s767_s30 = sadd.s32 1, %s697_s27   ;;  %s179_s8 = sadd.s32 1, %s693_s26 }
   0x5   : > { %s176_s9 = ssub.s32 %s697_s27, %s767_s30  ;;  %p189_p0 = scmp.ne.s32.totalorder %s693_s26, %s689_s25 }
   0x6   : > { %p177_p1 = scmp.eq.s32.totalorder %s176_s9, 0  ;;  %p190_p2 = scmp.eq.s32.totalorder %s763_s28, 1 }
   0x7   : > { %p195_p3 = scmp.ne.s32.totalorder %s689_s25, %s685_s24  ;;  %p196_p4 = scmp.eq.s32.totalorder %s536_s29, 1 }
   0x8   : > { %s778_s10 = scalar_select %p177_p1, %s693_s26, %s179_s8  }
   0x9   : > { %p780_p5 = por %p190_p2, %p189_p0  ;;  %p784_p6 = por %p196_p4, %p195_p3 }
   0xa   : > { %p539_p7 = scmp.ge.s32.totalorder %s697_s27, 1  ;;  %p239_p8 = scmp.lt.s32.totalorder %s697_s27, 3 }
   0xc   : > { %p240_p9 = pnand %p539_p7, %p239_p8 }
   0xd   : > { %v627_v0 = vld [vmem:[%s876_s1] sm:$0xff] (!%p240_p9)   ;;  %v699_v1 = vmov (!%p240_p9), 0.0   ;;  %v628_v2 = vld [vmem:[%s876_s1 + $0x8] sm:$0xff] (!%p240_p9)   ;;  %vm700_vm0 = vmmov (!%p240_p9), 0   ;;  %p270_p10 = scmp.lt.s32.totalorder (!%p240_p9), %s763_s28, 1  ;;  %vm299_vm1 = vcmask (!%p240_p9), 261120  }
   0xe   : > { %243 = sbr.rel (%p240_p9) target bundleno = 789 (0x315), region = 48  ;;  %566 = vmatprep.subr.bf16.mxu0 (!%p240_p9), %v699_v1  ;;  %574 = vmatprep.subr.bf16.mxu1 (!%p240_p9), %v699_v1  ;;  %v629_v3 = vld [vmem:[%s878_s3] sm:$0xff] (!%p240_p9)   ;;  %v630_v4 = vld [vmem:[%s878_s3 + $0x8] sm:$0xff] (!%p240_p9)   ;;  %v631_v6 = vld [vmem:[%s878_s3 + $0x10] sm:$0xff] (!%p240_p9)   ;;  %vm384_vm2 = vcmask (!%p240_p9), 523264   ;;  %s267_s20 = sand.u32 (!%p240_p9), 1, %s689_s25  }
   0xf   : > { %567 = vmatpush3.bf16.msra.mxu0 (!%p240_p9), %v627_v0  ;;  %570 = vmatprep.mubr.msk.bf16.mxu0 (!%p240_p9), %vm700_vm0, %v699_v1  ;;  %v632_v7 = vld [vmem:[%s878_s3 + $0x18] sm:$0xff] (!%p240_p9)   ;;  %v542_v8 = vld [vmem:[%s877_s2] ss:$0 sm:$0xff] (!%p240_p9)  ;;  %s540_s21 = sshll.u32 (!%p240_p9), %s267_s20, 2  ;;  %s555_s9 = sshll.u32 (!%p240_p9), %s763_s28, 6  ;;  %vm461_vm3 = vcmask (!%p240_p9), 257024  }
  0x10   : > { %568 = vmatprep.subr.bf16.mxu0 (!%p240_p9), %v699_v1  ;;  %582 = vmatprep.mubr.msk.bf16.mxu1 (!%p240_p9), %vm700_vm0, %v699_v1  ;;  %v546_v16 = vld [vmem:[%s879_s4] ss:$0 sm:$0xff] (!%p240_p9)  ;;  %s269_s13 = scalar_lea.vmem (!%p240_p9), [#allocation2], %s540_s21  ;;  %s833_s17 = scalar_lea.hbm (!%p240_p9), %s882_s7, %s555_s9 }
  0x11   : > { %575 = vmatpush3.bf16.msra.mxu1 (!%p240_p9), %v629_v3  ;;  %v552_v34 = vld [vmem:[%s880_s5] ss:$0 sm:$0xff] (!%p240_p9)  ;;  %s477_s14 = sshll.u32 (!%p240_p9), %s269_s13, 4  ;;  %s464_s18 = scalar_lea.sflag (!%p240_p9), [#allocation3], %s267_s20  ;;  %s835_s14 = int_to_ptr.vmem [resolvable:$true] %s477_s14 }
  0x12   : > { %576 = vmatprep.subr.bf16.mxu1 (!%p240_p9), %v699_v1  ;;  %v553_v36 = vld [vmem:[%s881_s6] ss:$0 sm:$0xff] (!%p240_p9) }
  0x13   : > { %569 = vmatpush3.bf16.msra.mxu0 (!%p240_p9), %v628_v2 }
  0x15   : > { %s271_s19 = scalar_select %p270_p10, %s763_s28, 1  ;;  %577 = vmatpush3.bf16.msra.mxu1 %v630_v4 }
  0x16   : > { %578 = vmatprep.subr.bf16.mxu1 %v699_v1  ;;  %s701_s28 = smov [#allocation2]  }
  0x17   : > { %s541_s22 = sshll.u32 %s271_s19, 2  ;;  %s635_s19 = scalar_lea.vmem %s835_s14, 64 }
  0x18   : > { %s273_s8 = scalar_lea.vmem %s875_s0, %s541_s22  ;;  %p636_p11 = scmp.ne.s32.totalorder %s835_s14, %s635_s19 }
  0x19   : > { %v275_v5 = vld [vmem:[%s273_s8] sm:$0xf]  ;;  %579 = vmatpush3.bf16.msra.mxu1 %v631_v6  ;;  %s639_s21 = sshll.u32 %s701_s28, 4  ;;  %s640_s21 = int_to_ptr.vmem [resolvable:$false] %s639_s21 }
  0x1a   : > { %571 = vmatmul.mubr.msk.bf16.vlgmr.msra.gmra.mrb[0].mxu0 %vm299_vm1, %v275_v5  ;;  %580 = vmatprep.subr.bf16.mxu1 %v699_v1  ;;  %v430_v17 = vunpack.c.l.bf16 %v275_v5  ;;  %p637_p12 = pnand %p636_p11, %p780_p5  ;;  %s641_s22 = scalar_lea.vmem %s640_s21, 128 }
  0x1b   : > { %p642_p0 = scmp.lt.s32.totalorder %s835_s14, %s640_s21  ;;  %p643_p1 = scmp.lt.s32.totalorder %s641_s22, %s635_s19 }
  0x1c   : > { %p638_p13 = pneg %p637_p12 }
  0x1d   : > { %581 = vmatpush3.bf16.msra.mxu1 %v632_v7  ;;  %p644_p2 = por %p643_p1, %p642_p0 }
  0x1f   : > { %p645_p3 = pnand %p644_p2, %p638_p13 }
  0xed   : > { %v337_v9 = vpop.f32.mrb[0].mxu0 }
  0xee   : > { %v338_v10 = vadd.f32 %v542_v8, %v337_v9  ;;  %v572_v11 = vpop.f32.mrb[1].mxu0 }
  0xef   : > { %v340_v12 = vpop.f32.mrb[2].mxu0 }
  0xf0   : > { %v343_v13 = vmax.f32 %v338_v10, 0.0  ;;  %v573_v14 = vpop.f32.mrb[3].mxu0 }
  0xf2   : > { %v344_v15 = vpack.c.bf16 %v343_v13, %v343_v13 }
  0xf4   : > { %583 = vmatmul.mubr.msk.bf16.vlgmr.msra.gmra.mrb[0].mxu1 %vm384_vm2, %v344_v15 }
 0x1c7   : > { %v422_v18 = vpop.f32.mrb[0].mxu1 }
 0x1c8   : > { %v423_v19 = vadd.f32 %v546_v16, %v422_v18  ;;  %v584_v20 = vpop.f32.mrb[1].mxu1 }
 0x1c9   : > { %v425_v21 = vpop.f32.mrb[2].mxu1 }
 0x1ca   : > { %v585_v22 = vpop.f32.mrb[3].mxu1  ;;  %v431_v23 = vadd.f32 %v430_v17, %v423_v19 }
 0x1cc   : > { %v432_v24 = vsel %vm299_vm1, %v431_v23, 0.0 }
 0x1cd   : > { %433 = vadd.xlane.f32.xlu0 %v432_v24 }
 0x25a   : > { %v434_v25 = vpop.xlane.xlu0 %433 }
 0x25b   : > { %v436_v26 = vmul.f32 0.03125, %v434_v25 }
 0x25d   : > { %v437_v27 = vsub.f32 %v431_v23, %v436_v26 }
 0x25f   : > { %v438_v28 = vmul.f32 %v437_v27, %v437_v27 }
 0x261   : > { %v439_v29 = vsel %vm299_vm1, %v438_v28, 0.0 }
 0x262   : > { %440 = vadd.xlane.f32.xlu0 %v439_v29 }
 0x2ef   : > { %v441_v30 = vpop.xlane.xlu0 %440 }
 0x2f0   : > { %v442_v31 = vmul.f32 0.03125, %v441_v30 }
 0x2f2   : > { %v443_v32 = vadd.f32 1e-05, %v442_v31 }
 0x2f4   : > { %633 = vrsqrt.f32 %v443_v32 }
 0x2fe   : > { %v634_v33 = vpop.eup %633 }
 0x2ff   : > { %v445_v35 = vmul.f32 %v634_v33, %v437_v27 }
 0x301   : > { %v452_v37 = vmul.f32 %v552_v34, %v445_v35 }
 0x303   : > { %v459_v38 = vadd.f32 %v553_v36, %v452_v37 }
 0x305   : > { %v460_v39 = vpack.c.bf16 %v459_v38, %v459_v38 }
 0x307   : > { %462 = vst.msk [vmem:[%s269_s13] sm:$0xf] %vm461_vm3, %v460_v39 }
 0x308   : > { %648 = shalt.err (!%p645_p3)
}
 0x309   : > { %s649_s20 = scalar_lea.hbm %s833_s17, 64  ;;  %s653_s8 = scalar_lea.hbm %s882_s7, 128 }
 0x30a   : > { %p650_p4 = scmp.ne.s32.totalorder %s833_s17, %s649_s20  ;;  %p654_p9 = scmp.lt.u32.totalorder %s833_s17, %s882_s7 }
 0x30b   : > { %p655_p10 = scmp.lt.u32.totalorder %s653_s8, %s649_s20  ;;  %p657_p12 = scmp.lt.u32.totalorder %s649_s20, %s833_s17 }
 0x30c   : > { %p651_p7 = pnand %p650_p4, %p780_p5 }
 0x30d   : > { %p656_p11 = por %p655_p10, %p654_p9 }
 0x30e   : > { %p652_p8 = pneg %p651_p7 }
 0x30f   : > { %p658_p13 = por %p657_p12, %p656_p11 }
 0x311   : > { %p659_p0 = pnand %p658_p13, %p652_p8 }
 0x313   : > { %662 = shalt.err (!%p659_p0)
}
 0x314   : > { %586 = dma.vmem_to_hbm [thread:$0]  (%p780_p5), %s835_s14, 64, %s833_s17, %s464_s18  }
 0x315 PF: > { %p592_p1 = scmp.ge.s32.totalorder %s697_s27, 2  ;;  %s489_s15 = sand.u32 1, %s685_s24  }
 0x316   : > { %s490_s16 = scalar_lea.sflag [#allocation3], %s489_s15 }
 0x317   : > { %p589_p2 = pnand %p592_p1, %p784_p6 }
 0x319   : > { %680 = dma.done.wait (!%p589_p2), %s490_s16, 64  }
 0x31a   : > { %682 = vsyncadd (!%p589_p2), %s490_s16, 4294967232  ;;  %p17_p3 = scmp.ge.s32.totalorder %s767_s30, 4   ;;  %s885_s24 = smov %s689_s25 }
 0x31b   : > { %s886_s25 = smov %s693_s26  ;;  %s887_s26 = smov %s778_s10 }
 0x31c   : > { %s888_s27 = smov %s767_s30  ;;  %19 = sbr.rel (!%p17_p3) target bundleno = 3 (0x3), region = 83 }
 0x323   :  { %495 = vsyncpa [#allocation3], 1 }
 0x324   :  { %497 = vsyncpa [#allocation3 + $0x1], 1 }

// kernel: transformer_fwd.22
= control target key start
LH: loop header
LB: loop body
LE: loop exit
PB: predicated region body
PF: predicated region fallthrough
CT: control target
= control target key end

     0   :  { %s1251_s27 = smov 0   ;;  %s1382_s0 = inlined_call_operand.vmem [shape: bf16[2,8,32], index: 0, kind: input, shape index: {}]   ;;  %s1383_s1 = inlined_call_operand.vmem [shape: bf16[32,96], index: 1, kind: input, shape index: {}]   ;;  %s1384_s2 = inlined_call_operand.vmem [shape: f32[1,96], index: 2, kind: input, shape index: {}]   ;;  %s1385_s3 = inlined_call_operand.vmem [shape: bf16[32,32], index: 3, kind: input, shape index: {}]   ;;  %s1386_s4 = inlined_call_operand.vmem [shape: f32[1,32], index: 4, kind: input, shape index: {}]   ;;  %s1387_s5 = inlined_call_operand.vmem [shape: f32[2,8,8], index: 5, kind: input, shape index: {}]   ;;  %s1388_s6 = inlined_call_operand.vmem [shape: f32[1,32], index: 6, kind: input, shape index: {}]   ;;  %s1389_s7 = inlined_call_operand.vmem [shape: f32[1,32], index: 7, kind: input, shape index: {}]   ;;  %s1390_s8 = inlined_call_operand.vmem [shape: bf16[2,8,32], index: 8, kind: output, shape index: {}]  }
   0x1 LB: > { %s1022_s28 = sadd.s32 4294967295, %s1188_s27   ;;  %p1026_p0 = scmp.ge.s32.totalorder %s1188_s27, 1  ;;  %s1188_s27 = sphi %s1251_s27, %s18_s27  }
   0x2   : > { %p270_p1 = scmp.lt.s32.totalorder %s1188_s27, 3 }
   0x4   : > { %p271_p2 = pnand %p1026_p0, %p270_p1 }
   0x5   : > { %v1160_v0 = vld [vmem:[%s1383_s1] sm:$0xff] (!%p271_p2)   ;;  %v1190_v1 = vmov (!%p271_p2), 0.0   ;;  %v1161_v2 = vld [vmem:[%s1383_s1 + $0x8] sm:$0xff] (!%p271_p2)   ;;  %vm1191_vm0 = vmmov (!%p271_p2), 0   ;;  %p306_p3 = scmp.lt.s32.totalorder (!%p271_p2), %s1022_s28, 1  ;;  %vm344_vm1 = vcmask (!%p271_p2), 261120  }
   0x6   : > { %274 = sbr.rel (%p271_p2) target bundleno = 1812 (0x714), region = 52  ;;  %1072 = vmatprep.subr.bf16.mxu0 (!%p271_p2), %v1190_v1  ;;  %1080 = vmatprep.subr.bf16.mxu1 (!%p271_p2), %v1190_v1  ;;  %v1030_v4 = vld [vmem:[%s1384_s2] ss:$0 sm:$0xff] (!%p271_p2)  ;;  %s1192_s17 = smov (!%p271_p2), 120   ;;  %vm392_vm2 = vcmask (!%p271_p2), 64512   ;;  %vm458_vm3 = vcmask (!%p271_p2), 1043456  }
   0x7   : > { %1073 = vmatpush3.bf16.msra.mxu0 (!%p271_p2), %v1160_v0  ;;  %1076 = vmatprep.mubr.msk.bf16.mxu0 (!%p271_p2), %vm1191_vm0, %v1190_v1  ;;  %s1193_s18 = smov (!%p271_p2), 96   ;;  %s1194_s19 = smov (!%p271_p2), 80   ;;  %vm851_vm4 = vcmask (!%p271_p2), 130048   ;;  %vm853_vm5 = vcmask (!%p271_p2), 195584   ;;  %vm955_vm6 = vcmask (!%p271_p2), 257024  }
   0x8   : > { %1074 = vmatprep.subr.bf16.mxu0 (!%p271_p2), %v1190_v1  ;;  %1082 = vmatprep.mubr.msk.bf16.mxu1 (!%p271_p2), %vm1191_vm0, %v1190_v1  ;;  %s1195_s20 = smov (!%p271_p2), 88   ;;  %s1196_s21 = smov (!%p271_p2), 72  }
   0x9   : > { %s1197_s22 = smov (!%p271_p2), 112   ;;  %s1198_s23 = smov (!%p271_p2), 104  }
   0xa   : > { %s1199_s30 = smov (!%p271_p2), 56   ;;  %s1200_s9 = smov (!%p271_p2), 64  }
   0xb   : > { %1075 = vmatpush3.bf16.msra.mxu0 (!%p271_p2), %v1161_v2  ;;  %s1201_s10 = smov (!%p271_p2), 40   ;;  %s1202_s12 = smov (!%p271_p2), 48  }
   0xc   : > { %1086 = vmatprep.subr.bf16.mxu0 (!%p271_p2), %v1190_v1  ;;  %s1203_s13 = smov (!%p271_p2), 8  }
   0xd   : > { %s1392_s28 = smov (!%p306_p3, %s1022_s28), 1 }
   0xe   : > { %s1027_s11 = sshll.u32 %s1392_s28, 2  ;;  %s1028_s24 = sshll.u32 %s1392_s28, 3 }
   0xf   : > { %s309_s14 = scalar_lea.vmem %s1382_s0, %s1027_s11  ;;  %s313_s29 = scalar_lea.vmem %s1387_s5, %s1028_s24 }
  0x10   : > { %v1281_v3 = vld [vmem:[%s309_s14] sm:$0xf] }
  0x11   : > { %1077 = vmatmul.mubr.msk.bf16.vlgmr.msra.gmra.mrb[0].mxu0 %vm344_vm1, %v1281_v3  ;;  %v320_v23 = vld [vmem:[%s313_s29] sm:$0xff] }
  0x12   : > { %1088 = vmatprep.mubr.msk.bf16.mxu0 %vm1191_vm0, %v1190_v1 }
  0xe4   : > { %v382_v5 = vpop.f32.mrb[0].mxu0 }
  0xe5   : > { %v383_v6 = vadd.f32 %v1030_v4, %v382_v5  ;;  %v1078_v7 = vpop.f32.mrb[1].mxu0 }
  0xe6   : > { %v385_v8 = vpop.f32.mrb[2].mxu0 }
  0xe7   : > { %v1290_v9 = vpack.c.bf16 %v383_v6, %v383_v6  ;;  %v1079_v10 = vpop.f32.mrb[3].mxu0 }
  0xe9   : > { %502 = vrot.lane.b32.xlu1 %v1290_v9, %s1192_s17  ;;  %390 = vrot.lane.b32.xlu0 %v1290_v9, %s1193_s18  ;;  %s1204_s18 = smov 16  }
  0xed   : > { %616 = vrot.lane.b32.xlu1 %v1290_v9, %s1194_s19  ;;  %504 = vrot.lane.b32.xlu0 %v1290_v9, %s1195_s20  ;;  %s1205_s19 = smov 24  }
  0xf1   : > { %728 = vrot.lane.b32.xlu1 %v1290_v9, %s1196_s21  ;;  %614 = vrot.lane.b32.xlu0 %v1290_v9, %s1197_s22 }
  0xf5   : > { %726 = vrot.lane.b32.xlu0 %v1290_v9, %s1198_s23 }
 0x15b   : > { %v391_v11 = vpop.permute.xlu0 %390  ;;  %v503_v14 = vpop.permute.xlu1 %502 }
 0x15c   : > { %v397_v12 = vsel %vm392_vm2, %v391_v11, 0 }
 0x15d   : > { %1081 = vmatpush3.bf16.xpose.msra.mxu1 %v397_v12 }
 0x15e   : > { %1092 = vmatprep.subr.bf16.mxu1 %v1190_v1 }
 0x15f   : > { %v505_v13 = vpop.permute.xlu0 %504  ;;  %v617_v16 = vpop.permute.xlu1 %616 }
 0x160   : > { %v510_v15 = vsel %vm392_vm2, %v505_v13, 0  ;;  %v622_v17 = vsel %vm392_vm2, %v617_v16, 0 }
 0x163   : > { %v729_v18 = vpop.permute.xlu1 %728  ;;  %v615_v19 = vpop.permute.xlu0 %614 }
 0x164   : > { %1083 = vmatmul.mubr.msk.bf16.vlgmr.msra.gmra.mrb[0].mxu1 %vm392_vm2, %v1290_v9  ;;  %v734_v20 = vsel %vm392_vm2, %v729_v18, 0 }
 0x165   : > { %1093 = vmatpush3.bf16.xpose.msra.mxu1 %v510_v15  ;;  %1094 = vmatprep.mubr.msk.bf16.mxu1 %vm1191_vm0, %v1190_v1 }
 0x166   : > { %1104 = vmatprep.subr.bf16.mxu1 %v1190_v1 }
 0x167   : > { %v727_v21 = vpop.permute.xlu0 %726 }
 0x16c   : > { %1095 = vmatmul.mubr.msk.bf16.vlgmr.msra.gmra.mrb[4].mxu1 %vm392_vm2, %v503_v14 }
 0x16d   : > { %1105 = vmatpush3.bf16.xpose.msra.mxu1 %v622_v17  ;;  %1106 = vmatprep.mubr.msk.bf16.mxu1 %vm1191_vm0, %v1190_v1 }
 0x16e   : > { %1116 = vmatprep.subr.bf16.mxu1 %v1190_v1 }
 0x174   : > { %1107 = vmatmul.mubr.msk.bf16.vlgmr.msra.gmra.mrb[8].mxu1 %vm392_vm2, %v615_v19 }
 0x175   : > { %1117 = vmatpush3.bf16.xpose.msra.mxu1 %v734_v20  ;;  %1118 = vmatprep.mubr.msk.bf16.mxu1 %vm1191_vm0, %v1190_v1 }
 0x176   : > { %1128 = vmatprep.subr.bf16.mxu1 %v1190_v1 }
 0x17c   : > { %1119 = vmatmul.mubr.msk.bf16.vlgmr.msra.gmra.mrb[12].mxu1 %vm392_vm2, %v727_v21 }
 0x17d   : > { %1132 = vmatprep.mubr.msk.bf16.mxu1 %vm1191_vm0, %v1190_v1 }
 0x237   : > { %v433_v22 = vpop.f32.mrb[0].mxu1 }
 0x238   : > { %v439_v24 = vmul.f32 0.35355338, %v433_v22  ;;  %v1084_v25 = vpop.f32.mrb[1].mxu1 }
 0x239   : > { %v436_v26 = vpop.f32.mrb[2].mxu1 }
 0x23a   : > { %v1085_v27 = vpop.f32.mrb[3].mxu1  ;;  %v440_v28 = vadd.f32 %v439_v24, %v320_v23 }
 0x23c   : > { %v441_v29 = vsel %vm392_vm2, %v440_v28, -inf }
 0x23d   : > { %442 = vmax.xlane.f32.xlu1 %v441_v29 }
 0x23f   : > { %v546_v30 = vpop.f32.mrb[4].mxu1 }
 0x240   : > { %v552_v31 = vmul.f32 0.35355338, %v546_v30  ;;  %v1096_v32 = vpop.f32.mrb[5].mxu1 }
 0x241   : > { %v549_v33 = vpop.f32.mrb[6].mxu1 }
 0x242   : > { %v1097_v34 = vpop.f32.mrb[7].mxu1  ;;  %v553_v35 = vadd.f32 %v552_v31, %v320_v23 }
 0x244   : > { %v554_v36 = vsel %vm392_vm2, %v553_v35, -inf }
 0x245   : > { %555 = vmax.xlane.f32.xlu0 %v554_v36 }
 0x247   : > { %v658_v37 = vpop.f32.mrb[8].mxu1 }
 0x248   : > { %v664_v38 = vmul.f32 0.35355338, %v658_v37  ;;  %v1108_v39 = vpop.f32.mrb[9].mxu1 }
 0x249   : > { %v661_v40 = vpop.f32.mrb[10].mxu1 }
 0x24a   : > { %v1109_v41 = vpop.f32.mrb[11].mxu1  ;;  %v665_v42 = vadd.f32 %v664_v38, %v320_v23 }
 0x24b   : > { %v1162_v41 = vld [vmem:[%s1385_s3] sm:$0xff]  }
 0x24c   : > { %v666_v43 = vsel %vm392_vm2, %v665_v42, -inf  ;;  %1129 = vmatpush3.bf16.msra.mxu1 %v1162_v41 }
 0x24d   : > { %667 = vmax.xlane.f32.xlu0 %v666_v43  ;;  %1130 = vmatprep.subr.bf16.mxu1 %v1190_v1 }
 0x24f   : > { %v770_v44 = vpop.f32.mrb[12].mxu1 }
 0x250   : > { %v776_v45 = vmul.f32 0.35355338, %v770_v44  ;;  %v1120_v46 = vpop.f32.mrb[13].mxu1 }
 0x251   : > { %v773_v47 = vpop.f32.mrb[14].mxu1 }
 0x252   : > { %v1121_v48 = vpop.f32.mrb[15].mxu1  ;;  %v777_v49 = vadd.f32 %v776_v45, %v320_v23 }
 0x254   : > { %v778_v50 = vsel %vm392_vm2, %v777_v49, -inf }
 0x255   : > { %779 = vmax.xlane.f32.xlu1 %v778_v50 }
 0x2ca   : > { %v443_v51 = vpop.xlane.xlu1 %442 }
 0x2cb   : > { %v444_v52 = vsub.f32 %v440_v28, %v443_v51 }
 0x2cd   : > { %v445_v53 = vmul.f32 1.442695, %v444_v52 }
 0x2cf   : > { %1164 = vpow2.f32 %v445_v53 }
 0x2d2   : > { %v556_v54 = vpop.xlane.xlu0 %555 }
 0x2d3   : > { %v557_v55 = vsub.f32 %v553_v35, %v556_v54 }
 0x2d5   : > { %v558_v56 = vmul.f32 1.442695, %v557_v55 }
 0x2d7   : > { %1166 = vpow2.f32 %v558_v56 }
 0x2d9   : > { %v1165_v57 = vpop.eup %1164 }
 0x2da   : > { %v668_v58 = vpop.xlane.xlu0 %667  ;;  %v447_v59 = vsel %vm392_vm2, %v1165_v57, 0.0 }
 0x2db   : > { %v669_v60 = vsub.f32 %v665_v42, %v668_v58  ;;  %448 = vadd.xlane.f32.xlu0 %v447_v59  ;;  %v1163_v42 = vld [vmem:[%s1385_s3 + $0x8] sm:$0xff]   ;;  %v924_v58 = vunpack.c.l.bf16 %v1281_v3 }
 0x2dc   : > { %1131 = vmatpush3.bf16.msra.mxu1 %v1163_v42 }
 0x2dd   : > { %v670_v61 = vmul.f32 1.442695, %v669_v60 }
 0x2df   : > { %1168 = vpow2.f32 %v670_v61 }
 0x2e1   : > { %v1167_v62 = vpop.eup %1166 }
 0x2e2   : > { %v560_v63 = vsel %vm392_vm2, %v1167_v62, 0.0  ;;  %v780_v4 = vpop.xlane.xlu1 %779 }
 0x2e3   : > { %561 = vadd.xlane.f32.xlu1 %v560_v63  ;;  %v781_v5 = vsub.f32 %v777_v49, %v780_v4 }
 0x2e5   : > { %v782_v6 = vmul.f32 1.442695, %v781_v5 }
 0x2e7   : > { %1170 = vpow2.f32 %v782_v6 }
 0x2e9   : > { %v1169_v0 = vpop.eup %1168 }
 0x2ea   : > { %v672_v2 = vsel %vm392_vm2, %v1169_v0, 0.0 }
 0x2eb   : > { %673 = vadd.xlane.f32.xlu0 %v672_v2 }
 0x2f1   : > { %v1171_v7 = vpop.eup %1170 }
 0x2f2   : > { %v784_v8 = vsel %vm392_vm2, %v1171_v7, 0.0 }
 0x2f4   : > { %566 = vrot.lane.b32.xlu1 %v1290_v9, %s1199_s30  ;;  %s317_s30 = scalar_lea.vmem %s1390_s8, %s1027_s11 }
 0x301   : > { %453 = vrot.lane.b32.xlu0 %v1290_v9, %s1200_s9 }
 0x305   : > { %790 = vrot.lane.b32.xlu0 %v1290_v9, %s1201_s10 }
 0x318   : > { %785 = vadd.xlane.f32.xlu1 %v784_v8 }
 0x329   : > { %678 = vrot.lane.b32.xlu1 %v1290_v9, %s1202_s12 }
 0x368   : > { %v449_v10 = vpop.xlane.xlu0 %448 }
 0x369   : > { %1172 = vrcp.f32 %v449_v10 }
 0x370   : > { %v562_v11 = vpop.xlane.xlu1 %561 }
 0x371   : > { %1174 = vrcp.f32 %v562_v11 }
 0x373   : > { %v1173_v12 = vpop.eup %1172 }
 0x374   : > { %v451_v14 = vmul.f32 %v1173_v12, %v1165_v57  ;;  %v567_v17 = vpop.permute.xlu1 %566  ;;  %v1042_v57 = vld [vmem:[%s1386_s4] ss:$0 sm:$0xff] }
 0x375   : > { %v572_v20 = vsel %vm458_vm3, %v567_v17, 0 }
 0x376   : > { %v452_v18 = vpack.c.bf16 %v451_v14, %v451_v14 }
 0x378   : > { %v674_v13 = vpop.xlane.xlu0 %673 }
 0x379   : > { %1176 = vrcp.f32 %v674_v13  ;;  %v1046_v13 = vld [vmem:[%s1388_s6] ss:$0 sm:$0xff] }
 0x37b   : > { %v1175_v19 = vpop.eup %1174 }
 0x37c   : > { %v454_v15 = vpop.permute.xlu0 %453  ;;  %v564_v9 = vmul.f32 %v1175_v19, %v1167_v62 }
 0x37d   : > { %v460_v16 = vsel %vm458_vm3, %v454_v15, 0  ;;  %v1047_v15 = vld [vmem:[%s1389_s7] ss:$0 sm:$0xff] }
 0x37e   : > { %1087 = vmatpush3.bf16.msra.mxu0 %v460_v16  ;;  %v565_v21 = vpack.c.bf16 %v564_v9, %v564_v9 }
 0x37f   : > { %1098 = vmatprep.subr.bf16.mxu0 %v1190_v1 }
 0x380   : > { %v791_v27 = vpop.permute.xlu0 %790 }
 0x381   : > { %1089 = vmatmul.mubr.msk.bf16.vlgmr.msra.gmra.mrb[4].mxu0 %vm392_vm2, %v452_v18  ;;  %v796_v29 = vsel %vm458_vm3, %v791_v27, 0 }
 0x382   : > { %1099 = vmatpush3.bf16.msra.mxu0 %v572_v20  ;;  %1100 = vmatprep.mubr.msk.bf16.mxu0 %vm1191_vm0, %v1190_v1 }
 0x383   : > { %1110 = vmatprep.subr.bf16.mxu0 %v1190_v1  ;;  %v1177_v22 = vpop.eup %1176 }
 0x384   : > { %v676_v24 = vmul.f32 %v1177_v22, %v1169_v0 }
 0x386   : > { %v677_v28 = vpack.c.bf16 %v676_v24, %v676_v24 }
 0x389   : > { %1101 = vmatmul.mubr.msk.bf16.vlgmr.msra.gmra.mrb[8].mxu0 %vm392_vm2, %v565_v21 }
 0x38a   : > { %1112 = vmatprep.mubr.msk.bf16.mxu0 %vm1191_vm0, %v1190_v1 }
 0x3a5   : > { %v786_v23 = vpop.xlane.xlu1 %785 }
 0x3a6   : > { %1178 = vrcp.f32 %v786_v23 }
 0x3a9   : > { %v679_v25 = vpop.permute.xlu1 %678 }
 0x3aa   : > { %v684_v26 = vsel %vm458_vm3, %v679_v25, 0 }
 0x3ab   : > { %1111 = vmatpush3.bf16.msra.mxu0 %v684_v26 }
 0x3ac   : > { %1122 = vmatprep.subr.bf16.mxu0 %v1190_v1 }
 0x3ae   : > { %1113 = vmatmul.mubr.msk.bf16.vlgmr.msra.gmra.mrb[12].mxu0 %vm392_vm2, %v677_v28 }
 0x3af   : > { %1123 = vmatpush3.bf16.msra.mxu0 %v796_v29  ;;  %1124 = vmatprep.mubr.msk.bf16.mxu0 %vm1191_vm0, %v1190_v1 }
 0x3b0   : > { %v1179_v30 = vpop.eup %1178 }
 0x3b1   : > { %v788_v31 = vmul.f32 %v1179_v30, %v1171_v7 }
 0x3b3   : > { %v789_v32 = vpack.c.bf16 %v788_v31, %v788_v31 }
 0x3b6   : > { %1125 = vmatmul.mubr.msk.bf16.vlgmr.msra.gmra.mrb[16].mxu0 %vm392_vm2, %v789_v32 }
 0x454   : > { %v496_v33 = vpop.f32.mrb[4].mxu0 }
 0x455   : > { %v1090_v34 = vpop.f32.mrb[5].mxu0 }
 0x456   : > { %v499_v35 = vpop.f32.mrb[6].mxu0 }
 0x457   : > { %v1091_v36 = vpop.f32.mrb[7].mxu0 }
 0x45c   : > { %v608_v37 = vpop.f32.mrb[8].mxu0 }
 0x45d   : > { %839 = vrot.lane.b32.xlu1 %v608_v37, %s1203_s13  ;;  %v1102_v38 = vpop.f32.mrb[9].mxu0 }
 0x45e   : > { %v611_v39 = vpop.f32.mrb[10].mxu0 }
 0x45f   : > { %v1103_v40 = vpop.f32.mrb[11].mxu0 }
 0x481   : > { %v720_v43 = vpop.f32.mrb[12].mxu0 }
 0x482   : > { %843 = vrot.lane.b32.xlu0 %v720_v43, %s1204_s18  ;;  %v1114_v44 = vpop.f32.mrb[13].mxu0 }
 0x483   : > { %v723_v45 = vpop.f32.mrb[14].mxu0 }
 0x484   : > { %v1115_v46 = vpop.f32.mrb[15].mxu0 }
 0x489   : > { %v832_v47 = vpop.f32.mrb[16].mxu0 }
 0x48a   : > { %847 = vrot.lane.b32.xlu1 %v832_v47, %s1205_s19  ;;  %v1126_v48 = vpop.f32.mrb[17].mxu0 }
 0x48b   : > { %v835_v49 = vpop.f32.mrb[18].mxu0 }
 0x48c   : > { %v1127_v50 = vpop.f32.mrb[19].mxu0 }
 0x4cf   : > { %v840_v51 = vpop.permute.xlu1 %839 }
 0x4d0   : > { %v850_v52 = vsel %vm392_vm2, %v496_v33, %v840_v51 }
 0x4f4   : > { %v844_v1 = vpop.permute.xlu0 %843 }
 0x4f5   : > { %v852_v53 = vsel %vm851_vm4, %v850_v52, %v844_v1 }
 0x4fc   : > { %v848_v54 = vpop.permute.xlu1 %847 }
 0x4fd   : > { %v854_v55 = vsel %vm853_vm5, %v852_v53, %v848_v54 }
 0x4fe   : > { %v855_v56 = vpack.c.bf16 %v854_v55, %v854_v55 }
 0x500   : > { %1133 = vmatmul.mubr.msk.bf16.vlgmr.msra.gmra.mrb[16].mxu1 %vm344_vm1, %v855_v56 }
 0x5d3   : > { %v916_v59 = vpop.f32.mrb[16].mxu1 }
 0x5d4   : > { %v917_v60 = vadd.f32 %v1042_v57, %v916_v59  ;;  %v1134_v61 = vpop.f32.mrb[17].mxu1 }
 0x5d5   : > { %v919_v62 = vpop.f32.mrb[18].mxu1 }
 0x5d6   : > { %v1135_v63 = vpop.f32.mrb[19].mxu1  ;;  %v925_v0 = vadd.f32 %v924_v58, %v917_v60 }
 0x5d8   : > { %v926_v2 = vsel %vm344_vm1, %v925_v0, 0.0 }
 0x5d9   : > { %927 = vadd.xlane.f32.xlu0 %v926_v2 }
 0x666   : > { %v928_v4 = vpop.xlane.xlu0 %927 }
 0x667   : > { %v930_v5 = vmul.f32 0.03125, %v928_v4 }
 0x669   : > { %v931_v6 = vsub.f32 %v925_v0, %v930_v5 }
 0x66b   : > { %v932_v7 = vmul.f32 %v931_v6, %v931_v6 }
 0x66d   : > { %v933_v8 = vsel %vm344_vm1, %v932_v7, 0.0 }
 0x66e   : > { %934 = vadd.xlane.f32.xlu1 %v933_v8 }
 0x6fb   : > { %v935_v10 = vpop.xlane.xlu1 %934 }
 0x6fc   : > { %v936_v11 = vmul.f32 0.03125, %v935_v10 }
 0x6fe   : > { %v937_v3 = vadd.f32 1e-05, %v936_v11 }
 0x700   : > { %1180 = vrsqrt.f32 %v937_v3 }
 0x70a   : > { %v1181_v12 = vpop.eup %1180 }
 0x70b   : > { %v939_v14 = vmul.f32 %v1181_v12, %v931_v6 }
 0x70d   : > { %v946_v16 = vmul.f32 %v1046_v13, %v939_v14 }
 0x70f   : > { %v953_v17 = vadd.f32 %v1047_v15, %v946_v16 }
 0x711   : > { %v954_v18 = vpack.c.bf16 %v953_v17, %v953_v17 }
 0x713   : > { %956 = vst.msk [vmem:[%s317_s30] sm:$0xf] %vm955_vm6, %v954_v18 }
 0x714 PF: > { %s18_s27 = sadd.s32 1, %s1188_s27  }
 0x715   : > { %p15_p4 = scmp.ge.s32.totalorder %s18_s27, 4  }
 0x717   :  { %17 = sbr.rel (!%p15_p4) target bundleno = 1 (0x1), region = 85 }

</bundles_post_ra>
